<compile_context>
chip_gen: v6e
topology: v6e:2x2x1
jax: 0.10.0
libtpu: 0.0.40
codegen_flags: <defaults>
</compile_context>

<pallas_src>
import functools
import math

import jax
import jax.numpy as jnp
from jax import lax
from jax.experimental import pallas as pl
from jax.experimental.pallas import tpu as pltpu

_F32 = jnp.float32
_HIGHEST = lax.Precision.HIGHEST


def _tpu_vmem_capacity_bytes():
    """Physical VMEM capacity (conservative fallback = v7x per-core 64 MiB)."""
    try:
        cap = getattr(pltpu.get_tpu_info(), "vmem_capacity_bytes", None)
        if cap:
            return int(cap)
    except Exception:
        pass
    return 64 * 1024 * 1024


# --------------------------------------------------------------------------- #
# Kernels
# --------------------------------------------------------------------------- #
def _colsum_kernel(z2_ref, w1b_ref, b1t_ref, acc_ref, *,
                   n_total, tile_n, tiles_per_part):
    """Streaming pass 1: per-core partial sum_n tanh(z @ w1 + b1) -> (1,1,M*H)."""
    p = pl.program_id(0)                      # partials axis ("parallel"; 1 per TC on v7x)
    i = pl.program_id(1)                      # node-tile axis ("arbitrary" reduction)

    @pl.when(i == 0)
    def _init():
        acc_ref[...] = jnp.zeros_like(acc_ref)

    zb = z2_ref[...].astype(_F32)             # upcast in-kernel; z streamed in native dtype
    u = jnp.dot(zb, w1b_ref[...], preferred_element_type=_F32, precision=_HIGHEST)
    h = jnp.tanh(u + b1t_ref[...])            # (TN, M*H)

    t = p * tiles_per_part + i                # global node-tile index
    valid = n_total - t * tile_n              # #real rows in this tile (<=0 for pad tiles)

    @pl.when(valid >= tile_n)                 # common case: full tile, no mask cost
    def _full():
        acc_ref[...] += jnp.sum(h, axis=0, keepdims=True)[None]

    @pl.when(valid < tile_n)                  # ragged last tile / fully-padded tile only
    def _ragged():
        row_ids = jax.lax.broadcasted_iota(jnp.int32, h.shape, 0)
        hm = jnp.where(row_ids < valid, h, 0.0)   # select (not multiply): blocks NaN garbage
        acc_ref[...] += jnp.sum(hm, axis=0, keepdims=True)[None]


def _weighted_sum_kernel(z2_ref, bexp_ref, o_ref):
    """Streaming pass 2: out = z @ Bexp (single MXU matmul folds the M metapaths)."""
    zb = z2_ref[...].astype(_F32)
    o_ref[...] = jnp.dot(zb, bexp_ref[...], preferred_element_type=_F32,
                         precision=_HIGHEST).astype(o_ref.dtype)


def _fused_kernel(z2_ref, w1b_ref, b1t_ref, w2e_ref, f_ref, o_ref, *,
                  n_total, d_feat):
    """Fused single-call path (small graphs): z is read from HBM exactly once."""
    zb = z2_ref[...].astype(_F32)                                  # (N, M*D) resident
    u = jnp.dot(zb, w1b_ref[...], preferred_element_type=_F32, precision=_HIGHEST)
    h = jnp.tanh(u + b1t_ref[...])                                 # (N, M*H)
    colsum = jnp.sum(h, axis=0, keepdims=True)                     # (1, M*H)
    # Per-metapath attention logit, lane-expanded to D lanes per metapath: (1, M*D)
    lg = jnp.dot(colsum, w2e_ref[...], preferred_element_type=_F32,
                 precision=_HIGHEST) / n_total
    lg = lg - jnp.max(lg, axis=-1, keepdims=True)
    e = jnp.exp(lg)
    # Softmax over metapaths: each logit appears d_feat times -> rescale by d_feat.
    bexp = e * (d_feat / jnp.sum(e, axis=-1, keepdims=True))       # beta[m] per lane group
    out = jnp.dot(zb * bexp, f_ref[...], preferred_element_type=_F32,
                  precision=_HIGHEST)                              # (N, D)
    o_ref[...] = out.astype(o_ref.dtype)


# --------------------------------------------------------------------------- #
# Wrapper
# --------------------------------------------------------------------------- #
def _pick_tile_n(n, m, d, h, z_itemsize, vmem_cap, tile_n=None):
    if tile_n is None:
        budget = min(40 * 1024 * 1024, vmem_cap // 3)
        per_row = (2 * z_itemsize * m * d         # double-buffered native-dtype z tile row
                   + 4 * m * d                    # f32 upcast copy
                   + 3 * 4 * m * h                # u / h / masked-h f32 intermediates
                   + 2 * 4 * d)                   # double-buffered out row (pass 2)
        tile_n = max(256, budget // per_row)
    if tile_n >= n:
        return n                                  # one full-extent block (always legal)
    return max(8, (min(int(tile_n), 8192) // 8) * 8)


def semantic_attention(z, w1, b1, w2, *, tile_n=None):
    """Pallas TPU forward of SemanticAttention (independent_attn=False)."""
    N, M, D = z.shape
    H = w1.shape[1]
    out_dtype = z.dtype

    vmem_cap = _tpu_vmem_capacity_bytes()
    vmem_limit = max(32 * 1024 * 1024, min(96 * 1024 * 1024, (vmem_cap * 3) // 4))

    # Layout plumbing (done once, tiny): z keeps its native dtype, weights go f32.
    z2 = z.reshape(N, M * D)                                      # lane-dense, no astype
    eye_m = jnp.eye(M, dtype=_F32)
    w1f = w1.astype(_F32)
    b1f = b1.astype(_F32)
    w2f = w2.astype(_F32)
    w1b = (eye_m[:, None, :, None] * w1f[None, :, None, :]).reshape(M * D, M * H)
    b1t = jnp.tile(b1f.reshape(1, H), (1, M))                     # (1, M*H)

    fused_bytes = N * M * D * (z.dtype.itemsize + 4) + 2 * N * M * H * 4 + N * D * 4
    if tile_n is None and fused_bytes <= min(24 * 1024 * 1024, vmem_cap // 3):
        # ---- fused single-call path: beta + weighted sum with ONE HBM read of z ----
        w2blk = jnp.broadcast_to(w2f.reshape(H, 1), (H, D))       # w2[h] on every lane
        w2e = (eye_m[:, None, :, None] * w2blk[None, :, None, :]
               ).reshape(M * H, M * D)                            # block-diag Linear(H->1), expanded
        f_mat = jnp.tile(jnp.eye(D, dtype=_F32), (M, 1))          # (M*D, D) metapath fold
        return pl.pallas_call(
            functools.partial(_fused_kernel, n_total=N, d_feat=D),
            out_shape=jax.ShapeDtypeStruct((N, D), out_dtype),
            grid=(1,),
            in_specs=[
                pl.BlockSpec((N, M * D), lambda i: (0, 0)),
                pl.BlockSpec((M * D, M * H), lambda i: (0, 0)),
                pl.BlockSpec((1, M * H), lambda i: (0, 0)),
                pl.BlockSpec((M * H, M * D), lambda i: (0, 0)),
                pl.BlockSpec((M * D, D), lambda i: (0, 0)),
            ],
            out_specs=pl.BlockSpec((N, D), lambda i: (0, 0)),
            compiler_params=pltpu.CompilerParams(
                dimension_semantics=("arbitrary",),
                vmem_limit_bytes=vmem_limit),
        )(z2, w1b, b1t, w2e, f_mat)

    # ---- streaming two-pass path (large N, or explicit tile_n) -----------------
    tn = _pick_tile_n(N, M, D, H, z.dtype.itemsize, vmem_cap, tile_n)
    grid_n = pl.cdiv(N, tn)
    n_part = 2 if grid_n >= 2 else 1          # pass-1 partials (one per TC on v7x)
    tpp = pl.cdiv(grid_n, n_part)

    if grid_n % n_part == 0:                  # no pad tiles -> plain index map
        z_idx = lambda p, i: (p * tpp + i, 0)
    else:                                     # clamp pad tiles (their rows are masked)
        z_idx = lambda p, i: (jnp.minimum(p * tpp + i, grid_n - 1), 0)

    # Pass 1: per-core partial column sums of tanh(z @ w1 + b1).
    partials = pl.pallas_call(
        functools.partial(_colsum_kernel, n_total=N, tile_n=tn, tiles_per_part=tpp),
        out_shape=jax.ShapeDtypeStruct((n_part, 1, M * H), _F32),
        grid=(n_part, tpp),
        in_specs=[
            pl.BlockSpec((tn, M * D), z_idx),                     # streamed z tiles (native dtype)
            pl.BlockSpec((M * D, M * H), lambda p, i: (0, 0)),    # resident weights
            pl.BlockSpec((1, M * H), lambda p, i: (0, 0)),
        ],
        out_specs=pl.BlockSpec((1, 1, M * H), lambda p, i: (p, 0, 0)),
        compiler_params=pltpu.CompilerParams(
            dimension_semantics=("parallel", "arbitrary"),
            vmem_limit_bytes=vmem_limit),
    )(z2, w1b, b1t)

    # Tiny wrapper epilogue: combine partials, Linear(H->1), node mean, softmax.
    colsum = jnp.sum(partials, axis=(0, 1))                       # (M*H,)
    logits = (colsum.reshape(M, H) @ w2f.reshape(H, 1)).reshape(1, M) / N
    beta = jax.nn.softmax(logits, axis=-1)                        # (1, M)

    # Bexp[m*D+d, d] = beta[m]: folds (beta * z).sum(metapaths) into one MXU matmul.
    bexp = (beta.reshape(M, 1, 1) * jnp.eye(D, dtype=_F32)[None]).reshape(M * D, D)

    # Pass 2: out = z @ Bexp, streamed over node tiles (megacore-shardable).
    out = pl.pallas_call(
        _weighted_sum_kernel,
        out_shape=jax.ShapeDtypeStruct((N, D), out_dtype),
        grid=(grid_n,),
        in_specs=[
            pl.BlockSpec((tn, M * D), lambda i: (i, 0)),
            pl.BlockSpec((M * D, D), lambda i: (0, 0)),           # tiny resident Bexp
        ],
        out_specs=pl.BlockSpec((tn, D), lambda i: (i, 0)),
        compiler_params=pltpu.CompilerParams(
            dimension_semantics=("parallel",),
            vmem_limit_bytes=vmem_limit),
    )(z2, bexp)
    return out


def semantic_attention_ref(z, w1, b1, w2):
    """Pure-JAX reference mirroring the PyTorch forward (independent_attn=False)."""
    h = jnp.tanh(z @ w1 + b1)                                       # (N, M, H)
    w = jnp.sum(h * w2.reshape(1, 1, -1), axis=-1, keepdims=True)   # (N, M, 1)
    w = jnp.mean(w, axis=0, keepdims=True)                          # (1, M, 1)
    beta = jax.nn.softmax(w, axis=1)                                # (1, M, 1)
    return jnp.sum(beta * z, axis=1)                                # (N, D)


if __name__ == "__main__":
    # Small shapes consistent with the module: N nodes, M metapaths, D=in_size,
    # H=hidden.  M*D = 128 keeps tiles lane-dense; N=200 is not a multiple of the
    # 64-row tile so ragged-tile masking and the 2-partial pass-1 are exercised.
    N, M, D, H = 200, 4, 32, 32

    key = jax.random.PRNGKey(0)
    kz, k1, kb, k2 = jax.random.split(key, 4)
    z = jax.random.normal(kz, (N, M, D), dtype=jnp.float32)
    lim1 = 1.0 / math.sqrt(D)
    lim2 = 1.0 / math.sqrt(H)
    w1 = jax.random.uniform(k1, (D, H), jnp.float32, -lim1, lim1)
    b1 = jax.random.uniform(kb, (1, H), jnp.float32, -lim1, lim1)
    w2 = jax.random.uniform(k2, (H, 1), jnp.float32, -lim2, lim2)

    ref = semantic_attention_ref(z, w1, b1, w2)

    # Fused single-call path (small graph -> z read from HBM once).
    out_fused = jax.block_until_ready(semantic_attention(z, w1, b1, w2))
    # Streaming two-pass path: multi-tile grid, ragged last tile, 2 pass-1 partials.
    out_tiled = jax.block_until_ready(semantic_attention(z, w1, b1, w2, tile_n=64))

    assert out_fused.shape == (N, D) and out_tiled.shape == (N, D)
    assert jnp.allclose(out_fused, ref, atol=2e-5, rtol=2e-5), "fused kernel mismatch vs reference"
    assert jnp.allclose(out_tiled, ref, atol=2e-5, rtol=2e-5), "streaming kernel mismatch vs reference"

    # Native-dtype streaming: bf16 z stays bf16 in HBM and is upcast in-kernel.
    z_bf = z.astype(jnp.bfloat16)
    ref_bf = semantic_attention_ref(z_bf.astype(jnp.float32), w1, b1, w2)
    out_bf = jax.block_until_ready(semantic_attention(z_bf, w1, b1, w2, tile_n=64))
    assert out_bf.dtype == jnp.bfloat16
    assert jnp.allclose(out_bf.astype(jnp.float32), ref_bf, atol=2e-2, rtol=2e-2), \
        "bf16-streamed kernel mismatch vs reference"

    print("KERNEL_OK")
</pallas_src>

<mosaic_0001>
module attributes {stable_mosaic.version = 11 : i64} {
  func.func @_fused_kernel(%arg0: i32, %arg1: memref<200x128xf32, #tpu.memory_space<vmem>>, %arg2: memref<128x128xf32, #tpu.memory_space<vmem>>, %arg3: memref<1x128xf32, #tpu.memory_space<vmem>>, %arg4: memref<128x128xf32, #tpu.memory_space<vmem>>, %arg5: memref<128x32xf32, #tpu.memory_space<vmem>>, %arg6: memref<200x32xf32, #tpu.memory_space<vmem>>) attributes {dimension_semantics = [#tpu.dimension_semantics<arbitrary>], iteration_bounds = array<i64: 1>, scalar_prefetch = 0 : i64, scratch_operands = 0 : i64, tpu.core_type = #tpu.core_type<tc>, window_params = [{pipeline_mode = #tpu.pipeline_mode<synchronous>, transform_indices = @transform_0, window_bounds = array<i64: 200, 128>}, {pipeline_mode = #tpu.pipeline_mode<synchronous>, transform_indices = @transform_1, window_bounds = array<i64: 128, 128>}, {pipeline_mode = #tpu.pipeline_mode<synchronous>, transform_indices = @transform_2, window_bounds = array<i64: 1, 128>}, {pipeline_mode = #tpu.pipeline_mode<synchronous>, transform_indices = @transform_3, window_bounds = array<i64: 128, 128>}, {pipeline_mode = #tpu.pipeline_mode<synchronous>, transform_indices = @transform_4, window_bounds = array<i64: 128, 32>}, {pipeline_mode = #tpu.pipeline_mode<synchronous>, transform_indices = @transform_5, window_bounds = array<i64: 200, 32>}]} {
    %c0 = arith.constant 0 : index
    %c0_0 = arith.constant 0 : index
    %0 = vector.load %arg1[%c0, %c0_0] : memref<200x128xf32, #tpu.memory_space<vmem>>, vector<200x128xf32>
    %c0_1 = arith.constant 0 : index
    %c0_2 = arith.constant 0 : index
    %1 = vector.load %arg2[%c0_1, %c0_2] : memref<128x128xf32, #tpu.memory_space<vmem>>, vector<128x128xf32>
    %cst = arith.constant dense<0.000000e+00> : vector<200x128xf32>
    %2 = tpu.matmul %0, %1, %cst {dimension_numbers = #tpu.dot_dimension_numbers<[1], [0], [0], [1], [0, 0, 1, 1], [], []>, precision = #tpu.contract_precision<fp32>} : vector<200x128xf32>, vector<128x128xf32>, vector<200x128xf32> -> vector<200x128xf32>
    %c0_3 = arith.constant 0 : index
    %c0_4 = arith.constant 0 : index
    %3 = vector.load %arg3[%c0_3, %c0_4] : memref<1x128xf32, #tpu.memory_space<vmem>>, vector<1x128xf32>
    %4 = vector.broadcast %3 : vector<1x128xf32> to vector<200x128xf32>
    %5 = arith.addf %2, %4 : vector<200x128xf32>
    %6 = math.tanh %5 : vector<200x128xf32>
    %cst_5 = arith.constant dense<0.000000e+00> : vector<128xf32>
    %7 = vector.multi_reduction <add>, %6, %cst_5 [0] : vector<200x128xf32> to vector<128xf32>
    %8 = vector.shape_cast %7 : vector<128xf32> to vector<1x128xf32>
    %c0_6 = arith.constant 0 : index
    %c0_7 = arith.constant 0 : index
    %9 = vector.load %arg4[%c0_6, %c0_7] : memref<128x128xf32, #tpu.memory_space<vmem>>, vector<128x128xf32>
    %cst_8 = arith.constant dense<0.000000e+00> : vector<1x128xf32>
    %10 = tpu.matmul %8, %9, %cst_8 {dimension_numbers = #tpu.dot_dimension_numbers<[1], [0], [0], [1], [0, 0, 1, 1], [], []>, precision = #tpu.contract_precision<fp32>} : vector<1x128xf32>, vector<128x128xf32>, vector<1x128xf32> -> vector<1x128xf32>
    %cst_9 = arith.constant 2.000000e+02 : f32
    %11 = vector.broadcast %cst_9 : f32 to vector<1x128xf32>
    %12 = arith.divf %10, %11 : vector<1x128xf32>
    %cst_10 = arith.constant dense<0xFF800000> : vector<1xf32>
    %13 = vector.multi_reduction <maximumf>, %12, %cst_10 [1] : vector<1x128xf32> to vector<1xf32>
    %14 = vector.shape_cast %13 : vector<1xf32> to vector<1x1xf32>
    %15 = vector.broadcast %14 : vector<1x1xf32> to vector<1x128xf32>
    %16 = arith.subf %12, %15 : vector<1x128xf32>
    %17 = math.exp %16 : vector<1x128xf32>
    %cst_11 = arith.constant dense<0.000000e+00> : vector<1xf32>
    %18 = vector.multi_reduction <add>, %17, %cst_11 [1] : vector<1x128xf32> to vector<1xf32>
    %19 = vector.shape_cast %18 : vector<1xf32> to vector<1x1xf32>
    %cst_12 = arith.constant 3.200000e+01 : f32
    %20 = vector.broadcast %cst_12 : f32 to vector<1x1xf32>
    %21 = arith.divf %20, %19 : vector<1x1xf32>
    %22 = vector.broadcast %21 : vector<1x1xf32> to vector<1x128xf32>
    %23 = arith.mulf %17, %22 : vector<1x128xf32>
    %24 = vector.broadcast %23 : vector<1x128xf32> to vector<200x128xf32>
    %25 = arith.mulf %0, %24 : vector<200x128xf32>
    %c0_13 = arith.constant 0 : index
    %c0_14 = arith.constant 0 : index
    %26 = vector.load %arg5[%c0_13, %c0_14] : memref<128x32xf32, #tpu.memory_space<vmem>>, vector<128x32xf32>
    %cst_15 = arith.constant dense<0.000000e+00> : vector<200x32xf32>
    %27 = tpu.matmul %25, %26, %cst_15 {dimension_numbers = #tpu.dot_dimension_numbers<[1], [0], [0], [1], [0, 0, 1, 1], [], []>, precision = #tpu.contract_precision<fp32>} : vector<200x128xf32>, vector<128x32xf32>, vector<200x32xf32> -> vector<200x32xf32>
    %c0_16 = arith.constant 0 : index
    %c0_17 = arith.constant 0 : index
    %28 = vector.load %arg6[%c0_16, %c0_17] : memref<200x32xf32, #tpu.memory_space<vmem>>, vector<200x32xf32>
    tpu.vector_store %arg6[%c0_16, %c0_17], %27 {strides = array<i32>} : memref<200x32xf32, #tpu.memory_space<vmem>>, vector<200x32xf32>,
    return
  }
  func.func @transform_0(%arg0: i32) -> (i32, i32) {
    %c0_i32 = arith.constant 0 : i32
    %c0_i32_0 = arith.constant 0 : i32
    %c0_i32_1 = arith.constant 0 : i32
    return %c0_i32, %c0_i32_0 : i32, i32
  }
  func.func @transform_1(%arg0: i32) -> (i32, i32) {
    %c0_i32 = arith.constant 0 : i32
    %c0_i32_0 = arith.constant 0 : i32
    %c0_i32_1 = arith.constant 0 : i32
    return %c0_i32, %c0_i32_0 : i32, i32
  }
  func.func @transform_2(%arg0: i32) -> (i32, i32) {
    %c0_i32 = arith.constant 0 : i32
    %c0_i32_0 = arith.constant 0 : i32
    %c0_i32_1 = arith.constant 0 : i32
    return %c0_i32, %c0_i32_0 : i32, i32
  }
  func.func @transform_3(%arg0: i32) -> (i32, i32) {
    %c0_i32 = arith.constant 0 : i32
    %c0_i32_0 = arith.constant 0 : i32
    %c0_i32_1 = arith.constant 0 : i32
    return %c0_i32, %c0_i32_0 : i32, i32
  }
  func.func @transform_4(%arg0: i32) -> (i32, i32) {
    %c0_i32 = arith.constant 0 : i32
    %c0_i32_0 = arith.constant 0 : i32
    %c0_i32_1 = arith.constant 0 : i32
    return %c0_i32, %c0_i32_0 : i32, i32
  }
  func.func @transform_5(%arg0: i32) -> (i32, i32) {
    %c0_i32 = arith.constant 0 : i32
    %c0_i32_0 = arith.constant 0 : i32
    %c0_i32_1 = arith.constant 0 : i32
    return %c0_i32, %c0_i32_0 : i32, i32
  }
}

</mosaic_0001>

<bundles_post_ra>
// kernel: tpu_custom_call.1
= control target key start
LH: loop header
LB: loop body
LE: loop exit
PB: predicated region body
PF: predicated region fallthrough
CT: control target
= control target key end

     0   :  { %10 = vsyncpa [#allocation3], 0  ;;  %s9446_s0 = inlined_call_operand.hbm [shape: f32[200,128], index: 0, kind: input, shape index: {}]   ;;  %s9447_s1 = inlined_call_operand.vmem [shape: f32[128,128], index: 1, kind: input, shape index: {}]   ;;  %s9448_s2 = inlined_call_operand.vmem [shape: f32[1,128], index: 2, kind: input, shape index: {}]   ;;  %s9449_s3 = inlined_call_operand.hbm [shape: f32[128,128], index: 3, kind: input, shape index: {}]   ;;  %s9450_s4 = inlined_call_operand.vmem [shape: f32[128,32], index: 4, kind: input, shape index: {}]   ;;  %s9451_s5 = inlined_call_operand.vmem [shape: f32[200,32], index: 5, kind: output, shape index: {}]  }
   0x1   :  { %11 = vsyncpa [#allocation5], 0  ;;  %s6464_s18 = smov [#allocation2]  }
   0x2   :  { %s17_s19 = sshll.u32 %s6464_s18, 4  ;;  %s18_s19 = int_to_ptr.vmem [resolvable:$true] %s17_s19 }
   0x3   :  { %s6428_s20 = scalar_lea.vmem %s18_s19, 3200  ;;  %p6433_p1 = scmp.lt.s32.totalorder %s18_s19, %s18_s19 }
   0x4   :  { %p6429_p0 = scmp.ne.s32.totalorder %s18_s19, %s6428_s20  ;;  %p6434_p2 = scmp.lt.s32.totalorder %s6428_s20, %s6428_s20 }
   0x6   :  { %p6435_p3 = por %p6434_p2, %p6433_p1 }
   0x8   :  { %p6436_p4 = pnand %p6435_p3, %p6429_p0 }
   0xa   :  { %6439 = shalt.err (!%p6436_p4)
}
   0xb   :  { %s6465_s21 = smov 128   ;;  %s6466_s22 = smov 8  }
   0xc   :  { %23 = dma.hbm_to_vmem [thread:$0]  %s9446_s0, 3200, %s18_s19, [#allocation3], %s6465_s21, %s6465_s21, %s6466_s22  }
   0xd   :  { %s6467_s25 = smov [#allocation4]  }
   0xe   :  { %s33_s26 = sshll.u32 %s6467_s25, 4  ;;  %s34_s26 = int_to_ptr.vmem [resolvable:$true] %s33_s26 }
   0xf   :  { %s6448_s27 = scalar_lea.vmem %s34_s26, 2048  ;;  %p6453_p6 = scmp.lt.s32.totalorder %s34_s26, %s34_s26 }
  0x10   :  { %p6449_p5 = scmp.ne.s32.totalorder %s34_s26, %s6448_s27  ;;  %p6454_p7 = scmp.lt.s32.totalorder %s6448_s27, %s6448_s27 }
  0x12   :  { %p6455_p8 = por %p6454_p7, %p6453_p6 }
  0x14   :  { %p6456_p9 = pnand %p6455_p8, %p6449_p5 }
  0x16   :  { %6459 = shalt.err (!%p6456_p9)
}
  0x17   :  { %39 = dma.hbm_to_vmem [thread:$0]  %s9449_s3, 2048, %s34_s26, [#allocation5], %s6465_s21, %s6465_s21, %s6466_s22  }
  0x18   :  { %6460 = dma.done.wait [#allocation3], 3200  }
  0x19   :  { %6461 = vsyncadd [#allocation3], 4294964096 }
  0x1a   :  { %6462 = dma.done.wait [#allocation5], 2048  }
  0x1b   :  { %6463 = vsyncadd [#allocation5], 4294965248  ;;  %v6468_v0 = vmov 0.0   ;;  %vm6469_vm0 = vmmov 0   ;;  %v88_v1 = vld [vmem:[%s9447_s1 + $0x78] sm:$0xff]  ;;  %v87_v2 = vld [vmem:[%s9447_s1 + $0x70] sm:$0xff] }
  0x1c   :  { %4841 = vmatprep.subr.mxu0 %v6468_v0  ;;  %4948 = vmatprep.subr.mxu1 %v6468_v0  ;;  %v86_v3 = vld [vmem:[%s9447_s1 + $0x68] sm:$0xff]  ;;  %v6521_v4 = vand.u32 4294901760, %v88_v1  ;;  %v6523_v5 = vand.u32 4294901760, %v87_v2  ;;  %v85_v7 = vld [vmem:[%s9447_s1 + $0x60] sm:$0xff]  ;;  %v84_v8 = vld [vmem:[%s9447_s1 + $0x58] sm:$0xff]  ;;  %vm2483_vm1 = vcmask 1040384  }
  0x1d   :  { %4873 = vmatprep.mubr.msk.f32.mxu0 %vm6469_vm0, %v6468_v0  ;;  %4980 = vmatprep.mubr.msk.f32.mxu1 %vm6469_vm0, %v6468_v0  ;;  %v6525_v6 = vand.u32 4294901760, %v86_v3  ;;  %v83_v9 = vld [vmem:[%s9447_s1 + $0x50] sm:$0xff]  ;;  %v6536_v10 = vand.u32 4294901760, %v85_v7  ;;  %v6538_v11 = vand.u32 4294901760, %v84_v8  ;;  %v82_v13 = vld [vmem:[%s9447_s1 + $0x48] sm:$0xff]  ;;  %v81_v14 = vld [vmem:[%s9447_s1 + $0x40] sm:$0xff] }
  0x1e   :  { %v6540_v12 = vand.u32 4294901760, %v83_v9  ;;  %4842 = vmatpush3.msra.mxu0 %v6521_v4  ;;  %v6550_v15 = vsub.f32 %v88_v1, %v6521_v4  ;;  %v6553_v16 = vsub.f32 %v87_v2, %v6523_v5  ;;  %v6555_v17 = vand.u32 4294901760, %v82_v13  ;;  %v80_v19 = vld [vmem:[%s9447_s1 + $0x38] sm:$0xff]  ;;  %v79_v29 = vld [vmem:[%s9447_s1 + $0x30] sm:$0xff]  ;;  %v78_v36 = vld [vmem:[%s9447_s1 + $0x28] sm:$0xff] }
  0x1f   :  { %v6558_v18 = vsub.f32 %v86_v3, %v6525_v6  ;;  %4843 = vmatprep.subr.mxu0 %v6468_v0  ;;  %v6565_v20 = vsub.f32 %v85_v7, %v6536_v10  ;;  %v6568_v21 = vsub.f32 %v84_v8, %v6538_v11  ;;  %v6574_v25 = vand.u32 4294901760, %v81_v14  ;;  %v77_v42 = vld [vmem:[%s9447_s1 + $0x20] sm:$0xff]  ;;  %v76_v50 = vld [vmem:[%s9447_s1 + $0x18] sm:$0xff]  ;;  %v75_v54 = vld [vmem:[%s9447_s1 + $0x10] sm:$0xff] }
  0x20   :  { %4844 = vmatpush3.msra.mxu0 %v6523_v5  ;;  %v9475_v22 = vand.u32 4294901760, %v6550_v15  ;;  %v9474_v23 = vand.u32 4294901760, %v6553_v16  ;;  %v6578_v27 = vand.u32 4294901760, %v80_v19  ;;  %v6585_v30 = vsub.f32 %v83_v9, %v6540_v12  ;;  %v48_v48 = vld [vmem:[#allocation2] sm:$0xff]  ;;  %v74_v61 = vld [vmem:[%s9447_s1 + $0x8] sm:$0xff] }
  0x21   :  { %v9470_v24 = vand.u32 4294901760, %v6558_v18  ;;  %4845 = vmatprep.subr.mxu0 %v6468_v0  ;;  %v9463_v26 = vand.u32 4294901760, %v6565_v20  ;;  %v9461_v28 = vand.u32 4294901760, %v6568_v21  ;;  %v6598_v34 = vsub.f32 %v82_v13, %v6555_v17  ;;  %v49_v63 = vld [vmem:[#allocation2 + $0x8] sm:$0xff]  ;;  %v73_v8 = vld [vmem:[%s9447_s1] sm:$0xff] }
  0x22   :  { %4846 = vmatpush3.msra.mxu0 %v6525_v6  ;;  %v431_v31 = vsub.f32 %v6550_v15, %v9475_v22  ;;  %v438_v32 = vsub.f32 %v6553_v16, %v9474_v23  ;;  %v9460_v35 = vand.u32 4294901760, %v6585_v30  ;;  %v6609_v40 = vand.u32 4294901760, %v79_v29 }
  0x23   :  { %v445_v33 = vsub.f32 %v6558_v18, %v9470_v24  ;;  %4847 = vmatprep.subr.mxu0 %v6468_v0  ;;  %v452_v39 = vsub.f32 %v6565_v20, %v9463_v26  ;;  %v459_v41 = vsub.f32 %v6568_v21, %v9461_v28  ;;  %v6619_v43 = vsub.f32 %v81_v14, %v6574_v25  ;;  %v58_v24 = vld [vmem:[#allocation2 + $0x50] sm:$0xff] }
  0x24   :  { %4848 = vmatpush3.msra.mxu0 %v6536_v10  ;;  %v432_v37 = vand.u32 4294901760, %v431_v31  ;;  %v439_v38 = vand.u32 4294901760, %v438_v32  ;;  %v6622_v45 = vand.u32 4294901760, %v78_v36  ;;  %v9459_v46 = vand.u32 4294901760, %v6598_v34 }
  0x25   :  { %4849 = vmatprep.subr.mxu0 %v6468_v0  ;;  %v446_v44 = vand.u32 4294901760, %v445_v33  ;;  %v6626_v47 = vsub.f32 %v80_v19, %v6578_v27  ;;  %v466_v49 = vsub.f32 %v6585_v30, %v9460_v35  ;;  %v453_v51 = vand.u32 4294901760, %v452_v39 }
  0x26   :  { %4850 = vmatpush3.msra.mxu0 %v6538_v11  ;;  %4949 = vmatpush3.msra.mxu1 %v432_v37  ;;  %v6637_v52 = vand.u32 4294901760, %v77_v42  ;;  %v9457_v53 = vand.u32 4294901760, %v6619_v43  ;;  %v6644_v55 = vsub.f32 %v79_v29, %v6609_v40  ;;  %v460_v56 = vand.u32 4294901760, %v459_v41 }
  0x27   :  { %4851 = vmatprep.subr.mxu0 %v6468_v0  ;;  %4950 = vmatprep.subr.mxu1 %v6468_v0  ;;  %v6648_v57 = vand.u32 4294901760, %v48_v48  ;;  %v473_v58 = vsub.f32 %v6598_v34, %v9459_v46  ;;  %v6654_v59 = vand.u32 4294901760, %v76_v50  ;;  %v9455_v60 = vand.u32 4294901760, %v6626_v47 }
  0x28   :  { %4852 = vmatpush3.msra.mxu0 %v6540_v12  ;;  %4951 = vmatpush3.msra.mxu1 %v439_v38  ;;  %v6661_v62 = vsub.f32 %v78_v36, %v6622_v45  ;;  %v467_v1 = vand.u32 4294901760, %v466_v49  ;;  %v6665_v2 = vand.u32 4294901760, %v75_v54  ;;  %v480_v3 = vsub.f32 %v6619_v43, %v9457_v53  ;;  %v50_v36 = vld [vmem:[#allocation2 + $0x10] sm:$0xff] }
  0x29   :  { %4853 = vmatprep.subr.mxu0 %v6468_v0  ;;  %4952 = vmatprep.subr.mxu1 %v6468_v0  ;;  %9672 = vst [vmem:[#allocation8_spill] sm:$0xff] %v6648_v57  ;;  %v9454_v7 = vand.u32 4294901760, %v6644_v55  ;;  %v6676_v9 = vsub.f32 %v77_v42, %v6637_v52  ;;  %v6679_v13 = vsub.f32 %v48_v48, %v6648_v57  ;;  %v6683_v14 = vand.u32 4294901760, %v74_v61 }
  0x2a   :  { %4854 = vmatpush3.msra.mxu0 %v6555_v17  ;;  %4953 = vmatpush3.msra.mxu1 %v446_v44  ;;  %v6685_v19 = vand.u32 4294901760, %v49_v63  ;;  %v474_v29 = vand.u32 4294901760, %v473_v58  ;;  %v487_v31 = vsub.f32 %v6626_v47, %v9455_v60  ;;  %v9453_v32 = vand.u32 4294901760, %v6661_v62  ;;  %v51_v58 = vld [vmem:[#allocation2 + $0x18] sm:$0xff] }
  0x2b   :  { %4855 = vmatprep.subr.mxu0 %v6468_v0  ;;  %4954 = vmatprep.subr.mxu1 %v6468_v0  ;;  %v6693_v33 = vsub.f32 %v76_v50, %v6654_v59  ;;  %v6697_v37 = vand.u32 4294901760, %v73_v8  ;;  %v6700_v38 = vsub.f32 %v75_v54, %v6665_v2  ;;  %v481_v39 = vand.u32 4294901760, %v480_v3 }
  0x2c   :  { %4856 = vmatpush3.msra.mxu0 %v6574_v25  ;;  %4955 = vmatpush3.msra.mxu1 %v453_v51  ;;  %9673 = vst [vmem:[#allocation9_spill] sm:$0xff] %v6685_v19  ;;  %v494_v41 = vsub.f32 %v6644_v55, %v9454_v7  ;;  %v9452_v42 = vand.u32 4294901760, %v6676_v9  ;;  %v9472_v44 = vand.u32 4294901760, %v6679_v13  ;;  %v6711_v48 = vsub.f32 %v49_v63, %v6685_v19  ;;  %v52_v7 = vld [vmem:[#allocation2 + $0x20] sm:$0xff] }
  0x2d   :  { %4857 = vmatprep.subr.mxu0 %v6468_v0  ;;  %4956 = vmatprep.subr.mxu1 %v6468_v0  ;;  %v6713_v49 = vand.u32 4294901760, %v50_v36  ;;  %v488_v50 = vand.u32 4294901760, %v487_v31  ;;  %v501_v51 = vsub.f32 %v6661_v62, %v9453_v32  ;;  %v9456_v54 = vand.u32 4294901760, %v6693_v33 }
  0x2e   :  { %4858 = vmatpush3.msra.mxu0 %v6578_v27  ;;  %4957 = vmatpush3.msra.mxu1 %v460_v56  ;;  %v6721_v56 = vsub.f32 %v74_v61, %v6683_v14  ;;  %v9458_v63 = vand.u32 4294901760, %v6700_v38  ;;  %v508_v3 = vsub.f32 %v6676_v9, %v9452_v42  ;;  %v180_v61 = vsub.f32 %v6679_v13, %v9472_v44 }
  0x2f   :  { %4859 = vmatprep.subr.mxu0 %v6468_v0  ;;  %4958 = vmatprep.subr.mxu1 %v6468_v0  ;;  %9674 = vst [vmem:[#allocation10_spill] sm:$0xff] %v6713_v49  ;;  %v9469_v31 = vand.u32 4294901760, %v6711_v48  ;;  %v502_v42 = vand.u32 4294901760, %v501_v51  ;;  %v6869_v44 = vand.u32 4294901760, %v58_v24  ;;  %vm4214_vm2 = vcmask 261120  }
  0x30   :  { %4860 = vmatpush3.msra.mxu0 %v6609_v40  ;;  %4959 = vmatpush3.msra.mxu1 %v467_v1  ;;  %v495_v1 = vand.u32 4294901760, %v494_v41  ;;  %v6742_v41 = vand.u32 4294901760, %v51_v58  ;;  %v9462_v32 = vand.u32 4294901760, %v6721_v56  ;;  %v181_v60 = vand.u32 4294901760, %v180_v61  ;;  %v53_v61 = vld [vmem:[#allocation2 + $0x28] sm:$0xff] }
  0x31   :  { %4861 = vmatprep.subr.mxu0 %v6468_v0  ;;  %4960 = vmatprep.subr.mxu1 %v6468_v0  ;;  %v6777_v28 = vand.u32 4294901760, %v53_v61  ;;  %9682 = vst [vmem:[#allocation18_spill] sm:$0xff] %v6869_v44  ;;  %v6885_v23 = vsub.f32 %v58_v24, %v6869_v44 }
  0x32   :  { %4862 = vmatpush3.msra.mxu0 %v6622_v45  ;;  %4961 = vmatpush3.msra.mxu1 %v474_v29  ;;  %v6734_v29 = vsub.f32 %v73_v8, %v6697_v37  ;;  %9675 = vst [vmem:[#allocation11_spill] sm:$0xff] %v6742_v41  ;;  %v515_v8 = vsub.f32 %v6693_v33, %v9456_v54 }
  0x33   :  { %4863 = vmatprep.subr.mxu0 %v6468_v0  ;;  %4962 = vmatprep.subr.mxu1 %v6468_v0  ;;  %v190_v54 = vsub.f32 %v6711_v48, %v9469_v31  ;;  %v529_v46 = vsub.f32 %v6721_v56, %v9462_v32  ;;  %9677 = vst [vmem:[#allocation13_spill] sm:$0xff] %v6777_v28 }
  0x34   :  { %4864 = vmatpush3.msra.mxu0 %v6637_v52  ;;  %4963 = vmatpush3.msra.mxu1 %v481_v39  ;;  %v6740_v39 = vsub.f32 %v50_v36, %v6713_v49  ;;  %v509_v36 = vand.u32 4294901760, %v508_v3  ;;  %v9464_v51 = vand.u32 4294901760, %v6734_v29  ;;  %v6765_v3 = vand.u32 4294901760, %v52_v7 }
  0x35   :  { %4865 = vmatprep.subr.mxu0 %v6468_v0  ;;  %4964 = vmatprep.subr.mxu1 %v6468_v0 }
  0x36   :  { %4866 = vmatpush3.msra.mxu0 %v6654_v59  ;;  %4965 = vmatpush3.msra.mxu1 %v488_v50  ;;  %v522_v50 = vsub.f32 %v6700_v38, %v9458_v63  ;;  %v9467_v53 = vand.u32 4294901760, %v6740_v39  ;;  %9676 = vst [vmem:[#allocation12_spill] sm:$0xff] %v6765_v3  ;;  %v516_v63 = vand.u32 4294901760, %v515_v8  ;;  %v536_v35 = vsub.f32 %v6734_v29, %v9464_v51 }
  0x37   :  { %4867 = vmatprep.subr.mxu0 %v6468_v0  ;;  %4966 = vmatprep.subr.mxu1 %v6468_v0  ;;  %v6785_v26 = vsub.f32 %v52_v7, %v6765_v3  ;;  %v6800_v51 = vsub.f32 %v53_v61, %v6777_v28 }
  0x38   :  { %4868 = vmatpush3.msra.mxu0 %v6665_v2  ;;  %4967 = vmatpush3.msra.mxu1 %v495_v1  ;;  %v6763_v1 = vsub.f32 %v51_v58, %v6742_v41  ;;  %v523_v58 = vand.u32 4294901760, %v522_v50  ;;  %v200_v8 = vsub.f32 %v6740_v39, %v9467_v53  ;;  %v530_v50 = vand.u32 4294901760, %v529_v46  ;;  %v57_v53 = vld [vmem:[#allocation2 + $0x48] sm:$0xff] }
  0x39   :  { %4869 = vmatprep.subr.mxu0 %v6468_v0  ;;  %4968 = vmatprep.subr.mxu1 %v6468_v0  ;;  %v9465_v46 = vand.u32 4294901760, %v6785_v26 }
  0x3a   :  { %4870 = vmatpush3.msra.mxu0 %v6683_v14  ;;  %4969 = vmatpush3.msra.mxu1 %v502_v42  ;;  %v191_v42 = vand.u32 4294901760, %v190_v54  ;;  %v9466_v32 = vand.u32 4294901760, %v6763_v1  ;;  %v201_v7 = vand.u32 4294901760, %v200_v8  ;;  %v9468_v8 = vand.u32 4294901760, %v6800_v51 }
  0x3b   :  { %4871 = vmatprep.subr.mxu0 %v6468_v0  ;;  %4970 = vmatprep.subr.mxu1 %v6468_v0 }
  0x3c   :  { %4872 = vmatpush3.msra.mxu0 %v6697_v37  ;;  %4971 = vmatpush3.msra.mxu1 %v509_v36  ;;  %v54_v36 = vld [vmem:[#allocation2 + $0x30] sm:$0xff] }
  0x3d   :  { %4874 = vmatmul.mubr.f32.vlgmr.msra.gmra.mxu0 %v181_v60  ;;  %4972 = vmatprep.subr.mxu1 %v6468_v0  ;;  %v537_v60 = vand.u32 4294901760, %v536_v35  ;;  %v6792_v54 = vand.u32 4294901760, %v54_v36  ;;  %v55_v35 = vld [vmem:[#allocation2 + $0x38] sm:$0xff] }
  0x3e   :  { %4973 = vmatpush3.msra.mxu1 %v516_v63  ;;  %4876 = vmatprep.mubr.msk.f32.mxu0 %vm6469_vm0, %v6468_v0  ;;  %v210_v63 = vsub.f32 %v6763_v1, %v9466_v32 }
  0x3f   :  { %4974 = vmatprep.subr.mxu1 %v6468_v0  ;;  %5055 = vmatprep.subr.mxu0 %v6468_v0  ;;  %9678 = vst [vmem:[#allocation14_spill] sm:$0xff] %v6792_v54 }
  0x40   :  { %4975 = vmatpush3.msra.mxu1 %v523_v58  ;;  %5056 = vmatpush3.msra.mxu0 %v6550_v15  ;;  %v6808_v58 = vsub.f32 %v54_v36, %v6792_v54  ;;  %v211_v61 = vand.u32 4294901760, %v210_v63  ;;  %v230_v63 = vsub.f32 %v6800_v51, %v9468_v8 }
  0x41   :  { %4877 = vmatmul.mubr.f32.gmra.mxu0 %v191_v42  ;;  %4976 = vmatprep.subr.mxu1 %v6468_v0  ;;  %v220_v42 = vsub.f32 %v6785_v26, %v9465_v46 }
  0x42   :  { %4977 = vmatpush3.msra.mxu1 %v530_v50  ;;  %4879 = vmatprep.mubr.msk.f32.mxu0 %vm6469_vm0, %v6468_v0  ;;  %v6815_v50 = vand.u32 4294901760, %v55_v35  ;;  %v9471_v36 = vand.u32 4294901760, %v6808_v58 }
  0x43   :  { %4978 = vmatprep.subr.mxu1 %v6468_v0  ;;  %5057 = vmatprep.subr.mxu0 %v6468_v0 }
  0x44   :  { %4979 = vmatpush3.msra.mxu1 %v537_v60  ;;  %5058 = vmatpush3.msra.mxu0 %v6553_v16  ;;  %9679 = vst [vmem:[#allocation15_spill] sm:$0xff] %v6815_v50  ;;  %v56_v60 = vld [vmem:[#allocation2 + $0x40] sm:$0xff]  ;;  %v6831_v46 = vsub.f32 %v55_v35, %v6815_v50  ;;  %v231_v35 = vand.u32 4294901760, %v230_v63 }
  0x45   :  { %4880 = vmatmul.mubr.f32.gmra.mxu0 %v201_v7  ;;  %4981 = vmatmul.mubr.f32.vlgmr.msra.gmra.mxu1 %v6648_v57  ;;  %v221_v7 = vand.u32 4294901760, %v220_v42  ;;  %v6833_v32 = vand.u32 4294901760, %v56_v60  ;;  %v240_v42 = vsub.f32 %v6808_v58, %v9471_v36  ;;  %v63_v57 = vld [vmem:[#allocation2 + $0x78] sm:$0xff] }
  0x46   :  { %5162 = vmatprep.subr.mxu1 %v6468_v0  ;;  %4882 = vmatprep.mubr.msk.f32.mxu0 %vm6469_vm0, %v6468_v0  ;;  %v9473_v8 = vand.u32 4294901760, %v6831_v46 }
  0x47   :  { %5163 = vmatpush3.msra.mxu1 %v6521_v4  ;;  %4983 = vmatprep.mubr.msk.f32.mxu1 %vm6469_vm0, %v6468_v0  ;;  %9680 = vst [vmem:[#allocation16_spill] sm:$0xff] %v6833_v32  ;;  %v6851_v31 = vsub.f32 %v56_v60, %v6833_v32  ;;  %v241_v60 = vand.u32 4294901760, %v240_v42 }
  0x48   :  { %5164 = vmatprep.subr.mxu1 %v6468_v0  ;;  %5059 = vmatprep.subr.mxu0 %v6468_v0  ;;  %v250_v63 = vsub.f32 %v6831_v46, %v9473_v8 }
  0x49   :  { %4883 = vmatmul.mubr.f32.gmra.mxu0 %v211_v61  ;;  %4984 = vmatmul.mubr.f32.gmra.mxu1 %v6685_v19  ;;  %v6843_v61 = vand.u32 4294901760, %v57_v53  ;;  %v9478_v36 = vand.u32 4294901760, %v6851_v31  ;;  %v62_v19 = vld [vmem:[#allocation2 + $0x70] sm:$0xff] }
  0x4a   :  { %4885 = vmatprep.mubr.msk.f32.mxu0 %vm6469_vm0, %v6468_v0  ;;  %4986 = vmatprep.mubr.msk.f32.mxu1 %vm6469_vm0, %v6468_v0  ;;  %v251_v42 = vand.u32 4294901760, %v250_v63 }
  0x4b   :  { %5165 = vmatpush3.msra.mxu1 %v6523_v5  ;;  %5060 = vmatpush3.msra.mxu0 %v6558_v18  ;;  %9681 = vst [vmem:[#allocation17_spill] sm:$0xff] %v6843_v61  ;;  %v260_v8 = vsub.f32 %v6851_v31, %v9478_v36  ;;  %v9488_v36 = vand.u32 4294901760, %v6885_v23 }
  0x4c   :  { %5166 = vmatprep.subr.mxu1 %v6468_v0  ;;  %5061 = vmatprep.subr.mxu0 %v6468_v0 }
  0x4d   :  { %4886 = vmatmul.mubr.f32.gmra.mxu0 %v221_v7  ;;  %4987 = vmatmul.mubr.f32.gmra.mxu1 %v6713_v49  ;;  %v6862_v7 = vsub.f32 %v57_v53, %v6843_v61  ;;  %v59_v53 = vld [vmem:[#allocation2 + $0x58] sm:$0xff]  ;;  %v261_v24 = vand.u32 4294901760, %v260_v8  ;;  %v61_v49 = vld [vmem:[#allocation2 + $0x68] sm:$0xff] }
  0x4e   :  { %4888 = vmatprep.mubr.msk.f32.mxu0 %vm6469_vm0, %v6468_v0  ;;  %4989 = vmatprep.mubr.msk.f32.mxu1 %vm6469_vm0, %v6468_v0  ;;  %v6887_v22 = vand.u32 4294901760, %v59_v53  ;;  %v6915_v8 = vand.u32 4294901760, %v61_v49 }
  0x4f   :  { %5167 = vmatpush3.msra.mxu1 %v6525_v6  ;;  %5062 = vmatpush3.msra.mxu0 %v6565_v20 }
  0x50   :  { %5168 = vmatprep.subr.mxu1 %v6468_v0  ;;  %5063 = vmatprep.subr.mxu0 %v6468_v0  ;;  %9683 = vst [vmem:[#allocation19_spill] sm:$0xff] %v6887_v22  ;;  %9686 = vst [vmem:[#allocation22_spill] sm:$0xff] %v6915_v8 }
  0x51   :  { %4889 = vmatmul.mubr.f32.gmra.mxu0 %v231_v35  ;;  %4990 = vmatmul.mubr.f32.gmra.mxu1 %v6742_v41  ;;  %v9483_v35 = vand.u32 4294901760, %v6862_v7  ;;  %v60_v41 = vld [vmem:[#allocation2 + $0x60] sm:$0xff] }
  0x52   :  { %4891 = vmatprep.mubr.msk.f32.mxu0 %vm6469_vm0, %v6468_v0  ;;  %4992 = vmatprep.mubr.msk.f32.mxu1 %vm6469_vm0, %v6468_v0 }
  0x53   :  { %5169 = vmatpush3.msra.mxu1 %v6536_v10  ;;  %5064 = vmatpush3.msra.mxu0 %v6568_v21  ;;  %v270_v63 = vsub.f32 %v6862_v7, %v9483_v35 }
  0x54   :  { %5170 = vmatprep.subr.mxu1 %v6468_v0  ;;  %5065 = vmatprep.subr.mxu0 %v6468_v0 }
  0x55   :  { %4892 = vmatmul.mubr.f32.gmra.mxu0 %v241_v60  ;;  %4993 = vmatmul.mubr.f32.gmra.mxu1 %v6765_v3  ;;  %v6897_v60 = vand.u32 4294901760, %v60_v41  ;;  %v6905_v3 = vsub.f32 %v59_v53, %v6887_v22  ;;  %v271_v53 = vand.u32 4294901760, %v270_v63 }
  0x56   :  { %4894 = vmatprep.mubr.msk.f32.mxu0 %vm6469_vm0, %v6468_v0  ;;  %4995 = vmatprep.mubr.msk.f32.mxu1 %vm6469_vm0, %v6468_v0 }
  0x57   :  { %5171 = vmatpush3.msra.mxu1 %v6538_v11  ;;  %5066 = vmatpush3.msra.mxu0 %v6585_v30  ;;  %9684 = vst [vmem:[#allocation20_spill] sm:$0xff] %v6897_v60  ;;  %9685 = vst [vmem:[#allocation21_spill] sm:$0xff] %v6905_v3  ;;  %v9493_v35 = vand.u32 4294901760, %v6905_v3 }
  0x58   :  { %5172 = vmatprep.subr.mxu1 %v6468_v0  ;;  %5067 = vmatprep.subr.mxu0 %v6468_v0 }
  0x59   :  { %4895 = vmatmul.mubr.f32.gmra.mxu0 %v251_v42  ;;  %4996 = vmatmul.mubr.f32.gmra.mxu1 %v6777_v28  ;;  %v280_v42 = vsub.f32 %v6885_v23, %v9488_v36  ;;  %v6923_v28 = vsub.f32 %v60_v41, %v6897_v60  ;;  %v290_v63 = vsub.f32 %v6905_v3, %v9493_v35  ;;  %v65_v3 = vld [vmem:[#allocation2 + $0x88] sm:$0xff] }
  0x5a   :  { %4897 = vmatprep.mubr.msk.f32.mxu0 %vm6469_vm0, %v6468_v0  ;;  %4998 = vmatprep.mubr.msk.f32.mxu1 %vm6469_vm0, %v6468_v0 }
  0x5b   :  { %5173 = vmatpush3.msra.mxu1 %v6540_v12  ;;  %5068 = vmatpush3.msra.mxu0 %v6598_v34  ;;  %9687 = vst [vmem:[#allocation23_spill] sm:$0xff] %v6923_v28  ;;  %v281_v41 = vand.u32 4294901760, %v280_v42  ;;  %v9496_v36 = vand.u32 4294901760, %v6923_v28 }
  0x5c   :  { %5174 = vmatprep.subr.mxu1 %v6468_v0  ;;  %5069 = vmatprep.subr.mxu0 %v6468_v0 }
  0x5d   :  { %4898 = vmatmul.mubr.f32.gmra.mxu0 %v261_v24  ;;  %4999 = vmatmul.mubr.f32.gmra.mxu1 %v6792_v54  ;;  %v6932_v24 = vand.u32 4294901760, %v62_v19  ;;  %v6941_v54 = vsub.f32 %v61_v49, %v6915_v8  ;;  %v291_v49 = vand.u32 4294901760, %v290_v63  ;;  %v300_v42 = vsub.f32 %v6923_v28, %v9496_v36 }
  0x5e   :  { %4900 = vmatprep.mubr.msk.f32.mxu0 %vm6469_vm0, %v6468_v0  ;;  %5001 = vmatprep.mubr.msk.f32.mxu1 %vm6469_vm0, %v6468_v0 }
  0x5f   :  { %5175 = vmatpush3.msra.mxu1 %v6555_v17  ;;  %5070 = vmatpush3.msra.mxu0 %v6619_v43  ;;  %9688 = vst [vmem:[#allocation24_spill] sm:$0xff] %v6932_v24  ;;  %9689 = vst [vmem:[#allocation25_spill] sm:$0xff] %v6941_v54  ;;  %v9503_v35 = vand.u32 4294901760, %v6941_v54  ;;  %v301_v63 = vand.u32 4294901760, %v300_v42 }
  0x60   :  { %5176 = vmatprep.subr.mxu1 %v6468_v0  ;;  %5071 = vmatprep.subr.mxu0 %v6468_v0 }
  0x61   :  { %4901 = vmatmul.mubr.f32.gmra.mxu0 %v271_v53  ;;  %5002 = vmatmul.mubr.f32.gmra.mxu1 %v6815_v50  ;;  %v6950_v53 = vsub.f32 %v62_v19, %v6932_v24  ;;  %v6959_v50 = vand.u32 4294901760, %v63_v57  ;;  %v64_v19 = vld [vmem:[#allocation2 + $0x80] sm:$0xff]  ;;  %v310_v36 = vsub.f32 %v6941_v54, %v9503_v35  ;;  %v66_v54 = vld [vmem:[#allocation2 + $0x90] sm:$0xff] }
  0x62   :  { %4903 = vmatprep.mubr.msk.f32.mxu0 %vm6469_vm0, %v6468_v0  ;;  %5004 = vmatprep.mubr.msk.f32.mxu1 %vm6469_vm0, %v6468_v0  ;;  %v6977_v28 = vand.u32 4294901760, %v64_v19 }
  0x63   :  { %5177 = vmatpush3.msra.mxu1 %v6574_v25  ;;  %5072 = vmatpush3.msra.mxu0 %v6626_v47  ;;  %9690 = vst [vmem:[#allocation26_spill] sm:$0xff] %v6950_v53  ;;  %9691 = vst [vmem:[#allocation27_spill] sm:$0xff] %v6959_v50 }
  0x64   :  { %5178 = vmatprep.subr.mxu1 %v6468_v0  ;;  %5073 = vmatprep.subr.mxu0 %v6468_v0  ;;  %9693 = vst [vmem:[#allocation29_spill] sm:$0xff] %v6977_v28 }
  0x65   :  { %4904 = vmatmul.mubr.f32.gmra.mxu0 %v281_v41  ;;  %5005 = vmatmul.mubr.f32.gmra.mxu1 %v6833_v32  ;;  %v9508_v41 = vand.u32 4294901760, %v6950_v53  ;;  %v6975_v32 = vsub.f32 %v63_v57, %v6959_v50  ;;  %v311_v57 = vand.u32 4294901760, %v310_v36 }
  0x66   :  { %4906 = vmatprep.mubr.msk.f32.mxu0 %vm6469_vm0, %v6468_v0  ;;  %5007 = vmatprep.mubr.msk.f32.mxu1 %vm6469_vm0, %v6468_v0 }
  0x67   :  { %5179 = vmatpush3.msra.mxu1 %v6578_v27  ;;  %5074 = vmatpush3.msra.mxu0 %v6644_v55  ;;  %9692 = vst [vmem:[#allocation28_spill] sm:$0xff] %v6975_v32  ;;  %v320_v42 = vsub.f32 %v6950_v53, %v9508_v41  ;;  %v9511_v35 = vand.u32 4294901760, %v6975_v32  ;;  %v68_v53 = vld [vmem:[#allocation2 + $0xa0] sm:$0xff] }
  0x68   :  { %5180 = vmatprep.subr.mxu1 %v6468_v0  ;;  %5075 = vmatprep.subr.mxu0 %v6468_v0 }
  0x69   :  { %4907 = vmatmul.mubr.f32.gmra.mxu0 %v291_v49  ;;  %5008 = vmatmul.mubr.f32.gmra.mxu1 %v6843_v61  ;;  %v6985_v49 = vand.u32 4294901760, %v65_v3  ;;  %v6995_v61 = vsub.f32 %v64_v19, %v6977_v28  ;;  %v321_v19 = vand.u32 4294901760, %v320_v42 }
  0x6a   :  { %4909 = vmatprep.mubr.msk.f32.mxu0 %vm6469_vm0, %v6468_v0  ;;  %5010 = vmatprep.mubr.msk.f32.mxu1 %vm6469_vm0, %v6468_v0 }
  0x6b   :  { %5181 = vmatpush3.msra.mxu1 %v6609_v40  ;;  %5076 = vmatpush3.msra.mxu0 %v6661_v62  ;;  %9694 = vst [vmem:[#allocation30_spill] sm:$0xff] %v6995_v61  ;;  %v7004_v36 = vsub.f32 %v65_v3, %v6985_v49  ;;  %v9518_v41 = vand.u32 4294901760, %v6995_v61  ;;  %v67_v3 = vld [vmem:[#allocation2 + $0x98] sm:$0xff] }
  0x6c   :  { %5182 = vmatprep.subr.mxu1 %v6468_v0  ;;  %5077 = vmatprep.subr.mxu0 %v6468_v0 }
  0x6d   :  { %4910 = vmatmul.mubr.f32.gmra.mxu0 %v301_v63  ;;  %5011 = vmatmul.mubr.f32.gmra.mxu1 %v6869_v44  ;;  %9695 = vst [vmem:[#allocation31_spill] sm:$0xff] %v7004_v36  ;;  %v330_v63 = vsub.f32 %v6975_v32, %v9511_v35  ;;  %v7013_v44 = vand.u32 4294901760, %v66_v54  ;;  %v340_v35 = vsub.f32 %v6995_v61, %v9518_v41  ;;  %v7031_v32 = vand.u32 4294901760, %v67_v3  ;;  %v69_v61 = vld [vmem:[#allocation2 + $0xa8] sm:$0xff] }
  0x6e   :  { %4912 = vmatprep.mubr.msk.f32.mxu0 %vm6469_vm0, %v6468_v0  ;;  %5013 = vmatprep.mubr.msk.f32.mxu1 %vm6469_vm0, %v6468_v0 }
  0x6f   :  { %5183 = vmatpush3.msra.mxu1 %v6622_v45  ;;  %5078 = vmatpush3.msra.mxu0 %v6676_v9  ;;  %v331_v42 = vand.u32 4294901760, %v330_v63 }
  0x70   :  { %5184 = vmatprep.subr.mxu1 %v6468_v0  ;;  %5079 = vmatprep.subr.mxu0 %v6468_v0 }
  0x71   :  { %4913 = vmatmul.mubr.f32.gmra.mxu0 %v311_v57  ;;  %5014 = vmatmul.mubr.f32.gmra.mxu1 %v6887_v22  ;;  %v9523_v57 = vand.u32 4294901760, %v7004_v36  ;;  %v7029_v22 = vsub.f32 %v66_v54, %v7013_v44  ;;  %v341_v54 = vand.u32 4294901760, %v340_v35  ;;  %v7057_v35 = vand.u32 4294901760, %v69_v61 }
  0x72   :  { %4915 = vmatprep.mubr.msk.f32.mxu0 %vm6469_vm0, %v6468_v0  ;;  %5016 = vmatprep.mubr.msk.f32.mxu1 %vm6469_vm0, %v6468_v0 }
  0x73   :  { %5185 = vmatpush3.msra.mxu1 %v6637_v52  ;;  %5080 = vmatpush3.msra.mxu0 %v6693_v33  ;;  %9696 = vst [vmem:[#allocation32_spill] sm:$0xff] %v7029_v22  ;;  %v350_v63 = vsub.f32 %v7004_v36, %v9523_v57  ;;  %v9528_v41 = vand.u32 4294901760, %v7029_v22  ;;  %v70_v36 = vld [vmem:[#allocation2 + $0xb0] sm:$0xff] }
  0x74   :  { %5186 = vmatprep.subr.mxu1 %v6468_v0  ;;  %5081 = vmatprep.subr.mxu0 %v6468_v0 }
  0x75   :  { %4916 = vmatmul.mubr.f32.gmra.mxu0 %v321_v19  ;;  %5017 = vmatmul.mubr.f32.gmra.mxu1 %v6897_v60  ;;  %v7039_v19 = vand.u32 4294901760, %v68_v53  ;;  %v7049_v60 = vsub.f32 %v67_v3, %v7031_v32  ;;  %v351_v3 = vand.u32 4294901760, %v350_v63 }
  0x76   :  { %4918 = vmatprep.mubr.msk.f32.mxu0 %vm6469_vm0, %v6468_v0  ;;  %5019 = vmatprep.mubr.msk.f32.mxu1 %vm6469_vm0, %v6468_v0 }
  0x77   :  { %5187 = vmatpush3.msra.mxu1 %v6654_v59  ;;  %5082 = vmatpush3.msra.mxu0 %v6700_v38  ;;  %v9533_v57 = vand.u32 4294901760, %v7049_v60 }
  0x78   :  { %5188 = vmatprep.subr.mxu1 %v6468_v0  ;;  %5083 = vmatprep.subr.mxu0 %v6468_v0 }
  0x79   :  { %4919 = vmatmul.mubr.f32.gmra.mxu0 %v331_v42  ;;  %5020 = vmatmul.mubr.f32.gmra.mxu1 %v6915_v8  ;;  %v360_v42 = vsub.f32 %v7029_v22, %v9528_v41  ;;  %v7067_v8 = vsub.f32 %v68_v53, %v7039_v19  ;;  %v370_v63 = vsub.f32 %v7049_v60, %v9533_v57  ;;  %v71_v22 = vld [vmem:[#allocation2 + $0xb8] sm:$0xff] }
  0x7a   :  { %4921 = vmatprep.mubr.msk.f32.mxu0 %vm6469_vm0, %v6468_v0  ;;  %5022 = vmatprep.mubr.msk.f32.mxu1 %vm6469_vm0, %v6468_v0 }
  0x7b   :  { %5189 = vmatpush3.msra.mxu1 %v6665_v2  ;;  %5084 = vmatpush3.msra.mxu0 %v6721_v56  ;;  %9697 = vst [vmem:[#allocation33_spill] sm:$0xff] %v7067_v8  ;;  %v361_v53 = vand.u32 4294901760, %v360_v42  ;;  %v9536_v41 = vand.u32 4294901760, %v7067_v8  ;;  %v371_v42 = vand.u32 4294901760, %v370_v63 }
  0x7c   :  { %5190 = vmatprep.subr.mxu1 %v6468_v0  ;;  %5085 = vmatprep.subr.mxu0 %v6468_v0 }
  0x7d   :  { %4922 = vmatmul.mubr.f32.gmra.mxu0 %v341_v54  ;;  %5023 = vmatmul.mubr.f32.gmra.mxu1 %v6932_v24  ;;  %v7075_v54 = vand.u32 4294901760, %v70_v36  ;;  %v7085_v24 = vsub.f32 %v69_v61, %v7057_v35  ;;  %v380_v61 = vsub.f32 %v7067_v8, %v9536_v41 }
  0x7e   :  { %4924 = vmatprep.mubr.msk.f32.mxu0 %vm6469_vm0, %v6468_v0  ;;  %5025 = vmatprep.mubr.msk.f32.mxu1 %vm6469_vm0, %v6468_v0 }
  0x7f   :  { %5191 = vmatpush3.msra.mxu1 %v6683_v14  ;;  %5086 = vmatpush3.msra.mxu0 %v6734_v29  ;;  %v9541_v57 = vand.u32 4294901760, %v7085_v24  ;;  %v381_v63 = vand.u32 4294901760, %v380_v61 }
  0x80   :  { %5192 = vmatprep.subr.mxu1 %v6468_v0  ;;  %5269 = vmatprep.subr.mxu0 %v6468_v0 }
  0x81   :  { %4925 = vmatmul.mubr.f32.gmra.mxu0 %v351_v3  ;;  %5026 = vmatmul.mubr.f32.gmra.mxu1 %v6959_v50  ;;  %v7093_v3 = vsub.f32 %v70_v36, %v7075_v54  ;;  %v7101_v50 = vand.u32 4294901760, %v71_v22  ;;  %v72_v36 = vld [vmem:[#allocation2 + $0xc0] sm:$0xff]  ;;  %v390_v41 = vsub.f32 %v7085_v24, %v9541_v57 }
  0x82   :  { %4927 = vmatprep.mubr.msk.f32.mxu0 %vm6469_vm0, %v6468_v0  ;;  %5028 = vmatprep.mubr.msk.f32.mxu1 %vm6469_vm0, %v6468_v0  ;;  %v7115_v8 = vand.u32 4294901760, %v72_v36 }
  0x83   :  { %5193 = vmatpush3.msra.mxu1 %v6697_v37 }
  0x84   :  { %5376 = vmatprep.subr.mxu1 %v6468_v0 }
  0x85   :  { %4928 = vmatmul.mubr.f32.gmra.mxu0 %v361_v53  ;;  %5029 = vmatmul.mubr.f32.gmra.mxu1 %v6977_v28  ;;  %v9542_v53 = vand.u32 4294901760, %v7093_v3  ;;  %v7113_v28 = vsub.f32 %v71_v22, %v7101_v50  ;;  %v7127_v22 = vsub.f32 %v72_v36, %v7115_v8 }
  0x86   :  { %4930 = vmatprep.mubr.msk.f32.mxu0 %vm6469_vm0, %v6468_v0  ;;  %5031 = vmatprep.mubr.msk.f32.mxu1 %vm6469_vm0, %v6468_v0 }
  0x87   :  { %v400_v61 = vsub.f32 %v7093_v3, %v9542_v53  ;;  %v409_v57 = vand.u32 4294901760, %v7113_v28  ;;  %v419_v53 = vand.u32 4294901760, %v7127_v22 }
  0x89   :  { %4931 = vmatmul.mubr.f32.gmra.mxu0 %v371_v42  ;;  %5032 = vmatmul.mubr.f32.gmra.mxu1 %v6985_v49  ;;  %v391_v42 = vand.u32 4294901760, %v390_v41  ;;  %v410_v41 = vsub.f32 %v7113_v28, %v409_v57 }
  0x8a   :  { %4933 = vmatprep.mubr.msk.f32.mxu0 %vm6469_vm0, %v6468_v0  ;;  %5034 = vmatprep.mubr.msk.f32.mxu1 %vm6469_vm0, %v6468_v0 }
  0x8b   :  { %v411_v36 = vand.u32 4294901760, %v410_v41  ;;  %v9699_v41 = vand.u32 4294901760, %v6553_v16  ;;  %v9701_v16 = vand.u32 4294901760, %v6558_v18  ;;  %v9706_v18 = vand.u32 4294901760, %v6763_v1 }
  0x8d   :  { %4934 = vmatmul.mubr.f32.gmra.mxu0 %v381_v63  ;;  %5035 = vmatmul.mubr.f32.gmra.mxu1 %v7013_v44  ;;  %v401_v63 = vand.u32 4294901760, %v400_v61 }
  0x8e   :  { %4936 = vmatprep.mubr.msk.f32.mxu0 %vm6469_vm0, %v6468_v0  ;;  %5037 = vmatprep.mubr.msk.f32.mxu1 %vm6469_vm0, %v6468_v0 }
  0x91   :  { %4937 = vmatmul.mubr.f32.gmra.mxu0 %v391_v42  ;;  %5038 = vmatmul.mubr.f32.gmra.mxu1 %v7031_v32  ;;  %v420_v42 = vsub.f32 %v7127_v22, %v419_v53 }
  0x92   :  { %4939 = vmatprep.mubr.msk.f32.mxu0 %vm6469_vm0, %v6468_v0  ;;  %5040 = vmatprep.mubr.msk.f32.mxu1 %vm6469_vm0, %v6468_v0 }
  0x93   :  { %v421_v61 = vand.u32 4294901760, %v420_v42 }
  0x95   :  { %4940 = vmatmul.mubr.f32.gmra.mxu0 %v401_v63  ;;  %5041 = vmatmul.mubr.f32.gmra.mxu1 %v7039_v19  ;;  %v9698_v63 = vand.u32 4294901760, %v6550_v15  ;;  %v9700_v15 = vand.u32 4294901760, %v6679_v13 }
  0x96   :  { %4942 = vmatprep.mubr.msk.f32.mxu0 %vm6469_vm0, %v6468_v0  ;;  %5043 = vmatprep.mubr.msk.f32.mxu1 %vm6469_vm0, %v6468_v0 }
  0x99   :  { %4943 = vmatmul.mubr.f32.gmra.mxu0 %v411_v36  ;;  %5044 = vmatmul.mubr.f32.gmra.mxu1 %v7057_v35 }
  0x9a   :  { %4945 = vmatprep.mubr.msk.f32.mxu0 %vm6469_vm0, %v6468_v0  ;;  %5046 = vmatprep.mubr.msk.f32.mxu1 %vm6469_vm0, %v6468_v0 }
  0x9d   :  { %4946 = vmatmul.mubr.f32.gmra.mxu0 %v421_v61  ;;  %5047 = vmatmul.mubr.f32.gmra.mxu1 %v7075_v54  ;;  %v7409_v61 = vld [vmem:[%s9448_s2] ss:$0 sm:$0xff] }
  0x9e   :  { %5049 = vmatprep.mubr.msk.f32.mxu1 %vm6469_vm0, %v6468_v0  ;;  %5087 = vmatprep.mubr.msk.f32.mxu0 %vm6469_vm0, %v6468_v0 }
  0xa1   :  { %5050 = vmatmul.mubr.f32.gmra.mxu1 %v7101_v50  ;;  %5088 = vmatmul.mubr.f32.vlgmr.msra.gmra.mxu0 %v6679_v13  ;;  %v9702_v13 = vand.u32 4294901760, %v6711_v48 }
  0xa2   :  { %5052 = vmatprep.mubr.msk.f32.mxu1 %vm6469_vm0, %v6468_v0  ;;  %5090 = vmatprep.mubr.msk.f32.mxu0 %vm6469_vm0, %v6468_v0 }
  0xa3   :  { %5270 = vmatpush3.msra.mxu0 %v9698_v63 }
  0xa4   :  { %5271 = vmatprep.subr.mxu0 %v6468_v0 }
  0xa5   :  { %5053 = vmatmul.mubr.f32.gmra.mxu1 %v7115_v8  ;;  %5091 = vmatmul.mubr.f32.gmra.mxu0 %v6711_v48 }
  0xa6   :  { %5093 = vmatprep.mubr.msk.f32.mxu0 %vm6469_vm0, %v6468_v0  ;;  %5194 = vmatprep.mubr.msk.f32.mxu1 %vm6469_vm0, %v6468_v0 }
  0xa7   :  { %5272 = vmatpush3.msra.mxu0 %v9699_v41 }
  0xa8   :  { %5273 = vmatprep.subr.mxu0 %v6468_v0 }
  0xa9   :  { %5094 = vmatmul.mubr.f32.gmra.mxu0 %v6740_v39  ;;  %5195 = vmatmul.mubr.f32.vlgmr.msra.gmra.mxu1 %v9700_v15  ;;  %v9745_v15 = vand.u32 4294901760, %v7093_v3 }
  0xaa   :  { %5377 = vmatpush3.msra.mxu1 %v6521_v4  ;;  %5096 = vmatprep.mubr.msk.f32.mxu0 %vm6469_vm0, %v6468_v0  ;;  %v9703_v4 = vand.u32 4294901760, %v6565_v20  ;;  %v9708_v20 = vand.u32 4294901760, %v6785_v26 }
  0xab   :  { %5197 = vmatprep.mubr.msk.f32.mxu1 %vm6469_vm0, %v6468_v0  ;;  %5378 = vmatprep.subr.mxu1 %v6468_v0 }
  0xac   :  { %5379 = vmatpush3.msra.mxu1 %v6523_v5  ;;  %5274 = vmatpush3.msra.mxu0 %v9701_v16  ;;  %v9704_v5 = vand.u32 4294901760, %v6740_v39 }
  0xad   :  { %5097 = vmatmul.mubr.f32.gmra.mxu0 %v6763_v1  ;;  %5198 = vmatmul.mubr.f32.gmra.mxu1 %v9702_v13 }
  0xae   :  { %5099 = vmatprep.mubr.msk.f32.mxu0 %vm6469_vm0, %v6468_v0  ;;  %5200 = vmatprep.mubr.msk.f32.mxu1 %vm6469_vm0, %v6468_v0 }
  0xaf   :  { %5380 = vmatprep.subr.mxu1 %v6468_v0  ;;  %5275 = vmatprep.subr.mxu0 %v6468_v0 }
  0xb0   :  { %5381 = vmatpush3.msra.mxu1 %v6525_v6  ;;  %5276 = vmatpush3.msra.mxu0 %v9703_v4  ;;  %v9705_v6 = vand.u32 4294901760, %v6568_v21  ;;  %v9710_v21 = vand.u32 4294901760, %v6800_v51 }
  0xb1   :  { %5100 = vmatmul.mubr.f32.gmra.mxu0 %v6785_v26  ;;  %5201 = vmatmul.mubr.f32.gmra.mxu1 %v9704_v5  ;;  %v9712_v26 = vand.u32 4294901760, %v6808_v58  ;;  %v9746_v5 = vld [vmem:[#allocation8_spill] sm:$0xff] }
  0xb2   :  { %5102 = vmatprep.mubr.msk.f32.mxu0 %vm6469_vm0, %v6468_v0  ;;  %5203 = vmatprep.mubr.msk.f32.mxu1 %vm6469_vm0, %v6468_v0 }
  0xb3   :  { %5382 = vmatprep.subr.mxu1 %v6468_v0  ;;  %5277 = vmatprep.subr.mxu0 %v6468_v0 }
  0xb4   :  { %5383 = vmatpush3.msra.mxu1 %v6536_v10  ;;  %5278 = vmatpush3.msra.mxu0 %v9705_v6  ;;  %v9707_v10 = vand.u32 4294901760, %v6585_v30  ;;  %v9714_v30 = vand.u32 4294901760, %v6831_v46 }
  0xb5   :  { %5103 = vmatmul.mubr.f32.gmra.mxu0 %v6800_v51  ;;  %5204 = vmatmul.mubr.f32.gmra.mxu1 %v9706_v18  ;;  %v9737_v51 = vld [vmem:[#allocation32_spill] sm:$0xff] }
  0xb6   :  { %5105 = vmatprep.mubr.msk.f32.mxu0 %vm6469_vm0, %v6468_v0  ;;  %5206 = vmatprep.mubr.msk.f32.mxu1 %vm6469_vm0, %v6468_v0 }
  0xb7   :  { %5384 = vmatprep.subr.mxu1 %v6468_v0  ;;  %5279 = vmatprep.subr.mxu0 %v6468_v0 }
  0xb8   :  { %5385 = vmatpush3.msra.mxu1 %v6538_v11  ;;  %5280 = vmatpush3.msra.mxu0 %v9707_v10  ;;  %v9709_v11 = vand.u32 4294901760, %v6598_v34  ;;  %v9716_v34 = vand.u32 4294901760, %v6851_v31 }
  0xb9   :  { %5106 = vmatmul.mubr.f32.gmra.mxu0 %v6808_v58  ;;  %5207 = vmatmul.mubr.f32.gmra.mxu1 %v9708_v20  ;;  %v9741_v58 = vand.u32 4294901760, %v9737_v51 }
  0xba   :  { %5108 = vmatprep.mubr.msk.f32.mxu0 %vm6469_vm0, %v6468_v0  ;;  %5209 = vmatprep.mubr.msk.f32.mxu1 %vm6469_vm0, %v6468_v0 }
  0xbb   :  { %5386 = vmatprep.subr.mxu1 %v6468_v0  ;;  %5281 = vmatprep.subr.mxu0 %v6468_v0 }
  0xbc   :  { %5387 = vmatpush3.msra.mxu1 %v6540_v12  ;;  %5282 = vmatpush3.msra.mxu0 %v9709_v11  ;;  %v9711_v12 = vand.u32 4294901760, %v6619_v43  ;;  %v9718_v43 = vld [vmem:[#allocation21_spill] sm:$0xff] }
  0xbd   :  { %5109 = vmatmul.mubr.f32.gmra.mxu0 %v6831_v46  ;;  %5210 = vmatmul.mubr.f32.gmra.mxu1 %v9710_v21  ;;  %v9740_v46 = vld [vmem:[#allocation33_spill] sm:$0xff] }
  0xbe   :  { %5111 = vmatprep.mubr.msk.f32.mxu0 %vm6469_vm0, %v6468_v0  ;;  %5212 = vmatprep.mubr.msk.f32.mxu1 %vm6469_vm0, %v6468_v0  ;;  %v9743_v36 = vand.u32 4294901760, %v9740_v46 }
  0xbf   :  { %5388 = vmatprep.subr.mxu1 %v6468_v0  ;;  %5283 = vmatprep.subr.mxu0 %v6468_v0 }
  0xc0   :  { %5389 = vmatpush3.msra.mxu1 %v6555_v17  ;;  %5284 = vmatpush3.msra.mxu0 %v9711_v12  ;;  %v9713_v17 = vand.u32 4294901760, %v6626_v47  ;;  %v9719_v47 = vand.u32 4294901760, %v6862_v7 }
  0xc1   :  { %5112 = vmatmul.mubr.f32.gmra.mxu0 %v6851_v31  ;;  %5213 = vmatmul.mubr.f32.gmra.mxu1 %v9712_v26 }
  0xc2   :  { %5114 = vmatprep.mubr.msk.f32.mxu0 %vm6469_vm0, %v6468_v0  ;;  %5215 = vmatprep.mubr.msk.f32.mxu1 %vm6469_vm0, %v6468_v0 }
  0xc3   :  { %5390 = vmatprep.subr.mxu1 %v6468_v0  ;;  %5285 = vmatprep.subr.mxu0 %v6468_v0 }
  0xc4   :  { %5391 = vmatpush3.msra.mxu1 %v6574_v25  ;;  %5286 = vmatpush3.msra.mxu0 %v9713_v17  ;;  %v9715_v25 = vand.u32 4294901760, %v6644_v55  ;;  %v9721_v55 = vld [vmem:[#allocation23_spill] sm:$0xff] }
  0xc5   :  { %5115 = vmatmul.mubr.f32.gmra.mxu0 %v6862_v7  ;;  %5216 = vmatmul.mubr.f32.gmra.mxu1 %v9714_v30  ;;  %v9728_v48 = vand.u32 4294901760, %v9721_v55  ;;  %v9742_v7 = vand.u32 4294901760, %v7049_v60 }
  0xc6   :  { %5117 = vmatprep.mubr.msk.f32.mxu0 %vm6469_vm0, %v6468_v0  ;;  %5218 = vmatprep.mubr.msk.f32.mxu1 %vm6469_vm0, %v6468_v0 }
  0xc7   :  { %5392 = vmatprep.subr.mxu1 %v6468_v0  ;;  %5287 = vmatprep.subr.mxu0 %v6468_v0 }
  0xc8   :  { %5393 = vmatpush3.msra.mxu1 %v6578_v27  ;;  %5288 = vmatpush3.msra.mxu0 %v9715_v25  ;;  %v9717_v27 = vand.u32 4294901760, %v6661_v62  ;;  %v9722_v62 = vand.u32 4294901760, %v6885_v23  ;;  %v9748_v25 = vld [vmem:[#allocation10_spill] sm:$0xff] }
  0xc9   :  { %5118 = vmatmul.mubr.f32.gmra.mxu0 %v6885_v23  ;;  %5219 = vmatmul.mubr.f32.gmra.mxu1 %v9716_v34  ;;  %v9725_v23 = vand.u32 4294901760, %v9718_v43 }
  0xca   :  { %5120 = vmatprep.mubr.msk.f32.mxu0 %vm6469_vm0, %v6468_v0  ;;  %5221 = vmatprep.mubr.msk.f32.mxu1 %vm6469_vm0, %v6468_v0 }
  0xcb   :  { %5394 = vmatprep.subr.mxu1 %v6468_v0  ;;  %5289 = vmatprep.subr.mxu0 %v6468_v0 }
  0xcc   :  { %5395 = vmatpush3.msra.mxu1 %v6609_v40  ;;  %5290 = vmatpush3.msra.mxu0 %v9717_v27  ;;  %v9720_v40 = vand.u32 4294901760, %v6676_v9  ;;  %v9724_v9 = vld [vmem:[#allocation25_spill] sm:$0xff] }
  0xcd   :  { %5121 = vmatmul.mubr.f32.gmra.mxu0 %v9718_v43  ;;  %5222 = vmatmul.mubr.f32.gmra.mxu1 %v9719_v47  ;;  %v9731_v31 = vand.u32 4294901760, %v9724_v9 }
  0xce   :  { %5123 = vmatprep.mubr.msk.f32.mxu0 %vm6469_vm0, %v6468_v0  ;;  %5224 = vmatprep.mubr.msk.f32.mxu1 %vm6469_vm0, %v6468_v0 }
  0xcf   :  { %5396 = vmatprep.subr.mxu1 %v6468_v0  ;;  %5291 = vmatprep.subr.mxu0 %v6468_v0 }
  0xd0   :  { %5397 = vmatpush3.msra.mxu1 %v6622_v45  ;;  %5292 = vmatpush3.msra.mxu0 %v9720_v40  ;;  %v9723_v45 = vand.u32 4294901760, %v6693_v33  ;;  %v9727_v33 = vld [vmem:[#allocation26_spill] sm:$0xff]  ;;  %v9749_v40 = vld [vmem:[#allocation11_spill] sm:$0xff] }
  0xd1   :  { %5124 = vmatmul.mubr.f32.gmra.mxu0 %v9721_v55  ;;  %5225 = vmatmul.mubr.f32.gmra.mxu1 %v9722_v62  ;;  %v9734_v39 = vand.u32 4294901760, %v9727_v33 }
  0xd2   :  { %5126 = vmatprep.mubr.msk.f32.mxu0 %vm6469_vm0, %v6468_v0  ;;  %5227 = vmatprep.mubr.msk.f32.mxu1 %vm6469_vm0, %v6468_v0 }
  0xd3   :  { %5398 = vmatprep.subr.mxu1 %v6468_v0  ;;  %5293 = vmatprep.subr.mxu0 %v6468_v0 }
  0xd4   :  { %5399 = vmatpush3.msra.mxu1 %v6637_v52  ;;  %5294 = vmatpush3.msra.mxu0 %v9723_v45  ;;  %v9726_v52 = vand.u32 4294901760, %v6700_v38  ;;  %v9730_v38 = vld [vmem:[#allocation28_spill] sm:$0xff] }
  0xd5   :  { %5127 = vmatmul.mubr.f32.gmra.mxu0 %v9724_v9  ;;  %5228 = vmatmul.mubr.f32.gmra.mxu1 %v9725_v23 }
  0xd6   :  { %5129 = vmatprep.mubr.msk.f32.mxu0 %vm6469_vm0, %v6468_v0  ;;  %5230 = vmatprep.mubr.msk.f32.mxu1 %vm6469_vm0, %v6468_v0 }
  0xd7   :  { %5400 = vmatprep.subr.mxu1 %v6468_v0  ;;  %5295 = vmatprep.subr.mxu0 %v6468_v0 }
  0xd8   :  { %5401 = vmatpush3.msra.mxu1 %v6654_v59  ;;  %5296 = vmatpush3.msra.mxu0 %v9726_v52  ;;  %v9729_v59 = vand.u32 4294901760, %v6721_v56  ;;  %v9733_v56 = vld [vmem:[#allocation30_spill] sm:$0xff] }
  0xd9   :  { %5130 = vmatmul.mubr.f32.gmra.mxu0 %v9727_v33  ;;  %5231 = vmatmul.mubr.f32.gmra.mxu1 %v9728_v48  ;;  %v9738_v1 = vand.u32 4294901760, %v9733_v56  ;;  %v9750_v33 = vld [vmem:[#allocation12_spill] sm:$0xff] }
  0xda   :  { %5132 = vmatprep.mubr.msk.f32.mxu0 %vm6469_vm0, %v6468_v0  ;;  %5233 = vmatprep.mubr.msk.f32.mxu1 %vm6469_vm0, %v6468_v0 }
  0xdb   :  { %5402 = vmatprep.subr.mxu1 %v6468_v0  ;;  %5297 = vmatprep.subr.mxu0 %v6468_v0 }
  0xdc   :  { %5403 = vmatpush3.msra.mxu1 %v6665_v2  ;;  %5298 = vmatpush3.msra.mxu0 %v9729_v59  ;;  %v9732_v2 = vand.u32 4294901760, %v6734_v29  ;;  %v9736_v29 = vand.u32 4294901760, %v9730_v38 }
  0xdd   :  { %5133 = vmatmul.mubr.f32.gmra.mxu0 %v9730_v38  ;;  %5234 = vmatmul.mubr.f32.gmra.mxu1 %v9731_v31 }
  0xde   :  { %5135 = vmatprep.mubr.msk.f32.mxu0 %vm6469_vm0, %v6468_v0  ;;  %5236 = vmatprep.mubr.msk.f32.mxu1 %vm6469_vm0, %v6468_v0 }
  0xdf   :  { %5404 = vmatprep.subr.mxu1 %v6468_v0  ;;  %5299 = vmatprep.subr.mxu0 %v6468_v0 }
  0xe0   :  { %5405 = vmatpush3.msra.mxu1 %v6683_v14  ;;  %5300 = vmatpush3.msra.mxu0 %v9732_v2  ;;  %v9735_v14 = vld [vmem:[#allocation31_spill] sm:$0xff] }
  0xe1   :  { %5136 = vmatmul.mubr.f32.gmra.mxu0 %v9733_v56  ;;  %5237 = vmatmul.mubr.f32.gmra.mxu1 %v9734_v39  ;;  %v9751_v39 = vld [vmem:[#allocation13_spill] sm:$0xff] }
  0xe2   :  { %5138 = vmatprep.mubr.msk.f32.mxu0 %vm6469_vm0, %v6468_v0  ;;  %5239 = vmatprep.mubr.msk.f32.mxu1 %vm6469_vm0, %v6468_v0 }
  0xe3   :  { %5406 = vmatprep.subr.mxu1 %v6468_v0  ;;  %5483 = vmatprep.subr.mxu0 %v6468_v0 }
  0xe4   :  { %5407 = vmatpush3.msra.mxu1 %v6697_v37  ;;  %v9739_v37 = vand.u32 4294901760, %v9735_v14 }
  0xe5   :  { %5139 = vmatmul.mubr.f32.gmra.mxu0 %v9735_v14  ;;  %5240 = vmatmul.mubr.f32.gmra.mxu1 %v9736_v29 }
  0xe6   :  { %5141 = vmatprep.mubr.msk.f32.mxu0 %vm6469_vm0, %v6468_v0  ;;  %5242 = vmatprep.mubr.msk.f32.mxu1 %vm6469_vm0, %v6468_v0 }
  0xe7   :  { %5518 = vmatprep.subr.mxu1 %v6468_v0 }
  0xe9   :  { %5142 = vmatmul.mubr.f32.gmra.mxu0 %v9737_v51  ;;  %5243 = vmatmul.mubr.f32.gmra.mxu1 %v9738_v1 }
  0xea   :  { %5144 = vmatprep.mubr.msk.f32.mxu0 %vm6469_vm0, %v6468_v0  ;;  %5245 = vmatprep.mubr.msk.f32.mxu1 %vm6469_vm0, %v6468_v0 }
  0xed   :  { %5145 = vmatmul.mubr.f32.gmra.mxu0 %v7049_v60  ;;  %5246 = vmatmul.mubr.f32.gmra.mxu1 %v9739_v37  ;;  %v9744_v60 = vand.u32 4294901760, %v7085_v24 }
  0xee   :  { %5147 = vmatprep.mubr.msk.f32.mxu0 %vm6469_vm0, %v6468_v0  ;;  %5248 = vmatprep.mubr.msk.f32.mxu1 %vm6469_vm0, %v6468_v0 }
  0xf1   :  { %5148 = vmatmul.mubr.f32.gmra.mxu0 %v9740_v46  ;;  %5249 = vmatmul.mubr.f32.gmra.mxu1 %v9741_v58  ;;  %v9752_v58 = vld [vmem:[#allocation14_spill] sm:$0xff] }
  0xf2   :  { %5150 = vmatprep.mubr.msk.f32.mxu0 %vm6469_vm0, %v6468_v0  ;;  %5251 = vmatprep.mubr.msk.f32.mxu1 %vm6469_vm0, %v6468_v0 }
  0xf5   :  { %5151 = vmatmul.mubr.f32.gmra.mxu0 %v7085_v24  ;;  %5252 = vmatmul.mubr.f32.gmra.mxu1 %v9742_v7 }
  0xf6   :  { %5153 = vmatprep.mubr.msk.f32.mxu0 %vm6469_vm0, %v6468_v0  ;;  %5254 = vmatprep.mubr.msk.f32.mxu1 %vm6469_vm0, %v6468_v0 }
  0xf9   :  { %5154 = vmatmul.mubr.f32.gmra.mxu0 %v7093_v3  ;;  %5255 = vmatmul.mubr.f32.gmra.mxu1 %v9743_v36 }
  0xfa   :  { %5156 = vmatprep.mubr.msk.f32.mxu0 %vm6469_vm0, %v6468_v0  ;;  %5257 = vmatprep.mubr.msk.f32.mxu1 %vm6469_vm0, %v6468_v0 }
  0xfd   :  { %v183_v42 = vpop.f32.mrf.mxu0  ;;  %5157 = vmatmul.mubr.f32.gmra.mxu0 %v7113_v28  ;;  %5258 = vmatmul.mubr.f32.gmra.mxu1 %v9744_v60  ;;  %v9747_v28 = vld [vmem:[#allocation9_spill] sm:$0xff] }
  0xfe   :  { %5159 = vmatprep.mubr.msk.f32.mxu0 %vm6469_vm0, %v6468_v0  ;;  %5260 = vmatprep.mubr.msk.f32.mxu1 %vm6469_vm0, %v6468_v0  ;;  %v184_v24 = vadd.f32 %v7409_v61, %v183_v42 }
  0xff   :  { %v4875_v63 = vpop.f32.mrf.mxu0 }
 0x101   :  { %v193_v41 = vpop.f32.mrf.mxu0  ;;  %5160 = vmatmul.mubr.f32.gmra.mxu0 %v7127_v22  ;;  %5261 = vmatmul.mubr.f32.gmra.mxu1 %v9745_v15  ;;  %v9753_v15 = vld [vmem:[#allocation15_spill] sm:$0xff] }
 0x102   :  { %5263 = vmatprep.mubr.msk.f32.mxu1 %vm6469_vm0, %v6468_v0  ;;  %5301 = vmatprep.mubr.msk.f32.mxu0 %vm6469_vm0, %v6468_v0  ;;  %v194_v6 = vadd.f32 %v7409_v61, %v193_v41 }
 0x103   :  { %v4878_v16 = vpop.f32.mrf.mxu0 }
 0x105   :  { %v203_v13 = vpop.f32.mrf.mxu0  ;;  %v574_v4 = vpop.f32.mrf.mxu1  ;;  %5264 = vmatmul.mubr.f32.gmra.mxu1 %v409_v57  ;;  %5302 = vmatmul.mubr.f32.vlgmr.msra.gmra.mxu0 %v9746_v5 }
 0x106   :  { %v7423_v3 = vadd.f32 %v574_v4, %v184_v24  ;;  %5266 = vmatprep.mubr.msk.f32.mxu1 %vm6469_vm0, %v6468_v0  ;;  %5304 = vmatprep.mubr.msk.f32.mxu0 %vm6469_vm0, %v6468_v0  ;;  %v204_v57 = vadd.f32 %v7409_v61, %v203_v13 }
 0x107   :  { %v4881_v18 = vpop.f32.mrf.mxu0  ;;  %v4982_v10 = vpop.f32.mrf.mxu1 }
 0x108   :  { %v9754_v18 = vld [vmem:[#allocation16_spill] sm:$0xff] }
 0x109   :  { %v213_v20 = vpop.f32.mrf.mxu0  ;;  %v580_v11 = vpop.f32.mrf.mxu1  ;;  %5267 = vmatmul.mubr.f32.gmra.mxu1 %v419_v53  ;;  %5305 = vmatmul.mubr.f32.gmra.mxu0 %v9747_v28 }
 0x10a   :  { %v7433_v21 = vadd.f32 %v580_v11, %v194_v6  ;;  %5307 = vmatprep.mubr.msk.f32.mxu0 %vm6469_vm0, %v6468_v0  ;;  %5408 = vmatprep.mubr.msk.f32.mxu1 %vm6469_vm0, %v6468_v0  ;;  %v214_v53 = vadd.f32 %v7409_v61, %v213_v20 }
 0x10b   :  { %v4884_v12 = vpop.f32.mrf.mxu0  ;;  %v4985_v26 = vpop.f32.mrf.mxu1 }
 0x10c   :  { %v9755_v26 = vld [vmem:[#allocation17_spill] sm:$0xff] }
 0x10d   :  { %v223_v17 = vpop.f32.mrf.mxu0  ;;  %v586_v30 = vpop.f32.mrf.mxu1  ;;  %5308 = vmatmul.mubr.f32.gmra.mxu0 %v9748_v25  ;;  %5409 = vmatmul.mubr.f32.vlgmr.msra.gmra.mxu1 %v9746_v5 }
 0x10e   :  { %v7442_v22 = vadd.f32 %v586_v30, %v204_v57  ;;  %5310 = vmatprep.mubr.msk.f32.mxu0 %vm6469_vm0, %v6468_v0  ;;  %5411 = vmatprep.mubr.msk.f32.mxu1 %vm6469_vm0, %v6468_v0  ;;  %v224_v55 = vadd.f32 %v7409_v61, %v223_v17 }
 0x10f   :  { %v4887_v34 = vpop.f32.mrf.mxu0  ;;  %v4988_v27 = vpop.f32.mrf.mxu1 }
 0x111   :  { %v233_v43 = vpop.f32.mrf.mxu0  ;;  %v592_v47 = vpop.f32.mrf.mxu1  ;;  %5311 = vmatmul.mubr.f32.gmra.mxu0 %v9749_v40  ;;  %5412 = vmatmul.mubr.f32.gmra.mxu1 %v9747_v28 }
 0x112   :  { %v7451_v62 = vadd.f32 %v592_v47, %v214_v53  ;;  %5313 = vmatprep.mubr.msk.f32.mxu0 %vm6469_vm0, %v6468_v0  ;;  %5414 = vmatprep.mubr.msk.f32.mxu1 %vm6469_vm0, %v6468_v0  ;;  %v234_v48 = vadd.f32 %v7409_v61, %v233_v43  ;;  %v9756_v43 = vld [vmem:[#allocation18_spill] sm:$0xff] }
 0x113   :  { %v4890_v45 = vpop.f32.mrf.mxu0  ;;  %v4991_v9 = vpop.f32.mrf.mxu1 }
 0x115   :  { %v243_v23 = vpop.f32.mrf.mxu0  ;;  %v598_v52 = vpop.f32.mrf.mxu1  ;;  %5314 = vmatmul.mubr.f32.gmra.mxu0 %v9750_v33  ;;  %5415 = vmatmul.mubr.f32.gmra.mxu1 %v9748_v25 }
 0x116   :  { %v7460_v59 = vadd.f32 %v598_v52, %v224_v55  ;;  %5316 = vmatprep.mubr.msk.f32.mxu0 %vm6469_vm0, %v6468_v0  ;;  %5417 = vmatprep.mubr.msk.f32.mxu1 %vm6469_vm0, %v6468_v0  ;;  %v244_v14 = vadd.f32 %v7409_v61, %v243_v23  ;;  %v9757_v52 = vld [vmem:[#allocation19_spill] sm:$0xff] }
 0x117   :  { %v4893_v38 = vpop.f32.mrf.mxu0  ;;  %v4994_v31 = vpop.f32.mrf.mxu1 }
 0x119   :  { %v253_v2 = vpop.f32.mrf.mxu0  ;;  %v604_v56 = vpop.f32.mrf.mxu1  ;;  %5317 = vmatmul.mubr.f32.gmra.mxu0 %v9751_v39  ;;  %5418 = vmatmul.mubr.f32.gmra.mxu1 %v9749_v40 }
 0x11a   :  { %v7469_v29 = vadd.f32 %v604_v56, %v234_v48  ;;  %5319 = vmatprep.mubr.msk.f32.mxu0 %vm6469_vm0, %v6468_v0  ;;  %5420 = vmatprep.mubr.msk.f32.mxu1 %vm6469_vm0, %v6468_v0  ;;  %v254_v7 = vadd.f32 %v7409_v61, %v253_v2 }
 0x11b   :  { %v4896_v51 = vpop.f32.mrf.mxu0  ;;  %v4997_v1 = vpop.f32.mrf.mxu1 }
 0x11d   :  { %v263_v37 = vpop.f32.mrf.mxu0  ;;  %v610_v46 = vpop.f32.mrf.mxu1  ;;  %5320 = vmatmul.mubr.f32.gmra.mxu0 %v9752_v58  ;;  %5421 = vmatmul.mubr.f32.gmra.mxu1 %v9750_v33 }
 0x11e   :  { %v7478_v36 = vadd.f32 %v610_v46, %v244_v14  ;;  %5322 = vmatprep.mubr.msk.f32.mxu0 %vm6469_vm0, %v6468_v0  ;;  %5423 = vmatprep.mubr.msk.f32.mxu1 %vm6469_vm0, %v6468_v0  ;;  %v264_v24 = vadd.f32 %v7409_v61, %v263_v37 }
 0x11f   :  { %v4899_v42 = vpop.f32.mrf.mxu0  ;;  %v5000_v60 = vpop.f32.mrf.mxu1 }
 0x121   :  { %v273_v63 = vpop.f32.mrf.mxu0  ;;  %v616_v41 = vpop.f32.mrf.mxu1  ;;  %5323 = vmatmul.mubr.f32.gmra.mxu0 %v9753_v15  ;;  %5424 = vmatmul.mubr.f32.gmra.mxu1 %v9751_v39  ;;  %v9758_v39 = vld [vmem:[#allocation20_spill] sm:$0xff] }
 0x122   :  { %v7487_v16 = vadd.f32 %v616_v41, %v254_v7  ;;  %5325 = vmatprep.mubr.msk.f32.mxu0 %vm6469_vm0, %v6468_v0  ;;  %5426 = vmatprep.mubr.msk.f32.mxu1 %vm6469_vm0, %v6468_v0  ;;  %v274_v10 = vadd.f32 %v7409_v61, %v273_v63  ;;  %v9759_v7 = vld [vmem:[#allocation22_spill] sm:$0xff] }
 0x123   :  { %v4902_v13 = vpop.f32.mrf.mxu0  ;;  %v5003_v4 = vpop.f32.mrf.mxu1 }
 0x124   :  { %v9760_v13 = vld [vmem:[#allocation24_spill] sm:$0xff] }
 0x125   :  { %v283_v5 = vpop.f32.mrf.mxu0  ;;  %v622_v6 = vpop.f32.mrf.mxu1  ;;  %5326 = vmatmul.mubr.f32.gmra.mxu0 %v9754_v18  ;;  %5427 = vmatmul.mubr.f32.gmra.mxu1 %v9752_v58 }
 0x126   :  { %v7496_v20 = vadd.f32 %v622_v6, %v264_v24  ;;  %5328 = vmatprep.mubr.msk.f32.mxu0 %vm6469_vm0, %v6468_v0  ;;  %5429 = vmatprep.mubr.msk.f32.mxu1 %vm6469_vm0, %v6468_v0  ;;  %v284_v17 = vadd.f32 %v7409_v61, %v283_v5 }
 0x127   :  { %v4905_v11 = vpop.f32.mrf.mxu0  ;;  %v5006_v28 = vpop.f32.mrf.mxu1 }
 0x128   :  { %v9761_v28 = vld [vmem:[#allocation27_spill] sm:$0xff] }
 0x129   :  { %v293_v57 = vpop.f32.mrf.mxu0  ;;  %v628_v12 = vpop.f32.mrf.mxu1  ;;  %5329 = vmatmul.mubr.f32.gmra.mxu0 %v9755_v26  ;;  %5430 = vmatmul.mubr.f32.gmra.mxu1 %v9753_v15 }
 0x12a   :  { %v7505_v30 = vadd.f32 %v628_v12, %v274_v10  ;;  %5331 = vmatprep.mubr.msk.f32.mxu0 %vm6469_vm0, %v6468_v0  ;;  %5432 = vmatprep.mubr.msk.f32.mxu1 %vm6469_vm0, %v6468_v0  ;;  %v294_v47 = vadd.f32 %v7409_v61, %v293_v57 }
 0x12b   :  { %v4908_v25 = vpop.f32.mrf.mxu0  ;;  %v5009_v53 = vpop.f32.mrf.mxu1 }
 0x12d   :  { %v303_v34 = vpop.f32.mrf.mxu0  ;;  %v634_v27 = vpop.f32.mrf.mxu1  ;;  %5332 = vmatmul.mubr.f32.gmra.mxu0 %v9756_v43  ;;  %5433 = vmatmul.mubr.f32.gmra.mxu1 %v9754_v18 }
 0x12e   :  { %v7514_v40 = vadd.f32 %v634_v27, %v284_v17  ;;  %5334 = vmatprep.mubr.msk.f32.mxu0 %vm6469_vm0, %v6468_v0  ;;  %5435 = vmatprep.mubr.msk.f32.mxu1 %vm6469_vm0, %v6468_v0  ;;  %v304_v33 = vadd.f32 %v7409_v61, %v303_v34  ;;  %v9762_v34 = vld [vmem:[#allocation29_spill] sm:$0xff] }
 0x12f   :  { %v4911_v55 = vpop.f32.mrf.mxu0  ;;  %v5012_v45 = vpop.f32.mrf.mxu1 }
 0x131   :  { %v313_v9 = vpop.f32.mrf.mxu0  ;;  %v640_v23 = vpop.f32.mrf.mxu1  ;;  %5335 = vmatmul.mubr.f32.gmra.mxu0 %v9757_v52  ;;  %5436 = vmatmul.mubr.f32.gmra.mxu1 %v9755_v26 }
 0x132   :  { %v7523_v48 = vadd.f32 %v640_v23, %v294_v47  ;;  %5337 = vmatprep.mubr.msk.f32.mxu0 %vm6469_vm0, %v6468_v0  ;;  %5438 = vmatprep.mubr.msk.f32.mxu1 %vm6469_vm0, %v6468_v0  ;;  %v314_v14 = vadd.f32 %v7409_v61, %v313_v9 }
 0x133   :  { %v4914_v38 = vpop.f32.mrf.mxu0  ;;  %v5015_v31 = vpop.f32.mrf.mxu1 }
 0x135   :  { %v323_v2 = vpop.f32.mrf.mxu0  ;;  %v646_v56 = vpop.f32.mrf.mxu1  ;;  %5338 = vmatmul.mubr.f32.gmra.mxu0 %v9758_v39  ;;  %5439 = vmatmul.mubr.f32.gmra.mxu1 %v9756_v43 }
 0x136   :  { %v7532_v51 = vadd.f32 %v646_v56, %v304_v33  ;;  %5340 = vmatprep.mubr.msk.f32.mxu0 %vm6469_vm0, %v6468_v0  ;;  %5441 = vmatprep.mubr.msk.f32.mxu1 %vm6469_vm0, %v6468_v0  ;;  %v324_v42 = vadd.f32 %v7409_v61, %v323_v2 }
 0x137   :  { %v4917_v1 = vpop.f32.mrf.mxu0  ;;  %v5018_v37 = vpop.f32.mrf.mxu1 }
 0x139   :  { %v333_v46 = vpop.f32.mrf.mxu0  ;;  %v652_v58 = vpop.f32.mrf.mxu1  ;;  %5341 = vmatmul.mubr.f32.gmra.mxu0 %v9759_v7  ;;  %5442 = vmatmul.mubr.f32.gmra.mxu1 %v9757_v52 }
 0x13a   :  { %v7541_v60 = vadd.f32 %v652_v58, %v314_v14  ;;  %5343 = vmatprep.mubr.msk.f32.mxu0 %vm6469_vm0, %v6468_v0  ;;  %5444 = vmatprep.mubr.msk.f32.mxu1 %vm6469_vm0, %v6468_v0  ;;  %v334_v4 = vadd.f32 %v7409_v61, %v333_v46 }
 0x13b   :  { %v4920_v63 = vpop.f32.mrf.mxu0  ;;  %v5021_v41 = vpop.f32.mrf.mxu1 }
 0x13d   :  { %v343_v15 = vpop.f32.mrf.mxu0  ;;  %v658_v24 = vpop.f32.mrf.mxu1  ;;  %5344 = vmatmul.mubr.f32.gmra.mxu0 %v9760_v13  ;;  %5445 = vmatmul.mubr.f32.gmra.mxu1 %v9758_v39 }
 0x13e   :  { %v7550_v5 = vadd.f32 %v658_v24, %v324_v42  ;;  %5346 = vmatprep.mubr.msk.f32.mxu0 %vm6469_vm0, %v6468_v0  ;;  %5447 = vmatprep.mubr.msk.f32.mxu1 %vm6469_vm0, %v6468_v0  ;;  %v344_v57 = vadd.f32 %v7409_v61, %v343_v15 }
 0x13f   :  { %v4923_v6 = vpop.f32.mrf.mxu0  ;;  %v5024_v18 = vpop.f32.mrf.mxu1 }
 0x141   :  { %v353_v10 = vpop.f32.mrf.mxu0  ;;  %v664_v11 = vpop.f32.mrf.mxu1  ;;  %5347 = vmatmul.mubr.f32.gmra.mxu0 %v9761_v28  ;;  %5448 = vmatmul.mubr.f32.gmra.mxu1 %v9759_v7 }
 0x142   :  { %v7559_v12 = vadd.f32 %v664_v11, %v334_v4  ;;  %5349 = vmatprep.mubr.msk.f32.mxu0 %vm6469_vm0, %v6468_v0  ;;  %5450 = vmatprep.mubr.msk.f32.mxu1 %vm6469_vm0, %v6468_v0  ;;  %v354_v27 = vadd.f32 %v7409_v61, %v353_v10 }
 0x143   :  { %v4926_v26 = vpop.f32.mrf.mxu0  ;;  %v5027_v17 = vpop.f32.mrf.mxu1 }
 0x145   :  { %v363_v25 = vpop.f32.mrf.mxu0  ;;  %v670_v53 = vpop.f32.mrf.mxu1  ;;  %5350 = vmatmul.mubr.f32.gmra.mxu0 %v9762_v34  ;;  %5451 = vmatmul.mubr.f32.gmra.mxu1 %v9760_v13 }
 0x146   :  { %v7568_v43 = vadd.f32 %v670_v53, %v344_v57  ;;  %5352 = vmatprep.mubr.msk.f32.mxu0 %vm6469_vm0, %v6468_v0  ;;  %5453 = vmatprep.mubr.msk.f32.mxu1 %vm6469_vm0, %v6468_v0  ;;  %v364_v23 = vadd.f32 %v7409_v61, %v363_v25 }
 0x147   :  { %v4929_v47 = vpop.f32.mrf.mxu0  ;;  %v5030_v55 = vpop.f32.mrf.mxu1 }
 0x149   :  { %v373_v45 = vpop.f32.mrf.mxu0  ;;  %v676_v9 = vpop.f32.mrf.mxu1  ;;  %5353 = vmatmul.mubr.f32.gmra.mxu0 %v6985_v49  ;;  %5454 = vmatmul.mubr.f32.gmra.mxu1 %v9761_v28 }
 0x14a   :  { %v7577_v52 = vadd.f32 %v676_v9, %v354_v27  ;;  %5355 = vmatprep.mubr.msk.f32.mxu0 %vm6469_vm0, %v6468_v0  ;;  %5456 = vmatprep.mubr.msk.f32.mxu1 %vm6469_vm0, %v6468_v0  ;;  %v374_v56 = vadd.f32 %v7409_v61, %v373_v45 }
 0x14b   :  { %v4932_v33 = vpop.f32.mrf.mxu0  ;;  %v5033_v38 = vpop.f32.mrf.mxu1 }
 0x14d   :  { %v383_v31 = vpop.f32.mrf.mxu0  ;;  %v682_v2 = vpop.f32.mrf.mxu1  ;;  %5356 = vmatmul.mubr.f32.gmra.mxu0 %v7013_v44  ;;  %5457 = vmatmul.mubr.f32.gmra.mxu1 %v9762_v34 }
 0x14e   :  { %v7586_v39 = vadd.f32 %v682_v2, %v364_v23  ;;  %5358 = vmatprep.mubr.msk.f32.mxu0 %vm6469_vm0, %v6468_v0  ;;  %5459 = vmatprep.mubr.msk.f32.mxu1 %vm6469_vm0, %v6468_v0  ;;  %v384_v58 = vadd.f32 %v7409_v61, %v383_v31 }
 0x14f   :  { %v4935_v14 = vpop.f32.mrf.mxu0  ;;  %v5036_v1 = vpop.f32.mrf.mxu1 }
 0x151   :  { %v393_v37 = vpop.f32.mrf.mxu0  ;;  %v688_v46 = vpop.f32.mrf.mxu1  ;;  %5359 = vmatmul.mubr.f32.gmra.mxu0 %v7031_v32  ;;  %5460 = vmatmul.mubr.f32.gmra.mxu1 %v6985_v49 }
 0x152   :  { %v7595_v7 = vadd.f32 %v688_v46, %v374_v56  ;;  %5361 = vmatprep.mubr.msk.f32.mxu0 %vm6469_vm0, %v6468_v0  ;;  %5462 = vmatprep.mubr.msk.f32.mxu1 %vm6469_vm0, %v6468_v0  ;;  %v394_v49 = vadd.f32 %v7409_v61, %v393_v37 }
 0x153   :  { %v4938_v42 = vpop.f32.mrf.mxu0  ;;  %v5039_v63 = vpop.f32.mrf.mxu1 }
 0x155   :  { %v403_v41 = vpop.f32.mrf.mxu0  ;;  %v694_v15 = vpop.f32.mrf.mxu1  ;;  %5362 = vmatmul.mubr.f32.gmra.mxu0 %v7039_v19  ;;  %5463 = vmatmul.mubr.f32.gmra.mxu1 %v7013_v44 }
 0x156   :  { %v7604_v24 = vadd.f32 %v694_v15, %v384_v58  ;;  %5364 = vmatprep.mubr.msk.f32.mxu0 %vm6469_vm0, %v6468_v0  ;;  %5465 = vmatprep.mubr.msk.f32.mxu1 %vm6469_vm0, %v6468_v0  ;;  %v404_v44 = vadd.f32 %v7409_v61, %v403_v41 }
 0x157   :  { %v4941_v13 = vpop.f32.mrf.mxu0  ;;  %v5042_v4 = vpop.f32.mrf.mxu1 }
 0x159   :  { %v413_v6 = vpop.f32.mrf.mxu0  ;;  %v700_v18 = vpop.f32.mrf.mxu1  ;;  %5365 = vmatmul.mubr.f32.gmra.mxu0 %v7057_v35  ;;  %5466 = vmatmul.mubr.f32.gmra.mxu1 %v7031_v32 }
 0x15a   :  { %v7613_v10 = vadd.f32 %v700_v18, %v394_v49  ;;  %5367 = vmatprep.mubr.msk.f32.mxu0 %vm6469_vm0, %v6468_v0  ;;  %5468 = vmatprep.mubr.msk.f32.mxu1 %vm6469_vm0, %v6468_v0  ;;  %v414_v32 = vadd.f32 %v7409_v61, %v413_v6 }
 0x15b   :  { %v4944_v11 = vpop.f32.mrf.mxu0  ;;  %v5045_v28 = vpop.f32.mrf.mxu1 }
 0x15d   :  { %v423_v57 = vpop.f32.mrf.mxu0  ;;  %v706_v26 = vpop.f32.mrf.mxu1  ;;  %5368 = vmatmul.mubr.f32.gmra.mxu0 %v7075_v54  ;;  %5469 = vmatmul.mubr.f32.gmra.mxu1 %v7039_v19 }
 0x15e   :  { %v7622_v17 = vadd.f32 %v706_v26, %v404_v44  ;;  %5370 = vmatprep.mubr.msk.f32.mxu0 %vm6469_vm0, %v6468_v0  ;;  %5471 = vmatprep.mubr.msk.f32.mxu1 %vm6469_vm0, %v6468_v0  ;;  %v424_v19 = vadd.f32 %v7409_v61, %v423_v57 }
 0x15f   :  { %v4947_v25 = vpop.f32.mrf.mxu0  ;;  %v5048_v53 = vpop.f32.mrf.mxu1 }
 0x161   :  { %v712_v34 = vpop.f32.mrf.mxu1  ;;  %v822_v27 = vpop.f32.mrf.mxu0  ;;  %5371 = vmatmul.mubr.f32.gmra.mxu0 %v7101_v50  ;;  %5472 = vmatmul.mubr.f32.gmra.mxu1 %v7057_v35 }
 0x162   :  { %v7631_v47 = vadd.f32 %v712_v34, %v414_v32  ;;  %v823_v55 = vadd.f32 %v822_v27, %v7423_v3  ;;  %5373 = vmatprep.mubr.msk.f32.mxu0 %vm6469_vm0, %v6468_v0  ;;  %5474 = vmatprep.mubr.msk.f32.mxu1 %vm6469_vm0, %v6468_v0 }
 0x163   :  { %v5051_v45 = vpop.f32.mrf.mxu1  ;;  %v5089_v9 = vpop.f32.mrf.mxu0 }
 0x165   :  { %v718_v23 = vpop.f32.mrf.mxu1  ;;  %v829_v33 = vpop.f32.mrf.mxu0  ;;  %5374 = vmatmul.mubr.f32.gmra.mxu0 %v7115_v8  ;;  %5475 = vmatmul.mubr.f32.gmra.mxu1 %v7075_v54 }
 0x166   :  { %v7640_v35 = vadd.f32 %v718_v23, %v424_v19  ;;  %v830_v61 = vadd.f32 %v829_v33, %v7433_v21  ;;  %5477 = vmatprep.mubr.msk.f32.mxu1 %vm6469_vm0, %v6468_v0  ;;  %5515 = vmatprep.mubr.msk.f32.mxu0 %vm6469_vm0, %v6468_v0  ;;  %v1839_v33 = vld [vmem:[#allocation4 + $0x78] sm:$0xff] }
 0x167   :  { %v5054_v3 = vpop.f32.mrf.mxu1  ;;  %v5092_v38 = vpop.f32.mrf.mxu0 }
 0x168   :  { %v7674_v3 = vand.u32 4294901760, %v1839_v33 }
 0x169   :  { %v836_v31 = vpop.f32.mrf.mxu0  ;;  %v1079_v2 = vpop.f32.mrf.mxu1  ;;  %5478 = vmatmul.mubr.f32.gmra.mxu1 %v7101_v50 }
 0x16a   :  { %v837_v56 = vadd.f32 %v836_v31, %v7442_v22  ;;  %v7649_v14 = vadd.f32 %v1079_v2, %v823_v55  ;;  %5480 = vmatprep.mubr.msk.f32.mxu1 %vm6469_vm0, %v6468_v0  ;;  %5484 = vmatpush3.msra.mxu0 %v7674_v3 }
 0x16b   :  { %v5095_v54 = vpop.f32.mrf.mxu0  ;;  %v5196_v21 = vpop.f32.mrf.mxu1  ;;  %5485 = vmatprep.subr.mxu0 %v6468_v0 }
 0x16d   :  { %v843_v1 = vpop.f32.mrf.mxu0  ;;  %v1087_v37 = vpop.f32.mrf.mxu1  ;;  %5481 = vmatmul.mubr.f32.gmra.mxu1 %v7115_v8 }
 0x16e   :  { %v844_v46 = vadd.f32 %v843_v1, %v7451_v62  ;;  %v7655_v58 = vadd.f32 %v1087_v37, %v830_v61  ;;  %5550 = vmatprep.mubr.msk.f32.mxu1 %vm6469_vm0, %v6468_v0 }
 0x16f   :  { %v5098_v50 = vpop.f32.mrf.mxu0  ;;  %v5199_v22 = vpop.f32.mrf.mxu1 }
 0x171   :  { %v850_v42 = vpop.f32.mrf.mxu0  ;;  %v1095_v63 = vpop.f32.mrf.mxu1 }
 0x172   :  { %v851_v41 = vadd.f32 %v850_v42, %v7460_v59  ;;  %v7660_v15 = vadd.f32 %v1095_v63, %v837_v56  ;;  %v1838_v42 = vld [vmem:[#allocation4 + $0x70] sm:$0xff] }
 0x173   :  { %v5101_v49 = vpop.f32.mrf.mxu0  ;;  %v5202_v13 = vpop.f32.mrf.mxu1 }
 0x174   :  { %v7691_v49 = vand.u32 4294901760, %v1838_v42 }
 0x175   :  { %v857_v4 = vpop.f32.mrf.mxu0  ;;  %v1103_v6 = vpop.f32.mrf.mxu1 }
 0x176   :  { %v858_v8 = vadd.f32 %v857_v4, %v7469_v29  ;;  %v7663_v62 = vadd.f32 %v1103_v6, %v844_v46  ;;  %5486 = vmatpush3.msra.mxu0 %v7691_v49  ;;  %v7695_v6 = vsub.f32 %v1838_v42, %v7691_v49  ;;  %v1835_v42 = vld [vmem:[#allocation4 + $0x58] sm:$0xff] }
 0x177   :  { %v5104_v18 = vpop.f32.mrf.mxu0  ;;  %v5205_v44 = vpop.f32.mrf.mxu1  ;;  %5487 = vmatprep.subr.mxu0 %v6468_v0 }
 0x179   :  { %v864_v11 = vpop.f32.mrf.mxu0  ;;  %v1111_v28 = vpop.f32.mrf.mxu1 }
 0x17a   :  { %v865_v57 = vadd.f32 %v864_v11, %v7478_v36  ;;  %v7666_v26 = vadd.f32 %v1111_v28, %v851_v41  ;;  %v9550_v28 = vand.u32 4294901760, %v7695_v6 }
 0x17b   :  { %v5107_v32 = vpop.f32.mrf.mxu0  ;;  %v5208_v59 = vpop.f32.mrf.mxu1 }
 0x17d   :  { %v871_v25 = vpop.f32.mrf.mxu0  ;;  %v1119_v53 = vpop.f32.mrf.mxu1 }
 0x17e   :  { %v872_v34 = vadd.f32 %v871_v25, %v7487_v16  ;;  %v7669_v27 = vadd.f32 %v1119_v53, %v858_v8  ;;  %v7678_v16 = vsub.f32 %v1839_v33, %v7674_v3  ;;  %v1942_v25 = vsub.f32 %v7695_v6, %v9550_v28 }
 0x17f   :  { %v5110_v19 = vpop.f32.mrf.mxu0  ;;  %v5211_v29 = vpop.f32.mrf.mxu1 }
 0x180   :  { %v9552_v21 = vand.u32 4294901760, %v7678_v16 }
 0x181   :  { %v878_v55 = vpop.f32.mrf.mxu0  ;;  %v1127_v45 = vpop.f32.mrf.mxu1 }
 0x182   :  { %v879_v9 = vadd.f32 %v878_v55, %v7496_v20  ;;  %v7672_v23 = vadd.f32 %v1127_v45, %v865_v57  ;;  %v1935_v46 = vsub.f32 %v7678_v16, %v9552_v21  ;;  %v1943_v55 = vand.u32 4294901760, %v1942_v25 }
 0x183   :  { %v5113_v36 = vpop.f32.mrf.mxu0  ;;  %v5214_v61 = vpop.f32.mrf.mxu1 }
 0x184   :  { %v1936_v41 = vand.u32 4294901760, %v1935_v46 }
 0x185   :  { %v885_v38 = vpop.f32.mrf.mxu0  ;;  %v1135_v31 = vpop.f32.mrf.mxu1 }
 0x186   :  { %v886_v2 = vadd.f32 %v885_v38, %v7505_v30  ;;  %v7681_v56 = vadd.f32 %v1135_v31, %v872_v34  ;;  %5519 = vmatpush3.msra.mxu1 %v1936_v41 }
 0x187   :  { %v5116_v20 = vpop.f32.mrf.mxu0  ;;  %v5217_v54 = vpop.f32.mrf.mxu1  ;;  %5520 = vmatprep.subr.mxu1 %v6468_v0 }
 0x188   :  { %5521 = vmatpush3.msra.mxu1 %v1943_v55 }
 0x189   :  { %v892_v1 = vpop.f32.mrf.mxu0  ;;  %v1143_v37 = vpop.f32.mrf.mxu1  ;;  %5522 = vmatprep.subr.mxu1 %v6468_v0 }
 0x18a   :  { %v893_v50 = vadd.f32 %v892_v1, %v7514_v40  ;;  %v7689_v22 = vadd.f32 %v1143_v37, %v879_v9  ;;  %v1837_v40 = vld [vmem:[#allocation4 + $0x68] sm:$0xff] }
 0x18b   :  { %v5119_v30 = vpop.f32.mrf.mxu0  ;;  %v5220_v63 = vpop.f32.mrf.mxu1  ;;  %v7703_v57 = vand.u32 4294901760, %v1837_v40 }
 0x18d   :  { %v899_v13 = vpop.f32.mrf.mxu0  ;;  %v1151_v4 = vpop.f32.mrf.mxu1  ;;  %5488 = vmatpush3.msra.mxu0 %v7703_v57 }
 0x18e   :  { %v900_v8 = vadd.f32 %v899_v13, %v7523_v48  ;;  %v7698_v18 = vadd.f32 %v1151_v4, %v886_v2  ;;  %v7710_v48 = vsub.f32 %v1837_v40, %v7703_v57  ;;  %5489 = vmatprep.subr.mxu0 %v6468_v0  ;;  %v7736_v13 = vand.u32 4294901760, %v1835_v42 }
 0x18f   :  { %v5122_v44 = vpop.f32.mrf.mxu0  ;;  %v5223_v11 = vpop.f32.mrf.mxu1 }
 0x190   :  { %v9549_v45 = vand.u32 4294901760, %v7710_v48 }
 0x191   :  { %v906_v32 = vpop.f32.mrf.mxu0  ;;  %v1159_v59 = vpop.f32.mrf.mxu1 }
 0x192   :  { %v907_v53 = vadd.f32 %v906_v32, %v7532_v51  ;;  %v7713_v34 = vadd.f32 %v1159_v59, %v893_v50  ;;  %v1949_v36 = vsub.f32 %v7710_v48, %v9549_v45  ;;  %v1836_v51 = vld [vmem:[#allocation4 + $0x60] sm:$0xff] }
 0x193   :  { %v5125_v19 = vpop.f32.mrf.mxu0  ;;  %v5226_v29 = vpop.f32.mrf.mxu1  ;;  %v7724_v54 = vand.u32 4294901760, %v1836_v51 }
 0x194   :  { %v1950_v20 = vand.u32 4294901760, %v1949_v36 }
 0x195   :  { %v913_v9 = vpop.f32.mrf.mxu0  ;;  %v1167_v33 = vpop.f32.mrf.mxu1  ;;  %5490 = vmatpush3.msra.mxu0 %v7724_v54  ;;  %v7728_v46 = vsub.f32 %v1836_v51, %v7724_v54 }
 0x196   :  { %v914_v61 = vadd.f32 %v913_v9, %v7541_v60  ;;  %v7721_v38 = vadd.f32 %v1167_v33, %v900_v8  ;;  %5523 = vmatpush3.msra.mxu1 %v1950_v20  ;;  %5491 = vmatprep.subr.mxu0 %v6468_v0 }
 0x197   :  { %v5128_v31 = vpop.f32.mrf.mxu0  ;;  %v5229_v2 = vpop.f32.mrf.mxu1  ;;  %5524 = vmatprep.subr.mxu1 %v6468_v0  ;;  %v9548_v41 = vand.u32 4294901760, %v7728_v46  ;;  %5492 = vmatpush3.msra.mxu0 %v7736_v13 }
 0x198   :  { %5493 = vmatprep.subr.mxu0 %v6468_v0 }
 0x199   :  { %v920_v1 = vpop.f32.mrf.mxu0  ;;  %v1175_v37 = vpop.f32.mrf.mxu1  ;;  %v1956_v40 = vsub.f32 %v7728_v46, %v9548_v41 }
 0x19a   :  { %v921_v60 = vadd.f32 %v920_v1, %v7550_v5  ;;  %v7731_v50 = vadd.f32 %v1175_v37, %v907_v53  ;;  %v7743_v5 = vsub.f32 %v1835_v42, %v7736_v13 }
 0x19b   :  { %v5131_v30 = vpop.f32.mrf.mxu0  ;;  %v5232_v63 = vpop.f32.mrf.mxu1  ;;  %v1957_v25 = vand.u32 4294901760, %v1956_v40 }
 0x19c   :  { %v9547_v53 = vand.u32 4294901760, %v7743_v5 }
 0x19d   :  { %v927_v4 = vpop.f32.mrf.mxu0  ;;  %v1183_v8 = vpop.f32.mrf.mxu1  ;;  %5525 = vmatpush3.msra.mxu1 %v1957_v25 }
 0x19e   :  { %v928_v44 = vadd.f32 %v927_v4, %v7559_v12  ;;  %v7746_v11 = vadd.f32 %v1183_v8, %v914_v61  ;;  %v1963_v55 = vsub.f32 %v7743_v5, %v9547_v53  ;;  %5526 = vmatprep.subr.mxu1 %v6468_v0  ;;  %v1834_v12 = vld [vmem:[#allocation4 + $0x50] sm:$0xff] }
 0x19f   :  { %v5134_v32 = vpop.f32.mrf.mxu0  ;;  %v5235_v59 = vpop.f32.mrf.mxu1  ;;  %v7757_v31 = vand.u32 4294901760, %v1834_v12 }
 0x1a0   :  { %v1964_v51 = vand.u32 4294901760, %v1963_v55 }
 0x1a1   :  { %v934_v19 = vpop.f32.mrf.mxu0  ;;  %v1191_v29 = vpop.f32.mrf.mxu1  ;;  %5494 = vmatpush3.msra.mxu0 %v7757_v31  ;;  %v7761_v1 = vsub.f32 %v1834_v12, %v7757_v31 }
 0x1a2   :  { %v935_v9 = vadd.f32 %v934_v19, %v7568_v43  ;;  %v7754_v33 = vadd.f32 %v1191_v29, %v921_v60  ;;  %5527 = vmatpush3.msra.mxu1 %v1964_v51  ;;  %5495 = vmatprep.subr.mxu0 %v6468_v0 }
 0x1a3   :  { %v5137_v36 = vpop.f32.mrf.mxu0  ;;  %v5238_v61 = vpop.f32.mrf.mxu1  ;;  %5528 = vmatprep.subr.mxu1 %v6468_v0  ;;  %v9545_v30 = vand.u32 4294901760, %v7761_v1 }
 0x1a5   :  { %v941_v2 = vpop.f32.mrf.mxu0  ;;  %v1199_v20 = vpop.f32.mrf.mxu1  ;;  %v1970_v8 = vsub.f32 %v7761_v1, %v9545_v30 }
 0x1a6   :  { %v942_v43 = vadd.f32 %v941_v2, %v7577_v52  ;;  %v7764_v37 = vadd.f32 %v1199_v20, %v928_v44  ;;  %v1833_v52 = vld [vmem:[#allocation4 + $0x48] sm:$0xff] }
 0x1a7   :  { %v5140_v60 = vpop.f32.mrf.mxu0  ;;  %v5241_v42 = vpop.f32.mrf.mxu1  ;;  %v1971_v25 = vand.u32 4294901760, %v1970_v8  ;;  %v7775_v19 = vand.u32 4294901760, %v1833_v52 }
 0x1a9   :  { %v948_v63 = vpop.f32.mrf.mxu0  ;;  %v1207_v4 = vpop.f32.mrf.mxu1  ;;  %5529 = vmatpush3.msra.mxu1 %v1971_v25  ;;  %5496 = vmatpush3.msra.mxu0 %v7775_v19  ;;  %v7779_v12 = vsub.f32 %v1833_v52, %v7775_v19  ;;  %v1831_v25 = vld [vmem:[#allocation4 + $0x38] sm:$0xff] }
 0x1aa   :  { %v949_v40 = vadd.f32 %v948_v63, %v7586_v39  ;;  %v7773_v32 = vadd.f32 %v1207_v4, %v935_v9  ;;  %5530 = vmatprep.subr.mxu1 %v6468_v0  ;;  %5497 = vmatprep.subr.mxu0 %v6468_v0  ;;  %v1832_v39 = vld [vmem:[#allocation4 + $0x40] sm:$0xff] }
 0x1ab   :  { %v5143_v44 = vpop.f32.mrf.mxu0  ;;  %v5244_v59 = vpop.f32.mrf.mxu1  ;;  %v9544_v2 = vand.u32 4294901760, %v7779_v12  ;;  %v7787_v20 = vand.u32 4294901760, %v1832_v39 }
 0x1ad   :  { %v955_v29 = vpop.f32.mrf.mxu0  ;;  %v1215_v55 = vpop.f32.mrf.mxu1  ;;  %v1977_v63 = vsub.f32 %v7779_v12, %v9544_v2  ;;  %5498 = vmatpush3.msra.mxu0 %v7787_v20 }
 0x1ae   :  { %v956_v36 = vadd.f32 %v955_v29, %v7595_v7  ;;  %v7782_v61 = vadd.f32 %v1215_v55, %v942_v43  ;;  %v7794_v7 = vsub.f32 %v1832_v39, %v7787_v20  ;;  %5499 = vmatprep.subr.mxu0 %v6468_v0  ;;  %v7801_v29 = vand.u32 4294901760, %v1831_v25 }
 0x1af   :  { %v5146_v9 = vpop.f32.mrf.mxu0  ;;  %v5247_v51 = vpop.f32.mrf.mxu1  ;;  %v1978_v44 = vand.u32 4294901760, %v1977_v63 }
 0x1b0   :  { %v9543_v59 = vand.u32 4294901760, %v7794_v7  ;;  %5500 = vmatpush3.msra.mxu0 %v7801_v29 }
 0x1b1   :  { %v962_v60 = vpop.f32.mrf.mxu0  ;;  %v1223_v42 = vpop.f32.mrf.mxu1  ;;  %5531 = vmatpush3.msra.mxu1 %v1978_v44  ;;  %5501 = vmatprep.subr.mxu0 %v6468_v0  ;;  %v1829_v44 = vld [vmem:[#allocation4 + $0x28] sm:$0xff] }
 0x1b2   :  { %v963_v43 = vadd.f32 %v962_v60, %v7604_v24  ;;  %v7797_v4 = vadd.f32 %v1223_v42, %v949_v40  ;;  %v1984_v39 = vsub.f32 %v7794_v7, %v9543_v59  ;;  %v1830_v24 = vld [vmem:[#allocation4 + $0x30] sm:$0xff]  ;;  %5532 = vmatprep.subr.mxu1 %v6468_v0  ;;  %v7812_v60 = vsub.f32 %v1831_v25, %v7801_v29 }
 0x1b3   :  { %v5149_v8 = vpop.f32.mrf.mxu0  ;;  %v5250_v52 = vpop.f32.mrf.mxu1  ;;  %v7814_v42 = vand.u32 4294901760, %v1830_v24 }
 0x1b4   :  { %9763 = vst [vmem:[#allocation21_spill] sm:$0xff] %v7812_v60  ;;  %v1985_v52 = vand.u32 4294901760, %v1984_v39  ;;  %v9546_v59 = vand.u32 4294901760, %v7812_v60 }
 0x1b5   :  { %v969_v55 = vpop.f32.mrf.mxu0  ;;  %v1231_v9 = vpop.f32.mrf.mxu1  ;;  %5502 = vmatpush3.msra.mxu0 %v7814_v42 }
 0x1b6   :  { %v970_v40 = vadd.f32 %v969_v55, %v7613_v10  ;;  %v7807_v51 = vadd.f32 %v1231_v9, %v956_v36  ;;  %v7820_v10 = vsub.f32 %v1830_v24, %v7814_v42  ;;  %v7822_v36 = vand.u32 4294901760, %v1829_v44  ;;  %5533 = vmatpush3.msra.mxu1 %v1985_v52  ;;  %5503 = vmatprep.subr.mxu0 %v6468_v0  ;;  %v1828_v9 = vld [vmem:[#allocation4 + $0x20] sm:$0xff] }
 0x1b7   :  { %v5152_v63 = vpop.f32.mrf.mxu0  ;;  %v5253_v8 = vpop.f32.mrf.mxu1  ;;  %5534 = vmatprep.subr.mxu1 %v6468_v0 }
 0x1b8   :  { %9764 = vst [vmem:[#allocation23_spill] sm:$0xff] %v7820_v10  ;;  %v1991_v8 = vsub.f32 %v7812_v60, %v9546_v59  ;;  %v9551_v24 = vand.u32 4294901760, %v7820_v10  ;;  %5504 = vmatpush3.msra.mxu0 %v7822_v36  ;;  %v7835_v52 = vsub.f32 %v1829_v44, %v7822_v36  ;;  %v1826_v44 = vld [vmem:[#allocation4 + $0x10] sm:$0xff] }
 0x1b9   :  { %v976_v55 = vpop.f32.mrf.mxu0  ;;  %v1239_v25 = vpop.f32.mrf.mxu1  ;;  %5505 = vmatprep.subr.mxu0 %v6468_v0 }
 0x1ba   :  { %v977_v39 = vadd.f32 %v976_v55, %v7622_v17  ;;  %v7826_v63 = vadd.f32 %v1239_v25, %v963_v43  ;;  %9765 = vst [vmem:[#allocation25_spill] sm:$0xff] %v7835_v52  ;;  %v7838_v17 = vand.u32 4294901760, %v1828_v9  ;;  %v1827_v43 = vld [vmem:[#allocation4 + $0x18] sm:$0xff]  ;;  %v1992_v55 = vand.u32 4294901760, %v1991_v8 }
 0x1bb   :  { %v5155_v2 = vpop.f32.mrf.mxu0  ;;  %v5256_v30 = vpop.f32.mrf.mxu1  ;;  %v1998_v25 = vsub.f32 %v7820_v10, %v9551_v24  ;;  %v7843_v59 = vand.u32 4294901760, %v1827_v43 }
 0x1bc   :  { %9766 = vst [vmem:[#allocation26_spill] sm:$0xff] %v7838_v17  ;;  %v9557_v2 = vand.u32 4294901760, %v7835_v52  ;;  %5506 = vmatpush3.msra.mxu0 %v7838_v17  ;;  %v7848_v30 = vsub.f32 %v1828_v9, %v7838_v17  ;;  %5535 = vmatpush3.msra.mxu1 %v1992_v55 }
 0x1bd   :  { %9767 = vst [vmem:[#allocation28_spill] sm:$0xff] %v7843_v59  ;;  %v983_v53 = vpop.f32.mrf.mxu0  ;;  %v1247_v41 = vpop.f32.mrf.mxu1  ;;  %v1999_v8 = vand.u32 4294901760, %v1998_v25  ;;  %5507 = vmatprep.subr.mxu0 %v6468_v0  ;;  %v7855_v24 = vsub.f32 %v1827_v43, %v7843_v59  ;;  %5536 = vmatprep.subr.mxu1 %v6468_v0 }
 0x1be   :  { %9768 = vst [vmem:[#allocation30_spill] sm:$0xff] %v7848_v30  ;;  %v984_v45 = vadd.f32 %v983_v53, %v7631_v47  ;;  %v7851_v28 = vadd.f32 %v1247_v41, %v970_v40  ;;  %v2005_v9 = vsub.f32 %v7835_v52, %v9557_v2  ;;  %v9562_v60 = vand.u32 4294901760, %v7848_v30  ;;  %5508 = vmatpush3.msra.mxu0 %v7843_v59  ;;  %v1825_v41 = vld [vmem:[#allocation4 + $0x8] sm:$0xff] }
 0x1bf   :  { %9769 = vst [vmem:[#allocation31_spill] sm:$0xff] %v7855_v24  ;;  %v5158_v21 = vpop.f32.mrf.mxu0  ;;  %v5259_v10 = vpop.f32.mrf.mxu1  ;;  %v7863_v47 = vand.u32 4294901760, %v1826_v44  ;;  %5537 = vmatpush3.msra.mxu1 %v1999_v8  ;;  %5509 = vmatprep.subr.mxu0 %v6468_v0  ;;  %v1824_v8 = vld [vmem:[#allocation4] sm:$0xff]  ;;  %v9772_v52 = vand.u32 4294901760, %v7855_v24 }
 0x1c0   :  { %v7867_v21 = vand.u32 4294901760, %v1825_v41  ;;  %5538 = vmatprep.subr.mxu1 %v6468_v0  ;;  %v2006_v43 = vand.u32 4294901760, %v2005_v9  ;;  %v2012_v55 = vsub.f32 %v7848_v30, %v9562_v60 }
 0x1c1   :  { %v990_v40 = vpop.f32.mrf.mxu0  ;;  %v1255_v10 = vpop.f32.mrf.mxu1  ;;  %5510 = vmatpush3.msra.mxu0 %v7863_v47  ;;  %v7875_v25 = vsub.f32 %v1826_v44, %v7863_v47  ;;  %v2019_v59 = vsub.f32 %v7855_v24, %v9772_v52 }
 0x1c2   :  { %9770 = vst [vmem:[#allocation32_spill] sm:$0xff] %v7867_v21  ;;  %v991_v2 = vadd.f32 %v990_v40, %v7640_v35  ;;  %v7878_v53 = vadd.f32 %v1255_v10, %v977_v39  ;;  %5511 = vmatprep.subr.mxu0 %v6468_v0  ;;  %v7885_v9 = vsub.f32 %v1825_v41, %v7867_v21  ;;  %v2013_v17 = vand.u32 4294901760, %v2012_v55 }
 0x1c3   :  { %9771 = vst [vmem:[#allocation33_spill] sm:$0xff] %v7875_v25  ;;  %v5161_v60 = vpop.f32.mrf.mxu0  ;;  %v5262_v30 = vpop.f32.mrf.mxu1  ;;  %5539 = vmatpush3.msra.mxu1 %v2006_v43  ;;  %v9567_v44 = vand.u32 4294901760, %v7875_v25  ;;  %5512 = vmatpush3.msra.mxu0 %v7867_v21  ;;  %v7889_v35 = vand.u32 4294901760, %v1824_v8  ;;  %v2020_v39 = vand.u32 4294901760, %v2019_v59 }
 0x1c4   :  { %9773 = vst [vmem:[#allocation8_spill] sm:$0xff] %v7885_v9  ;;  %5540 = vmatprep.subr.mxu1 %v6468_v0  ;;  %v9572_v52 = vand.u32 4294901760, %v7885_v9  ;;  %5513 = vmatprep.subr.mxu0 %v6468_v0 }
 0x1c5   :  { %9774 = vst [vmem:[#allocation9_spill] sm:$0xff] %v7889_v35  ;;  %v1263_v40 = vpop.f32.mrf.mxu1  ;;  %v1390_v41 = vpop.f32.mrf.mxu0  ;;  %5541 = vmatpush3.msra.mxu1 %v2013_v17  ;;  %v2026_v60 = vsub.f32 %v7875_v25, %v9567_v44  ;;  %v7898_v30 = vsub.f32 %v1824_v8, %v7889_v35  ;;  %5514 = vmatpush3.msra.mxu0 %v7889_v35 }
 0x1c6   :  { %v7901_v10 = vadd.f32 %v1263_v40, %v984_v45  ;;  %5542 = vmatprep.subr.mxu1 %v6468_v0  ;;  %v2033_v59 = vsub.f32 %v7885_v9, %v9572_v52  ;;  %5553 = vmatprep.subr.mxu0 %v6468_v0 }
 0x1c7   :  { %9775 = vst [vmem:[#allocation10_spill] sm:$0xff] %v7898_v30  ;;  %v5265_v17 = vpop.f32.mrf.mxu1  ;;  %v5303_v43 = vpop.f32.mrf.mxu0  ;;  %5543 = vmatpush3.msra.mxu1 %v2020_v39  ;;  %v2027_v55 = vand.u32 4294901760, %v2026_v60  ;;  %v9575_v44 = vand.u32 4294901760, %v7898_v30  ;;  %v1391_v60 = vadd.f32 %v1390_v41, %v7649_v14 }
 0x1c8   :  { %5544 = vmatprep.subr.mxu1 %v6468_v0  ;;  %v2034_v8 = vand.u32 4294901760, %v2033_v59 }
 0x1c9   :  { %v1271_v25 = vpop.f32.mrf.mxu1  ;;  %v1396_v45 = vpop.f32.mrf.mxu0  ;;  %5545 = vmatpush3.msra.mxu1 %v2027_v55  ;;  %v2040_v40 = vsub.f32 %v7898_v30, %v9575_v44 }
 0x1ca   :  { %v7913_v24 = vadd.f32 %v1271_v25, %v991_v2  ;;  %5546 = vmatprep.subr.mxu1 %v6468_v0  ;;  %v1397_v2 = vadd.f32 %v1396_v45, %v7655_v58 }
 0x1cb   :  { %v5268_v17 = vpop.f32.mrf.mxu1  ;;  %v5306_v43 = vpop.f32.mrf.mxu0  ;;  %5547 = vmatpush3.msra.mxu1 %v2034_v8  ;;  %v2041_v39 = vand.u32 4294901760, %v2040_v40 }
 0x1cc   :  { %5548 = vmatprep.subr.mxu1 %v6468_v0 }
 0x1cd   :  { %v1402_v59 = vpop.f32.mrf.mxu0  ;;  %v1621_v52 = vpop.f32.mrf.mxu1  ;;  %5549 = vmatpush3.msra.mxu1 %v2041_v39 }
 0x1ce   :  { %5588 = vmatprep.subr.mxu1 %v6468_v0  ;;  %v1622_v55 = vadd.f32 %v1621_v52, %v1391_v60  ;;  %v1403_v43 = vadd.f32 %v1402_v59, %v7660_v15 }
 0x1cf   :  { %v5309_v9 = vpop.f32.mrf.mxu0  ;;  %v5410_v44 = vpop.f32.mrf.mxu1 }
 0x1d0   :  { %6341 = vtanh.f32 %v1622_v55 }
 0x1d1   :  { %v1408_v25 = vpop.f32.mrf.mxu0  ;;  %v1627_v30 = vpop.f32.mrf.mxu1 }
 0x1d2   :  { %v1628_v17 = vadd.f32 %v1627_v30, %v1397_v2  ;;  %v1409_v52 = vadd.f32 %v1408_v25, %v7663_v62 }
 0x1d3   :  { %v5312_v8 = vpop.f32.mrf.mxu0  ;;  %v5413_v40 = vpop.f32.mrf.mxu1 }
 0x1d4   :  { %6343 = vtanh.f32 %v1628_v17 }
 0x1d5   :  { %v1414_v14 = vpop.f32.mrf.mxu0  ;;  %v1633_v41 = vpop.f32.mrf.mxu1 }
 0x1d6   :  { %v1634_v35 = vadd.f32 %v1633_v41, %v1403_v43  ;;  %v1415_v30 = vadd.f32 %v1414_v14, %v7666_v26 }
 0x1d7   :  { %v5315_v39 = vpop.f32.mrf.mxu0  ;;  %v5416_v21 = vpop.f32.mrf.mxu1 }
 0x1d8   :  { %6345 = vtanh.f32 %v1634_v35 }
 0x1d9   :  { %v1420_v9 = vpop.f32.mrf.mxu0  ;;  %v1639_v44 = vpop.f32.mrf.mxu1 }
 0x1da   :  { %v1640_v58 = vadd.f32 %v1639_v44, %v1409_v52  ;;  %v1421_v40 = vadd.f32 %v1420_v9, %v7669_v27 }
 0x1db   :  { %v5318_v45 = vpop.f32.mrf.mxu0  ;;  %v5419_v60 = vpop.f32.mrf.mxu1 }
 0x1dc   :  { %6347 = vtanh.f32 %v1640_v58 }
 0x1dd   :  { %v1426_v55 = vpop.f32.mrf.mxu0  ;;  %v1645_v2 = vpop.f32.mrf.mxu1 }
 0x1de   :  { %v1646_v15 = vadd.f32 %v1645_v2, %v1415_v30  ;;  %v6342_v8 = vpop.eup %6341  ;;  %v1427_v52 = vadd.f32 %v1426_v55, %v7672_v23 }
 0x1df   :  { %v5321_v59 = vpop.f32.mrf.mxu0  ;;  %v5422_v17 = vpop.f32.mrf.mxu1 }
 0x1e0   :  { %6349 = vtanh.f32 %v1646_v15 }
 0x1e1   :  { %v6344_v21 = vpop.eup %6343  ;;  %v1432_v62 = vpop.f32.mrf.mxu0 }
 0x1e2   :  { %v1651_v35 = vpop.f32.mrf.mxu1  ;;  %v1794_v25 = vadd.f32 %v6344_v21, %v6342_v8  ;;  %v1433_v27 = vadd.f32 %v1432_v62, %v7681_v56 }
 0x1e3   :  { %v1652_v43 = vadd.f32 %v1651_v35, %v1421_v40  ;;  %v5324_v41 = vpop.f32.mrf.mxu0 }
 0x1e4   :  { %v5425_v39 = vpop.f32.mrf.mxu1 }
 0x1e5   :  { %6351 = vtanh.f32 %v1652_v43  ;;  %v6346_v26 = vpop.eup %6345  ;;  %v1438_v14 = vpop.f32.mrf.mxu0 }
 0x1e6   :  { %v1657_v44 = vpop.f32.mrf.mxu1  ;;  %v1795_v58 = vadd.f32 %v6346_v26, %v1794_v25  ;;  %v1439_v23 = vadd.f32 %v1438_v14, %v7689_v22 }
 0x1e7   :  { %v1658_v45 = vadd.f32 %v1657_v44, %v1427_v52  ;;  %v5327_v60 = vpop.f32.mrf.mxu0 }
 0x1e8   :  { %v5428_v30 = vpop.f32.mrf.mxu1 }
 0x1e9   :  { %6353 = vtanh.f32 %v1658_v45  ;;  %v6348_v9 = vpop.eup %6347  ;;  %v1444_v2 = vpop.f32.mrf.mxu0 }
 0x1ea   :  { %v1663_v15 = vpop.f32.mrf.mxu1  ;;  %v1796_v59 = vadd.f32 %v6348_v9, %v1795_v58  ;;  %v1445_v56 = vadd.f32 %v1444_v2, %v7698_v18 }
 0x1eb   :  { %v1664_v17 = vadd.f32 %v1663_v15, %v1433_v27  ;;  %v5330_v8 = vpop.f32.mrf.mxu0 }
 0x1ec   :  { %v5431_v40 = vpop.f32.mrf.mxu1 }
 0x1ed   :  { %6355 = vtanh.f32 %v1664_v17  ;;  %v6350_v55 = vpop.eup %6349  ;;  %v1450_v21 = vpop.f32.mrf.mxu0 }
 0x1ee   :  { %v1669_v35 = vpop.f32.mrf.mxu1  ;;  %v1797_v25 = vadd.f32 %v6350_v55, %v1796_v59  ;;  %v1451_v22 = vadd.f32 %v1450_v21, %v7713_v34 }
 0x1ef   :  { %v1670_v43 = vadd.f32 %v1669_v35, %v1439_v23  ;;  %v5333_v41 = vpop.f32.mrf.mxu0 }
 0x1f0   :  { %v5434_v39 = vpop.f32.mrf.mxu1 }
 0x1f1   :  { %6357 = vtanh.f32 %v1670_v43  ;;  %v1456_v52 = vpop.f32.mrf.mxu0 }
 0x1f2   :  { %v6352_v62 = vpop.eup %6351  ;;  %v1675_v26 = vpop.f32.mrf.mxu1  ;;  %v1457_v18 = vadd.f32 %v1456_v52, %v7721_v38 }
 0x1f3   :  { %v1798_v44 = vadd.f32 %v6352_v62, %v1797_v25  ;;  %v1676_v58 = vadd.f32 %v1675_v26, %v1445_v56  ;;  %v5336_v45 = vpop.f32.mrf.mxu0 }
 0x1f4   :  { %v5437_v60 = vpop.f32.mrf.mxu1 }
 0x1f5   :  { %6359 = vtanh.f32 %v1676_v58  ;;  %v1462_v30 = vpop.f32.mrf.mxu0 }
 0x1f6   :  { %v6354_v14 = vpop.eup %6353  ;;  %v1681_v27 = vpop.f32.mrf.mxu1  ;;  %v1463_v34 = vadd.f32 %v1462_v30, %v7731_v50 }
 0x1f7   :  { %v1799_v9 = vadd.f32 %v6354_v14, %v1798_v44  ;;  %v1682_v15 = vadd.f32 %v1681_v27, %v1451_v22  ;;  %v5339_v59 = vpop.f32.mrf.mxu0 }
 0x1f8   :  { %v5440_v17 = vpop.f32.mrf.mxu1 }
 0x1f9   :  { %6361 = vtanh.f32 %v1682_v15  ;;  %v1468_v8 = vpop.f32.mrf.mxu0 }
 0x1fa   :  { %v6356_v2 = vpop.eup %6355  ;;  %v1687_v40 = vpop.f32.mrf.mxu1  ;;  %v1469_v38 = vadd.f32 %v1468_v8, %v7746_v11 }
 0x1fb   :  { %v1800_v23 = vadd.f32 %v6356_v2, %v1799_v9  ;;  %v1688_v55 = vadd.f32 %v1687_v40, %v1457_v18  ;;  %v5342_v35 = vpop.f32.mrf.mxu0 }
 0x1fc   :  { %v5443_v25 = vpop.f32.mrf.mxu1 }
 0x1fd   :  { %6363 = vtanh.f32 %v1688_v55  ;;  %v1474_v43 = vpop.f32.mrf.mxu0 }
 0x1fe   :  { %v6358_v21 = vpop.eup %6357  ;;  %v1693_v41 = vpop.f32.mrf.mxu1  ;;  %v1475_v50 = vadd.f32 %v1474_v43, %v7754_v33 }
 0x1ff   :  { %v1801_v39 = vadd.f32 %v6358_v21, %v1800_v23  ;;  %v1694_v56 = vadd.f32 %v1693_v41, %v1463_v34  ;;  %v5345_v62 = vpop.f32.mrf.mxu0 }
 0x200   :  { %v5446_v26 = vpop.f32.mrf.mxu1 }
 0x201   :  { %6365 = vtanh.f32 %v1694_v56  ;;  %v1480_v44 = vpop.f32.mrf.mxu0 }
 0x202   :  { %v6360_v52 = vpop.eup %6359  ;;  %v1699_v58 = vpop.f32.mrf.mxu1  ;;  %v1481_v11 = vadd.f32 %v1480_v44, %v7764_v37 }
 0x203   :  { %v1802_v45 = vadd.f32 %v6360_v52, %v1801_v39  ;;  %v1700_v60 = vadd.f32 %v1699_v58, %v1469_v38  ;;  %v5348_v22 = vpop.f32.mrf.mxu0 }
 0x204   :  { %v5449_v14 = vpop.f32.mrf.mxu1 }
 0x205   :  { %6367 = vtanh.f32 %v1700_v60  ;;  %v1486_v27 = vpop.f32.mrf.mxu0 }
 0x206   :  { %v6362_v30 = vpop.eup %6361  ;;  %v1705_v9 = vpop.f32.mrf.mxu1  ;;  %v1487_v33 = vadd.f32 %v1486_v27, %v7773_v32 }
 0x207   :  { %v1803_v15 = vadd.f32 %v6362_v30, %v1802_v45  ;;  %v1706_v59 = vadd.f32 %v1705_v9, %v1475_v50  ;;  %v5351_v17 = vpop.f32.mrf.mxu0 }
 0x208   :  { %v5452_v18 = vpop.f32.mrf.mxu1 }
 0x209   :  { %6369 = vtanh.f32 %v1706_v59  ;;  %v1492_v8 = vpop.f32.mrf.mxu0 }
 0x20a   :  { %v6364_v2 = vpop.eup %6363  ;;  %v1711_v40 = vpop.f32.mrf.mxu1  ;;  %v1493_v37 = vadd.f32 %v1492_v8, %v7782_v61 }
 0x20b   :  { %v1804_v23 = vadd.f32 %v6364_v2, %v1803_v15  ;;  %v1712_v55 = vadd.f32 %v1711_v40, %v1481_v11  ;;  %v5354_v35 = vpop.f32.mrf.mxu0 }
 0x20c   :  { %v5455_v25 = vpop.f32.mrf.mxu1 }
 0x20d   :  { %6371 = vtanh.f32 %v1712_v55  ;;  %v1498_v21 = vpop.f32.mrf.mxu0 }
 0x20e   :  { %v6366_v34 = vpop.eup %6365  ;;  %v1717_v43 = vpop.f32.mrf.mxu1  ;;  %v1499_v32 = vadd.f32 %v1498_v21, %v7797_v4 }
 0x20f   :  { %v1805_v41 = vadd.f32 %v6366_v34, %v1804_v23  ;;  %v1718_v39 = vadd.f32 %v1717_v43, %v1487_v33  ;;  %v5357_v56 = vpop.f32.mrf.mxu0 }
 0x210   :  { %v5458_v62 = vpop.f32.mrf.mxu1 }
 0x211   :  { %6373 = vtanh.f32 %v1718_v39  ;;  %v1504_v38 = vpop.f32.mrf.mxu0 }
 0x212   :  { %v6368_v26 = vpop.eup %6367  ;;  %v1723_v52 = vpop.f32.mrf.mxu1  ;;  %v1505_v61 = vadd.f32 %v1504_v38, %v7807_v51 }
 0x213   :  { %v1806_v44 = vadd.f32 %v6368_v26, %v1805_v41  ;;  %v1724_v58 = vadd.f32 %v1723_v52, %v1493_v37  ;;  %v5360_v45 = vpop.f32.mrf.mxu0 }
 0x214   :  { %v5461_v60 = vpop.f32.mrf.mxu1 }
 0x215   :  { %6375 = vtanh.f32 %v1724_v58  ;;  %v1510_v14 = vpop.f32.mrf.mxu0 }
 0x216   :  { %v6370_v22 = vpop.eup %6369  ;;  %v1729_v50 = vpop.f32.mrf.mxu1  ;;  %v1511_v4 = vadd.f32 %v1510_v14, %v7826_v63 }
 0x217   :  { %v1807_v30 = vadd.f32 %v6370_v22, %v1806_v44  ;;  %v1730_v27 = vadd.f32 %v1729_v50, %v1499_v32  ;;  %v5363_v9 = vpop.f32.mrf.mxu0 }
 0x218   :  { %v5464_v15 = vpop.f32.mrf.mxu1 }
 0x219   :  { %6377 = vtanh.f32 %v1730_v27  ;;  %v1516_v17 = vpop.f32.mrf.mxu0 }
 0x21a   :  { %v6372_v59 = vpop.eup %6371  ;;  %v1735_v18 = vpop.f32.mrf.mxu1  ;;  %v1517_v51 = vadd.f32 %v1516_v17, %v7851_v28 }
 0x21b   :  { %v1808_v11 = vadd.f32 %v6372_v59, %v1807_v30  ;;  %v1736_v2 = vadd.f32 %v1735_v18, %v1505_v61  ;;  %v5366_v8 = vpop.f32.mrf.mxu0 }
 0x21c   :  { %v5467_v40 = vpop.f32.mrf.mxu1 }
 0x21d   :  { %6379 = vtanh.f32 %v1736_v2  ;;  %v1522_v55 = vpop.f32.mrf.mxu0 }
 0x21e   :  { %v6374_v23 = vpop.eup %6373  ;;  %v1741_v35 = vpop.f32.mrf.mxu1  ;;  %v1523_v63 = vadd.f32 %v1522_v55, %v7878_v53 }
 0x21f   :  { %v1809_v25 = vadd.f32 %v6374_v23, %v1808_v11  ;;  %v1742_v33 = vadd.f32 %v1741_v35, %v1511_v4  ;;  %v5369_v34 = vpop.f32.mrf.mxu0 }
 0x220   :  { %v5470_v21 = vpop.f32.mrf.mxu1 }
 0x221   :  { %6381 = vtanh.f32 %v1742_v33  ;;  %v1528_v41 = vpop.f32.mrf.mxu0 }
 0x222   :  { %v6376_v43 = vpop.eup %6375  ;;  %v1747_v39 = vpop.f32.mrf.mxu1  ;;  %v1529_v28 = vadd.f32 %v1528_v41, %v7901_v10 }
 0x223   :  { %v1810_v56 = vadd.f32 %v6376_v43, %v1809_v25  ;;  %v1748_v62 = vadd.f32 %v1747_v39, %v1517_v51  ;;  %v5372_v37 = vpop.f32.mrf.mxu0 }
 0x224   :  { %v5473_v26 = vpop.f32.mrf.mxu1  ;;  %v9778_v37 = vld [vmem:[#allocation28_spill] sm:$0xff] }
 0x225   :  { %6383 = vtanh.f32 %v1748_v62  ;;  %v1534_v52 = vpop.f32.mrf.mxu0  ;;  %v9777_v62 = vld [vmem:[#allocation21_spill] sm:$0xff]  ;;  %v9779_v26 = vld [vmem:[#allocation23_spill] sm:$0xff] }
 0x226   :  { %v6378_v38 = vpop.eup %6377  ;;  %v1753_v44 = vpop.f32.mrf.mxu1  ;;  %v1535_v9 = vadd.f32 %v1534_v52, %v7913_v24  ;;  %v9782_v52 = vld [vmem:[#allocation30_spill] sm:$0xff] }
 0x227   :  { %v1811_v58 = vadd.f32 %v6378_v38, %v1810_v56  ;;  %v1754_v45 = vadd.f32 %v1753_v44, %v1523_v63  ;;  %v5375_v32 = vpop.f32.mrf.mxu0  ;;  %v9776_v56 = vld [vmem:[#allocation26_spill] sm:$0xff]  ;;  %v9780_v63 = vld [vmem:[#allocation25_spill] sm:$0xff]  ;;  %v9781_v38 = vld [vmem:[#allocation32_spill] sm:$0xff] }
 0x228   :  { %v5476_v60 = vpop.f32.mrf.mxu1  ;;  %v9783_v44 = vld [vmem:[#allocation9_spill] sm:$0xff] }
 0x229   :  { %6385 = vtanh.f32 %v1754_v45  ;;  %v9785_v45 = vld [vmem:[#allocation33_spill] sm:$0xff]  ;;  %v9786_v60 = vld [vmem:[#allocation8_spill] sm:$0xff] }
 0x22a   :  { %v6380_v22 = vpop.eup %6379  ;;  %v1759_v14 = vpop.f32.mrf.mxu1 }
 0x22b   :  { %v1812_v50 = vadd.f32 %v6380_v22, %v1811_v58  ;;  %v1760_v30 = vadd.f32 %v1759_v14, %v1529_v28  ;;  %v9784_v58 = vld [vmem:[#allocation31_spill] sm:$0xff] }
 0x22c   :  { %v5479_v27 = vpop.f32.mrf.mxu1 }
 0x22d   :  { %6387 = vtanh.f32 %v1760_v30 }
 0x22e   :  { %v6382_v53 = vpop.eup %6381  ;;  %v1765_v15 = vpop.f32.mrf.mxu1 }
 0x22f   :  { %v1813_v61 = vadd.f32 %v6382_v53, %v1812_v50  ;;  %v1766_v59 = vadd.f32 %v1765_v15, %v1535_v9 }
 0x230   :  { %v5482_v17 = vpop.f32.mrf.mxu1 }
 0x231   :  { %6389 = vtanh.f32 %v1766_v59 }
 0x232   :  { %v6384_v18 = vpop.eup %6383 }
 0x233   :  { %v1814_v11 = vadd.f32 %v6384_v18, %v1813_v61 }
 0x236   :  { %v6386_v2 = vpop.eup %6385 }
 0x237   :  { %v1815_v8 = vadd.f32 %v6386_v2, %v1814_v11 }
 0x23a   :  { %v6388_v10 = vpop.eup %6387 }
 0x23b   :  { %v1816_v40 = vadd.f32 %v6388_v10, %v1815_v8  ;;  %v2540_v8 = vld [vmem:[%s9450_s4 + $0x78] sm:$0xff]  ;;  %v2539_v10 = vld [vmem:[%s9450_s4 + $0x70] sm:$0xff] }
 0x23e   :  { %v6390_v4 = vpop.eup %6389 }
 0x23f   :  { %v1817_v23 = vadd.f32 %v6390_v4, %v1816_v40  ;;  %v2538_v40 = vld [vmem:[%s9450_s4 + $0x68] sm:$0xff]  ;;  %v8120_v4 = vand.u32 4294901760, %v2540_v8 }
 0x241   :  { %v1818_v55 = vrot.slane %v1817_v23, 4 }
 0x243   :  { %v1819_v35 = vadd.f32 %v1818_v55, %v1817_v23  ;;  %v8122_v23 = vand.u32 4294901760, %v2539_v10  ;;  %v8124_v55 = vand.u32 4294901760, %v2538_v40 }
 0x245   :  { %v1820_v25 = vrot.slane %v1819_v35, 2 }
 0x247   :  { %v1821_v33 = vadd.f32 %v1820_v25, %v1819_v35  ;;  %v2537_v35 = vld [vmem:[%s9450_s4 + $0x60] sm:$0xff] }
 0x248   :  { %v8129_v25 = vand.u32 4294901760, %v2537_v35 }
 0x249   :  { %v1822_v24 = vrot.slane %v1821_v33, 1 }
 0x24b   :  { %v1823_v34 = vadd.f32 %v1822_v24, %v1821_v33  ;;  %v8132_v33 = vsub.f32 %v2540_v8, %v8120_v4  ;;  %v8135_v24 = vsub.f32 %v2539_v10, %v8122_v23 }
 0x24d   :  { %v7943_v21 = vand.u32 4294901760, %v1823_v34 }
 0x24f   :  { %v7946_v51 = vsub.f32 %v1823_v34, %v7943_v21  ;;  %5551 = vmatmul.mubr.f32.vlgmr.msra.gmra.mxu1 %v7943_v21  ;;  %v8138_v34 = vsub.f32 %v2538_v40, %v8124_v55 }
 0x250   :  { %5589 = vmatpush3.msra.mxu1 %v7674_v3  ;;  %5620 = vmatprep.mubr.msk.f32.mxu1 %vm6469_vm0, %v6468_v0 }
 0x251   :  { %5590 = vmatprep.subr.mxu1 %v6468_v0  ;;  %v1923_v43 = vand.u32 4294901760, %v7946_v51 }
 0x252   :  { %5591 = vmatpush3.msra.mxu1 %v7691_v49 }
 0x253   :  { %5592 = vmatprep.subr.mxu1 %v6468_v0  ;;  %v1924_v41 = vsub.f32 %v7946_v51, %v1923_v43 }
 0x254   :  { %5593 = vmatpush3.msra.mxu1 %v7703_v57 }
 0x255   :  { %5594 = vmatprep.subr.mxu1 %v6468_v0  ;;  %v1925_v39 = vand.u32 4294901760, %v1924_v41  ;;  %v9595_v41 = vand.u32 4294901760, %v8138_v34 }
 0x256   :  { %5595 = vmatpush3.msra.mxu1 %v7724_v54 }
 0x257   :  { %5596 = vmatprep.subr.mxu1 %v6468_v0  ;;  %5516 = vmatmul.mubr.f32.vlgmr.msra.gmra.mxu0 %v1925_v39 }
 0x258   :  { %5554 = vmatpush3.msra.mxu0 %v7678_v16  ;;  %5597 = vmatpush3.msra.mxu1 %v7736_v13 }
 0x259   :  { %5555 = vmatprep.subr.mxu0 %v6468_v0  ;;  %5598 = vmatprep.subr.mxu1 %v6468_v0 }
 0x25a   :  { %5556 = vmatpush3.msra.mxu0 %v7695_v6  ;;  %5599 = vmatpush3.msra.mxu1 %v7757_v31 }
 0x25b   :  { %5557 = vmatprep.subr.mxu0 %v6468_v0  ;;  %5600 = vmatprep.subr.mxu1 %v6468_v0 }
 0x25c   :  { %5558 = vmatpush3.msra.mxu0 %v7710_v48  ;;  %5601 = vmatpush3.msra.mxu1 %v7775_v19 }
 0x25d   :  { %5559 = vmatprep.subr.mxu0 %v6468_v0  ;;  %5602 = vmatprep.subr.mxu1 %v6468_v0 }
 0x25e   :  { %5560 = vmatpush3.msra.mxu0 %v7728_v46  ;;  %5603 = vmatpush3.msra.mxu1 %v7787_v20 }
 0x25f   :  { %5561 = vmatprep.subr.mxu0 %v6468_v0  ;;  %5604 = vmatprep.subr.mxu1 %v6468_v0 }
 0x260   :  { %5562 = vmatpush3.msra.mxu0 %v7743_v5  ;;  %5605 = vmatpush3.msra.mxu1 %v7801_v29 }
 0x261   :  { %5563 = vmatprep.subr.mxu0 %v6468_v0  ;;  %5606 = vmatprep.subr.mxu1 %v6468_v0 }
 0x262   :  { %5564 = vmatpush3.msra.mxu0 %v7761_v1  ;;  %5607 = vmatpush3.msra.mxu1 %v7814_v42 }
 0x263   :  { %5565 = vmatprep.subr.mxu0 %v6468_v0  ;;  %5608 = vmatprep.subr.mxu1 %v6468_v0 }
 0x264   :  { %5566 = vmatpush3.msra.mxu0 %v7779_v12  ;;  %5609 = vmatpush3.msra.mxu1 %v7822_v36 }
 0x265   :  { %5567 = vmatprep.subr.mxu0 %v6468_v0  ;;  %5610 = vmatprep.subr.mxu1 %v6468_v0 }
 0x266   :  { %5568 = vmatpush3.msra.mxu0 %v7794_v7  ;;  %5611 = vmatpush3.msra.mxu1 %v9776_v56 }
 0x267   :  { %5569 = vmatprep.subr.mxu0 %v6468_v0  ;;  %5612 = vmatprep.subr.mxu1 %v6468_v0 }
 0x268   :  { %5570 = vmatpush3.msra.mxu0 %v9777_v62  ;;  %5613 = vmatpush3.msra.mxu1 %v9778_v37 }
 0x269   :  { %5571 = vmatprep.subr.mxu0 %v6468_v0  ;;  %5614 = vmatprep.subr.mxu1 %v6468_v0 }
 0x26a   :  { %5572 = vmatpush3.msra.mxu0 %v9779_v26  ;;  %5615 = vmatpush3.msra.mxu1 %v7863_v47 }
 0x26b   :  { %5573 = vmatprep.subr.mxu0 %v6468_v0  ;;  %5616 = vmatprep.subr.mxu1 %v6468_v0 }
 0x26c   :  { %5574 = vmatpush3.msra.mxu0 %v9780_v63  ;;  %5617 = vmatpush3.msra.mxu1 %v9781_v38 }
 0x26d   :  { %5575 = vmatprep.subr.mxu0 %v6468_v0  ;;  %5618 = vmatprep.subr.mxu1 %v6468_v0 }
 0x26e   :  { %5576 = vmatpush3.msra.mxu0 %v9782_v52  ;;  %5619 = vmatpush3.msra.mxu1 %v9783_v44 }
 0x26f   :  { %5577 = vmatprep.subr.mxu0 %v6468_v0  ;;  %5621 = vmatmul.mubr.f32.vlgmr.msra.gmra.mxu1 %v1923_v43  ;;  %v9598_v43 = vand.u32 4294901760, %v8135_v24 }
 0x270   :  { %5658 = vmatprep.subr.mxu1 %v6468_v0  ;;  %5578 = vmatpush3.msra.mxu0 %v9784_v58 }
 0x271   :  { %5659 = vmatpush3.msra.mxu1 %v7674_v3  ;;  %5579 = vmatprep.subr.mxu0 %v6468_v0  ;;  %v9787_v3 = vld [vmem:[#allocation10_spill] sm:$0xff] }
 0x272   :  { %5660 = vmatprep.subr.mxu1 %v6468_v0  ;;  %5580 = vmatpush3.msra.mxu0 %v9785_v45 }
 0x273   :  { %5661 = vmatpush3.msra.mxu1 %v7691_v49  ;;  %5581 = vmatprep.subr.mxu0 %v6468_v0  ;;  %v9788_v49 = vand.u32 4294901760, %v7678_v16  ;;  %v9791_v16 = vand.u32 4294901760, %v7728_v46  ;;  %v9794_v46 = vand.u32 4294901760, %v7779_v12  ;;  %v9800_v12 = vand.u32 4294901760, %v9784_v58 }
 0x274   :  { %5662 = vmatprep.subr.mxu1 %v6468_v0  ;;  %5582 = vmatpush3.msra.mxu0 %v9786_v60 }
 0x275   :  { %5663 = vmatpush3.msra.mxu1 %v7703_v57  ;;  %5583 = vmatprep.subr.mxu0 %v6468_v0  ;;  %v9789_v57 = vand.u32 4294901760, %v7695_v6  ;;  %v9792_v6 = vand.u32 4294901760, %v7743_v5  ;;  %v9796_v5 = vand.u32 4294901760, %v9777_v62  ;;  %v2883_v62 = vsub.f32 %v8135_v24, %v9598_v43 }
 0x276   :  { %5664 = vmatprep.subr.mxu1 %v6468_v0  ;;  %5584 = vmatpush3.msra.mxu0 %v9787_v3 }
 0x277   :  { %5585 = vmatprep.mubr.msk.f32.mxu0 %vm6469_vm0, %v6468_v0  ;;  %5665 = vmatpush3.msra.mxu1 %v7724_v54  ;;  %v9790_v54 = vand.u32 4294901760, %v7710_v48  ;;  %v9793_v48 = vand.u32 4294901760, %v7761_v1  ;;  %v9798_v1 = vand.u32 4294901760, %v9780_v63  ;;  %v2884_v63 = vand.u32 4294901760, %v2883_v62 }
 0x278   :  { %5586 = vmatmul.mubr.f32.vlgmr.msra.gmra.mxu0 %v7946_v51  ;;  %5623 = vmatprep.subr.mxu0 %v6468_v0  ;;  %v9600_v51 = vand.u32 4294901760, %v8132_v33 }
 0x279   :  { %5666 = vmatprep.subr.mxu1 %v6468_v0  ;;  %5624 = vmatpush3.msra.mxu0 %v9788_v49 }
 0x27a   :  { %5667 = vmatpush3.msra.mxu1 %v7736_v13  ;;  %5625 = vmatprep.subr.mxu0 %v6468_v0  ;;  %v9795_v13 = vand.u32 4294901760, %v7794_v7  ;;  %v9802_v7 = vand.u32 4294901760, %v9786_v60 }
 0x27b   :  { %5668 = vmatprep.subr.mxu1 %v6468_v0  ;;  %5626 = vmatpush3.msra.mxu0 %v9789_v57  ;;  %v2536_v57 = vld [vmem:[%s9450_s4 + $0x58] sm:$0xff] }
 0x27c   :  { %5669 = vmatpush3.msra.mxu1 %v7757_v31  ;;  %5627 = vmatprep.subr.mxu0 %v6468_v0  ;;  %v9797_v31 = vand.u32 4294901760, %v9779_v26 }
 0x27d   :  { %5670 = vmatprep.subr.mxu1 %v6468_v0  ;;  %5628 = vmatpush3.msra.mxu0 %v9790_v54  ;;  %v8178_v54 = vand.u32 4294901760, %v2536_v57 }
 0x27e   :  { %5671 = vmatpush3.msra.mxu1 %v7775_v19  ;;  %5629 = vmatprep.subr.mxu0 %v6468_v0  ;;  %v9799_v19 = vand.u32 4294901760, %v9782_v52 }
 0x27f   :  { %5672 = vmatprep.subr.mxu1 %v6468_v0  ;;  %5630 = vmatpush3.msra.mxu0 %v9791_v16  ;;  %v2535_v16 = vld [vmem:[%s9450_s4 + $0x50] sm:$0xff] }
 0x280   :  { %5673 = vmatpush3.msra.mxu1 %v7787_v20  ;;  %5631 = vmatprep.subr.mxu0 %v6468_v0  ;;  %v9801_v20 = vand.u32 4294901760, %v9785_v45 }
 0x281   :  { %5674 = vmatprep.subr.mxu1 %v6468_v0  ;;  %5632 = vmatpush3.msra.mxu0 %v9792_v6  ;;  %v8184_v6 = vsub.f32 %v2536_v57, %v8178_v54  ;;  %v2526_v57 = vld [vmem:[%s9450_s4 + $0x8] sm:$0xff] }
 0x282   :  { %5675 = vmatpush3.msra.mxu1 %v7801_v29  ;;  %5633 = vmatprep.subr.mxu0 %v6468_v0  ;;  %v9803_v29 = vand.u32 4294901760, %v9787_v3 }
 0x283   :  { %5676 = vmatprep.subr.mxu1 %v6468_v0  ;;  %5634 = vmatpush3.msra.mxu0 %v9793_v48  ;;  %v8186_v48 = vand.u32 4294901760, %v2535_v16 }
 0x284   :  { %5677 = vmatpush3.msra.mxu1 %v7814_v42  ;;  %5635 = vmatprep.subr.mxu0 %v6468_v0 }
 0x285   :  { %5678 = vmatprep.subr.mxu1 %v6468_v0  ;;  %5636 = vmatpush3.msra.mxu0 %v9794_v46  ;;  %v2534_v46 = vld [vmem:[%s9450_s4 + $0x48] sm:$0xff] }
 0x286   :  { %5679 = vmatpush3.msra.mxu1 %v7822_v36  ;;  %5637 = vmatprep.subr.mxu0 %v6468_v0 }
 0x287   :  { %5680 = vmatprep.subr.mxu1 %v6468_v0  ;;  %5638 = vmatpush3.msra.mxu0 %v9795_v13  ;;  %v9593_v13 = vand.u32 4294901760, %v8184_v6 }
 0x288   :  { %5681 = vmatpush3.msra.mxu1 %v9776_v56  ;;  %5639 = vmatprep.subr.mxu0 %v6468_v0  ;;  %v2876_v56 = vsub.f32 %v8132_v33, %v9600_v51 }
 0x289   :  { %5682 = vmatprep.subr.mxu1 %v6468_v0  ;;  %5640 = vmatpush3.msra.mxu0 %v9796_v5  ;;  %v8195_v5 = vsub.f32 %v2535_v16, %v8186_v48 }
 0x28a   :  { %5683 = vmatpush3.msra.mxu1 %v9778_v37  ;;  %5641 = vmatprep.subr.mxu0 %v6468_v0  ;;  %v2890_v37 = vsub.f32 %v8138_v34, %v9595_v41  ;;  %v2877_v26 = vand.u32 4294901760, %v2876_v56  ;;  %v2528_v56 = vld [vmem:[%s9450_s4 + $0x18] sm:$0xff] }
 0x28b   :  { %5684 = vmatprep.subr.mxu1 %v6468_v0  ;;  %5642 = vmatpush3.msra.mxu0 %v9797_v31  ;;  %v8197_v31 = vand.u32 4294901760, %v2534_v46 }
 0x28c   :  { %5685 = vmatpush3.msra.mxu1 %v7863_v47  ;;  %5643 = vmatprep.subr.mxu0 %v6468_v0  ;;  %v2891_v52 = vand.u32 4294901760, %v2890_v37 }
 0x28d   :  { %5686 = vmatprep.subr.mxu1 %v6468_v0  ;;  %5644 = vmatpush3.msra.mxu0 %v9798_v1  ;;  %v2533_v1 = vld [vmem:[%s9450_s4 + $0x40] sm:$0xff] }
 0x28e   :  { %5687 = vmatpush3.msra.mxu1 %v9781_v38  ;;  %5645 = vmatprep.subr.mxu0 %v6468_v0 }
 0x28f   :  { %5688 = vmatprep.subr.mxu1 %v6468_v0  ;;  %5646 = vmatpush3.msra.mxu0 %v9799_v19  ;;  %v2904_v19 = vsub.f32 %v8184_v6, %v9593_v13 }
 0x290   :  { %5689 = vmatpush3.msra.mxu1 %v9783_v44  ;;  %5690 = vmatprep.mubr.msk.f32.mxu1 %vm6469_vm0, %v6468_v0 }
 0x291   :  { %5647 = vmatprep.subr.mxu0 %v6468_v0  ;;  %5691 = vmatmul.mubr.f32.vlgmr.msra.gmra.mxu1 %v7943_v21 }
 0x292   :  { %5648 = vmatpush3.msra.mxu0 %v9800_v12  ;;  %5655 = vmatprep.mubr.msk.f32.mxu0 %vm6469_vm0, %v6468_v0  ;;  %v9592_v12 = vand.u32 4294901760, %v8195_v5 }
 0x293   :  { %5649 = vmatprep.subr.mxu0 %v6468_v0  ;;  %5800 = vmatprep.subr.mxu1 %v6468_v0 }
 0x294   :  { %5650 = vmatpush3.msra.mxu0 %v9801_v20  ;;  %5832 = vmatprep.mubr.msk.f32.mxu1 %vm6469_vm0, %v6468_v0  ;;  %v8209_v20 = vsub.f32 %v2534_v46, %v8197_v31 }
 0x295   :  { %5651 = vmatprep.subr.mxu0 %v6468_v0  ;;  %5801 = vmatpush3.msra.mxu1 %v2877_v26 }
 0x296   :  { %5652 = vmatpush3.msra.mxu0 %v9802_v7  ;;  %5802 = vmatprep.subr.mxu1 %v6468_v0  ;;  %v8211_v7 = vand.u32 4294901760, %v2533_v1 }
 0x297   :  { %5653 = vmatprep.subr.mxu0 %v6468_v0  ;;  %5803 = vmatpush3.msra.mxu1 %v2884_v63  ;;  %v8283_v63 = vand.u32 4294901760, %v2528_v56 }
 0x298   :  { %5654 = vmatpush3.msra.mxu0 %v9803_v29  ;;  %5804 = vmatprep.subr.mxu1 %v6468_v0  ;;  %v2532_v29 = vld [vmem:[%s9450_s4 + $0x38] sm:$0xff] }
 0x299   :  { %5656 = vmatmul.mubr.f32.vlgmr.msra.gmra.mxu0 %v7943_v21  ;;  %5693 = vmatprep.subr.mxu0 %v6468_v0  ;;  %v8142_v21 = vsub.f32 %v2537_v35, %v8129_v25 }
 0x29a   :  { %5725 = vmatprep.mubr.msk.f32.mxu0 %vm6469_vm0, %v6468_v0  ;;  %5694 = vmatpush3.msra.mxu0 %v8120_v4 }
 0x29b   :  { %5695 = vmatprep.subr.mxu0 %v6468_v0  ;;  %v9594_v39 = vand.u32 4294901760, %v8142_v21  ;;  %5805 = vmatpush3.msra.mxu1 %v2891_v52  ;;  %v2527_v52 = vld [vmem:[%s9450_s4 + $0x10] sm:$0xff] }
 0x29c   :  { %5696 = vmatpush3.msra.mxu0 %v8122_v23  ;;  %5806 = vmatprep.subr.mxu1 %v6468_v0 }
 0x29d   :  { %5697 = vmatprep.subr.mxu0 %v6468_v0  ;;  %v2897_v38 = vsub.f32 %v8142_v21, %v9594_v39  ;;  %v6403_v39 = vld [vmem:[#allocation2 + $0x40] sm:$0xff] }
 0x29e   :  { %5698 = vmatpush3.msra.mxu0 %v8124_v55 }
 0x29f   :  { %5699 = vmatprep.subr.mxu0 %v6468_v0  ;;  %v2898_v44 = vand.u32 4294901760, %v2897_v38 }
 0x2a0   :  { %5700 = vmatpush3.msra.mxu0 %v8129_v25 }
 0x2a1   :  { %5701 = vmatprep.subr.mxu0 %v6468_v0  ;;  %5807 = vmatpush3.msra.mxu1 %v2898_v44 }
 0x2a2   :  { %5808 = vmatprep.subr.mxu1 %v6468_v0  ;;  %5702 = vmatpush3.msra.mxu0 %v8178_v54 }
 0x2a3   :  { %5703 = vmatprep.subr.mxu0 %v6468_v0 }
 0x2a4   :  { %5704 = vmatpush3.msra.mxu0 %v8186_v48 }
 0x2a5   :  { %5705 = vmatprep.subr.mxu0 %v6468_v0 }
 0x2a6   :  { %5706 = vmatpush3.msra.mxu0 %v8197_v31 }
 0x2a7   :  { %5707 = vmatprep.subr.mxu0 %v6468_v0 }
 0x2a8   :  { %5708 = vmatpush3.msra.mxu0 %v8211_v7 }
 0x2a9   :  { %5709 = vmatprep.subr.mxu0 %v6468_v0 }
 0x30f   :  { %v2078_v42 = vpop.f32.mrf.mxu1 }
 0x311   :  { %v5552_v36 = vpop.f32.mrf.mxu1 }
 0x312   :  { %v2911_v36 = vsub.f32 %v8195_v5, %v9592_v12 }
 0x317   :  { %v1927_v47 = vpop.f32.mrf.mxu0 }
 0x318   :  { %v2079_v27 = vadd.f32 %v2078_v42, %v1927_v47  ;;  %v2905_v42 = vand.u32 4294901760, %v2904_v19  ;;  %v9591_v47 = vand.u32 4294901760, %v8209_v20  ;;  %v8310_v19 = vand.u32 4294901760, %v2526_v57 }
 0x319   :  { %v5517_v32 = vpop.f32.mrf.mxu0 }
 0x31a   :  { %v8223_v32 = vsub.f32 %v2533_v1, %v8211_v7  ;;  %5809 = vmatpush3.msra.mxu1 %v2905_v42  ;;  %v2525_v42 = vld [vmem:[%s9450_s4] sm:$0xff] }
 0x31b   :  { %5810 = vmatprep.subr.mxu1 %v6468_v0 }
 0x32f   :  { %v2271_v28 = vpop.f32.mrf.mxu1 }
 0x331   :  { %v5622_v22 = vpop.f32.mrf.mxu1 }
 0x332   :  { %v2531_v22 = vld [vmem:[%s9450_s4 + $0x30] sm:$0xff] }
 0x338   :  { %v2182_v14 = vpop.f32.mrf.mxu0 }
 0x339   :  { %v2183_v53 = vadd.f32 %v2182_v14, %v2079_v27  ;;  %v2912_v14 = vand.u32 4294901760, %v2911_v36  ;;  %v8236_v27 = vand.u32 4294901760, %v2531_v22 }
 0x33a   :  { %v5587_v50 = vpop.f32.mrf.mxu0 }
 0x33b   :  { %v2272_v15 = vadd.f32 %v2271_v28, %v2183_v53  ;;  %v8226_v28 = vand.u32 4294901760, %v2532_v29  ;;  %v2918_v50 = vsub.f32 %v8209_v20, %v9591_v47  ;;  %v2530_v53 = vld [vmem:[%s9450_s4 + $0x28] sm:$0xff]  ;;  %5811 = vmatpush3.msra.mxu1 %v2912_v14  ;;  %v8325_v14 = vsub.f32 %v2526_v57, %v8310_v19 }
 0x33c   :  { %5812 = vmatprep.subr.mxu1 %v6468_v0  ;;  %v2496_v57 = vlaneseq }
 0x33d   :  { %5710 = vmatpush3.msra.mxu0 %v8226_v28 }
 0x33e   :  { %5711 = vmatprep.subr.mxu0 %v6468_v0 }
 0x33f   :  { %5712 = vmatpush3.msra.mxu0 %v8236_v27 }
 0x340   :  { %5713 = vmatprep.subr.mxu0 %v6468_v0 }
 0x351   :  { %v2477_v30 = vpop.f32.mrf.mxu1 }
 0x353   :  { %v5692_v9 = vpop.f32.mrf.mxu1 }
 0x354   :  { %v8240_v9 = vsub.f32 %v2532_v29, %v8226_v28 }
 0x359   :  { %v2390_v61 = vpop.f32.mrf.mxu0 }
 0x35a   :  { %v2391_v59 = vadd.f32 %v2390_v61, %v2272_v15  ;;  %v2919_v15 = vand.u32 4294901760, %v2918_v50  ;;  %v8327_v50 = vand.u32 4294901760, %v2525_v42 }
 0x35b   :  { %v5657_v17 = vpop.f32.mrf.mxu0 }
 0x35c   :  { %v2478_v18 = vadd.f32 %v2477_v30, %v2391_v59  ;;  %v9590_v30 = vand.u32 4294901760, %v8223_v32  ;;  %v8250_v59 = vsub.f32 %v2531_v22, %v8236_v27  ;;  %v8252_v17 = vand.u32 4294901760, %v2530_v53  ;;  %5813 = vmatpush3.msra.mxu1 %v2919_v15  ;;  %9804 = vst [vmem:[#allocation11_spill] sm:$0xff] %v8327_v50 }
 0x35d   :  { %5814 = vmatprep.subr.mxu1 %v6468_v0 }
 0x35e   :  { %v2482_v11 = vmul.f32 0.005, %v2478_v18  ;;  %v2925_v61 = vsub.f32 %v8223_v32, %v9590_v30  ;;  %v9589_v18 = vand.u32 4294901760, %v8240_v9  ;;  %v9588_v8 = vand.u32 4294901760, %v8250_v59  ;;  %5714 = vmatpush3.msra.mxu0 %v8252_v17 }
 0x35f   :  { %v8263_v10 = vsub.f32 %v2530_v53, %v8252_v17  ;;  %5715 = vmatprep.subr.mxu0 %v6468_v0 }
 0x360   :  { %v2484_v2 = vsel %vm2483_vm1, %v2482_v11, -inf  ;;  %v2932_v35 = vsub.f32 %v8240_v9, %v9589_v18  ;;  %v2939_v62 = vsub.f32 %v8250_v59, %v9588_v8 }
 0x361   :  { %2485 = vmax.xlane.f32.xlu0 %v2484_v2  ;;  %v2926_v2 = vand.u32 4294901760, %v2925_v61  ;;  %v9587_v37 = vand.u32 4294901760, %v8263_v10  ;;  %v9583_v61 = vand.u32 4294901760, %v8325_v14 }
 0x362   :  { %v2933_v38 = vand.u32 4294901760, %v2932_v35  ;;  %v2940_v44 = vand.u32 4294901760, %v2939_v62 }
 0x363   :  { %5815 = vmatpush3.msra.mxu1 %v2926_v2  ;;  %v2974_v35 = vsub.f32 %v8325_v14, %v9583_v61 }
 0x364   :  { %5816 = vmatprep.subr.mxu1 %v6468_v0 }
 0x365   :  { %5817 = vmatpush3.msra.mxu1 %v2933_v38  ;;  %v2975_v38 = vand.u32 4294901760, %v2974_v35 }
 0x366   :  { %5818 = vmatprep.subr.mxu1 %v6468_v0 }
 0x367   :  { %5819 = vmatpush3.msra.mxu1 %v2940_v44 }
 0x368   :  { %5820 = vmatprep.subr.mxu1 %v6468_v0 }
 0x3ea   :  { %v2486_v58 = vpop.xlane.xlu0 %2485 }
 0x3eb   :  { %v2487_v45 = vsub.f32 %v2482_v11, %v2486_v58  ;;  %v2529_v11 = vld [vmem:[%s9450_s4 + $0x20] sm:$0xff]  ;;  %v2946_v58 = vsub.f32 %v8263_v10, %v9587_v37 }
 0x3ec   :  { %v8265_v40 = vand.u32 4294901760, %v2529_v11 }
 0x3ed   :  { %v2488_v60 = vmul.f32 1.442695, %v2487_v45  ;;  %v2947_v16 = vand.u32 4294901760, %v2946_v58 }
 0x3ee   :  { %v8281_v26 = vsub.f32 %v2529_v11, %v8265_v40  ;;  %5716 = vmatpush3.msra.mxu0 %v8265_v40  ;;  %v8335_v11 = vsub.f32 %v2525_v42, %v8327_v50 }
 0x3ef   :  { %6391 = vpow2.f32 %v2488_v60  ;;  %v8296_v60 = vsub.f32 %v2528_v56, %v8283_v63  ;;  %5717 = vmatprep.subr.mxu0 %v6468_v0  ;;  %5821 = vmatpush3.msra.mxu1 %v2947_v16  ;;  %v2497_v16 = vshrl.u32 %v2496_v57, 7 }
 0x3f0   :  { %v9586_v45 = vand.u32 4294901760, %v8281_v26  ;;  %5718 = vmatpush3.msra.mxu0 %v8283_v63  ;;  %5822 = vmatprep.subr.mxu1 %v6468_v0  ;;  %9805 = vst [vmem:[#allocation12_spill] sm:$0xff] %v8335_v11  ;;  %v9582_v56 = vand.u32 4294901760, %v8335_v11 }
 0x3f1   :  { %v9585_v1 = vand.u32 4294901760, %v8296_v60  ;;  %5719 = vmatprep.subr.mxu0 %v6468_v0  ;;  %v2498_v42 = vsub.s32 0, %v2497_v16  ;;  %v6398_v16 = vld [vmem:[#allocation2 + $0x18] sm:$0xff] }
 0x3f2   :  { %v2953_v46 = vsub.f32 %v8281_v26, %v9586_v45 }
 0x3f3   :  { %v2960_v22 = vsub.f32 %v8296_v60, %v9585_v1 }
 0x3f4   :  { %v2954_v36 = vand.u32 4294901760, %v2953_v46 }
 0x3f5   :  { %v2961_v15 = vand.u32 4294901760, %v2960_v22 }
 0x3f6   :  { %5823 = vmatpush3.msra.mxu1 %v2954_v36 }
 0x3f7   :  { %5824 = vmatprep.subr.mxu1 %v6468_v0 }
 0x3f8   :  { %5825 = vmatpush3.msra.mxu1 %v2961_v15 }
 0x3f9   :  { %5826 = vmatprep.subr.mxu1 %v6468_v0 }
 0x3fc   :  { %v8171_v3 = vpop.eup %6391 }
 0x3fd   :  { %v2490_v49 = vsel %vm2483_vm1, %v8171_v3, 0.0 }
 0x3fe   :  { %2491 = vadd.xlane.f32.xlu0 %v2490_v49  ;;  %v8299_v49 = vand.u32 4294901760, %v2527_v52 }
 0x400   :  { %v8314_v29 = vsub.f32 %v2527_v52, %v8299_v49  ;;  %5720 = vmatpush3.msra.mxu0 %v8299_v49  ;;  %v2981_v52 = vsub.f32 %v8335_v11, %v9582_v56 }
 0x401   :  { %5721 = vmatprep.subr.mxu0 %v6468_v0 }
 0x402   :  { %v9584_v53 = vand.u32 4294901760, %v8314_v29  ;;  %5722 = vmatpush3.msra.mxu0 %v8310_v19  ;;  %v2982_v44 = vand.u32 4294901760, %v2981_v52  ;;  %v6397_v52 = vld [vmem:[#allocation2 + $0x10] sm:$0xff] }
 0x403   :  { %5723 = vmatprep.subr.mxu0 %v6468_v0 }
 0x404   :  { %v2967_v2 = vsub.f32 %v8314_v29, %v9584_v53  ;;  %5724 = vmatpush3.msra.mxu0 %v8327_v50 }
 0x405   :  { %5907 = vmatprep.subr.mxu0 %v6468_v0 }
 0x406   :  { %v2968_v62 = vand.u32 4294901760, %v2967_v2  ;;  %v6395_v2 = vld [vmem:[#allocation2] sm:$0xff] }
 0x408   :  { %5827 = vmatpush3.msra.mxu1 %v2968_v62  ;;  %v6396_v62 = vld [vmem:[#allocation2 + $0x8] sm:$0xff] }
 0x409   :  { %5828 = vmatprep.subr.mxu1 %v6468_v0 }
 0x40a   :  { %5829 = vmatpush3.msra.mxu1 %v2975_v38 }
 0x40b   :  { %5830 = vmatprep.subr.mxu1 %v6468_v0 }
 0x40c   :  { %5831 = vmatpush3.msra.mxu1 %v2982_v44 }
 0x40d   :  { %6014 = vmatprep.subr.mxu1 %v6468_v0 }
 0x487   :  { %v2492_v58 = vpop.xlane.xlu0 %2491 }
 0x488   :  { %6393 = vrcp.f32 %v2492_v58 }
 0x495   :  { %v6394_v46 = vpop.eup %6393 }
 0x496   :  { %v2494_v36 = vmul.f32 32.0, %v6394_v46 }
 0x498   :  { %v2495_v22 = vmul.f32 %v8171_v3, %v2494_v36  ;;  %v6399_v36 = vld [vmem:[#allocation2 + $0x20] sm:$0xff] }
 0x49a   :  { %v8356_v15 = vrot.slane %v2495_v22, %v2498_v42 }
 0x49c   :  { %v2500_v35 = vmul.f32 %v6395_v2, %v8356_v15  ;;  %v2501_v38 = vmul.f32 %v6396_v62, %v8356_v15  ;;  %v2502_v44 = vmul.f32 %v6397_v52, %v8356_v15  ;;  %v2503_v3 = vmul.f32 %v6398_v16, %v8356_v15 }
 0x49d   :  { %v2504_v22 = vmul.f32 %v6399_v36, %v8356_v15  ;;  %v2508_v41 = vmul.f32 %v6403_v39, %v8356_v15 }
 0x49e   :  { %v8361_v56 = vand.u32 4294901760, %v2500_v35  ;;  %v8363_v58 = vand.u32 4294901760, %v2501_v38  ;;  %v8365_v57 = vand.u32 4294901760, %v2502_v44  ;;  %v8384_v52 = vand.u32 4294901760, %v2503_v3 }
 0x49f   :  { %v8394_v16 = vand.u32 4294901760, %v2504_v22 }
 0x4a0   :  { %9806 = vst [vmem:[#allocation13_spill] sm:$0xff] %v8361_v56  ;;  %9807 = vst [vmem:[#allocation14_spill] sm:$0xff] %v8363_v58  ;;  %v8369_v46 = vsub.f32 %v2500_v35, %v8361_v56  ;;  %5833 = vmatmul.mubr.f32.vlgmr.msra.gmra.mxu1 %v8361_v56  ;;  %v8373_v42 = vsub.f32 %v2501_v38, %v8363_v58  ;;  %v8381_v62 = vsub.f32 %v2502_v44, %v8365_v57  ;;  %v6400_v44 = vld [vmem:[#allocation2 + $0x28] sm:$0xff] }
 0x4a1   :  { %9808 = vst [vmem:[#allocation15_spill] sm:$0xff] %v8365_v57  ;;  %5835 = vmatprep.mubr.msk.f32.mxu1 %vm6469_vm0, %v6468_v0  ;;  %6015 = vmatpush3.msra.mxu1 %v8120_v4  ;;  %9809 = vst [vmem:[#allocation16_spill] sm:$0xff] %v8384_v52  ;;  %v2505_v36 = vmul.f32 %v6400_v44, %v8356_v15  ;;  %v8402_v1 = vsub.f32 %v2503_v3, %v8384_v52  ;;  %v6401_v44 = vld [vmem:[#allocation2 + $0x30] sm:$0xff] }
 0x4a2   :  { %v9604_v2 = vand.u32 4294901760, %v8369_v46  ;;  %v9603_v35 = vand.u32 4294901760, %v8373_v42  ;;  %6016 = vmatprep.subr.mxu1 %v6468_v0  ;;  %9810 = vst [vmem:[#allocation17_spill] sm:$0xff] %v8394_v16  ;;  %v9601_v45 = vand.u32 4294901760, %v8381_v62  ;;  %v2506_v3 = vmul.f32 %v6401_v44, %v8356_v15  ;;  %v6402_v44 = vld [vmem:[#allocation2 + $0x38] sm:$0xff] }
 0x4a3   :  { %6017 = vmatpush3.msra.mxu1 %v8122_v23  ;;  %v8421_v8 = vsub.f32 %v2504_v22, %v8394_v16  ;;  %v9597_v18 = vand.u32 4294901760, %v8402_v1  ;;  %v2507_v22 = vmul.f32 %v6402_v44, %v8356_v15 }
 0x4a4   :  { %5836 = vmatmul.mubr.f32.gmra.mxu1 %v8363_v58  ;;  %v2625_v38 = vsub.f32 %v8369_v46, %v9604_v2  ;;  %6018 = vmatprep.subr.mxu1 %v6468_v0  ;;  %v2635_v53 = vsub.f32 %v8373_v42, %v9603_v35 }
 0x4a5   :  { %5838 = vmatprep.mubr.msk.f32.mxu1 %vm6469_vm0, %v6468_v0  ;;  %6019 = vmatpush3.msra.mxu1 %v8124_v55  ;;  %v2655_v47 = vsub.f32 %v8402_v1, %v9597_v18  ;;  %v9596_v12 = vand.u32 4294901760, %v8421_v8  ;;  %v8476_v18 = vand.u32 4294901760, %v2508_v41 }
 0x4a6   :  { %v2626_v61 = vand.u32 4294901760, %v2625_v38  ;;  %6020 = vmatprep.subr.mxu1 %v6468_v0  ;;  %v8411_v38 = vand.u32 4294901760, %v2505_v36  ;;  %v2636_v37 = vand.u32 4294901760, %v2635_v53  ;;  %v8431_v53 = vand.u32 4294901760, %v2506_v3 }
 0x4a7   :  { %6021 = vmatpush3.msra.mxu1 %v8129_v25  ;;  %v2656_v44 = vand.u32 4294901760, %v2655_v47  ;;  %v2665_v13 = vsub.f32 %v8421_v8, %v9596_v12  ;;  %9814 = vst [vmem:[#allocation22_spill] sm:$0xff] %v8476_v18 }
 0x4a8   :  { %5726 = vmatmul.mubr.f32.vlgmr.msra.gmra.mxu0 %v2626_v61  ;;  %5839 = vmatmul.mubr.f32.gmra.mxu1 %v8365_v57  ;;  %9811 = vst [vmem:[#allocation18_spill] sm:$0xff] %v8411_v38  ;;  %v2645_v61 = vsub.f32 %v8381_v62, %v9601_v45  ;;  %9812 = vst [vmem:[#allocation19_spill] sm:$0xff] %v8431_v53 }
 0x4a9   :  { %5908 = vmatpush3.msra.mxu0 %v8132_v33  ;;  %5728 = vmatprep.mubr.msk.f32.mxu0 %vm6469_vm0, %v6468_v0 }
 0x4aa   :  { %5841 = vmatprep.mubr.msk.f32.mxu1 %vm6469_vm0, %v6468_v0  ;;  %5909 = vmatprep.subr.mxu0 %v6468_v0  ;;  %v2646_v30 = vand.u32 4294901760, %v2645_v61  ;;  %v8453_v61 = vand.u32 4294901760, %v2507_v22 }
 0x4ab   :  { %5910 = vmatpush3.msra.mxu0 %v8135_v24  ;;  %6022 = vmatprep.subr.mxu1 %v6468_v0 }
 0x4ac   :  { %5729 = vmatmul.mubr.f32.gmra.mxu0 %v2636_v37  ;;  %5842 = vmatmul.mubr.f32.gmra.mxu1 %v8384_v52  ;;  %v8438_v37 = vsub.f32 %v2505_v36, %v8411_v38  ;;  %v8451_v36 = vsub.f32 %v2506_v3, %v8431_v53  ;;  %9813 = vst [vmem:[#allocation20_spill] sm:$0xff] %v8453_v61  ;;  %v2666_v3 = vand.u32 4294901760, %v2665_v13  ;;  %v6411_v52 = vld [vmem:[#allocation2 + $0x80] sm:$0xff] }
 0x4ad   :  { %5731 = vmatprep.mubr.msk.f32.mxu0 %vm6469_vm0, %v6468_v0  ;;  %5844 = vmatprep.mubr.msk.f32.mxu1 %vm6469_vm0, %v6468_v0  ;;  %v8470_v47 = vsub.f32 %v2507_v22, %v8453_v61 }
 0x4ae   :  { %5911 = vmatprep.subr.mxu0 %v6468_v0  ;;  %6023 = vmatpush3.msra.mxu1 %v8178_v54  ;;  %v9602_v39 = vand.u32 4294901760, %v8451_v36 }
 0x4af   :  { %5912 = vmatpush3.msra.mxu0 %v8138_v34  ;;  %6024 = vmatprep.subr.mxu1 %v6468_v0  ;;  %v9605_v22 = vand.u32 4294901760, %v8470_v47 }
 0x4b0   :  { %5732 = vmatmul.mubr.f32.gmra.mxu0 %v2646_v30  ;;  %5845 = vmatmul.mubr.f32.gmra.mxu1 %v8394_v16  ;;  %v9599_v30 = vand.u32 4294901760, %v8438_v37  ;;  %v2685_v13 = vsub.f32 %v8451_v36, %v9602_v39 }
 0x4b1   :  { %5734 = vmatprep.mubr.msk.f32.mxu0 %vm6469_vm0, %v6468_v0  ;;  %5847 = vmatprep.mubr.msk.f32.mxu1 %vm6469_vm0, %v6468_v0 }
 0x4b2   :  { %5913 = vmatprep.subr.mxu0 %v6468_v0  ;;  %6025 = vmatpush3.msra.mxu1 %v8186_v48  ;;  %v2675_v12 = vsub.f32 %v8438_v37, %v9599_v30  ;;  %v8493_v30 = vsub.f32 %v2508_v41, %v8476_v18  ;;  %v2686_v41 = vand.u32 4294901760, %v2685_v13  ;;  %v6407_v13 = vld [vmem:[#allocation2 + $0x60] sm:$0xff] }
 0x4b3   :  { %5914 = vmatpush3.msra.mxu0 %v8142_v21  ;;  %6026 = vmatprep.subr.mxu1 %v6468_v0 }
 0x4b4   :  { %5735 = vmatmul.mubr.f32.gmra.mxu0 %v2656_v44  ;;  %5848 = vmatmul.mubr.f32.gmra.mxu1 %v8411_v38  ;;  %v6404_v44 = vld [vmem:[#allocation2 + $0x48] sm:$0xff]  ;;  %v9610_v39 = vand.u32 4294901760, %v8493_v30 }
 0x4b5   :  { %5737 = vmatprep.mubr.msk.f32.mxu0 %vm6469_vm0, %v6468_v0  ;;  %5850 = vmatprep.mubr.msk.f32.mxu1 %vm6469_vm0, %v6468_v0  ;;  %v2509_v43 = vmul.f32 %v6404_v44, %v8356_v15  ;;  %v2676_v44 = vand.u32 4294901760, %v2675_v12  ;;  %v2695_v12 = vsub.f32 %v8470_v47, %v9605_v22 }
 0x4b6   :  { %5915 = vmatprep.subr.mxu0 %v6468_v0  ;;  %6027 = vmatpush3.msra.mxu1 %v8197_v31  ;;  %v2705_v22 = vsub.f32 %v8493_v30, %v9610_v39 }
 0x4b7   :  { %5916 = vmatpush3.msra.mxu0 %v8184_v6  ;;  %v8495_v51 = vand.u32 4294901760, %v2509_v43  ;;  %6028 = vmatprep.subr.mxu1 %v6468_v0 }
 0x4b8   :  { %5738 = vmatmul.mubr.f32.gmra.mxu0 %v2666_v3  ;;  %5851 = vmatmul.mubr.f32.gmra.mxu1 %v8431_v53  ;;  %v6405_v3 = vld [vmem:[#allocation2 + $0x50] sm:$0xff]  ;;  %v2706_v39 = vand.u32 4294901760, %v2705_v22 }
 0x4b9   :  { %5740 = vmatprep.mubr.msk.f32.mxu0 %vm6469_vm0, %v6468_v0  ;;  %5853 = vmatprep.mubr.msk.f32.mxu1 %vm6469_vm0, %v6468_v0  ;;  %9815 = vst [vmem:[#allocation24_spill] sm:$0xff] %v8495_v51  ;;  %v2510_v45 = vmul.f32 %v6405_v3, %v8356_v15  ;;  %v8511_v3 = vsub.f32 %v2509_v43, %v8495_v51  ;;  %v2696_v43 = vand.u32 4294901760, %v2695_v12  ;;  %v6408_v12 = vld [vmem:[#allocation2 + $0x68] sm:$0xff]  ;;  %v6409_v22 = vld [vmem:[#allocation2 + $0x70] sm:$0xff] }
 0x4ba   :  { %5917 = vmatprep.subr.mxu0 %v6468_v0  ;;  %6029 = vmatpush3.msra.mxu1 %v8211_v7 }
 0x4bb   :  { %5918 = vmatpush3.msra.mxu0 %v8195_v5  ;;  %v8514_v35 = vand.u32 4294901760, %v2510_v45  ;;  %6030 = vmatprep.subr.mxu1 %v6468_v0 }
 0x4bc   :  { %5741 = vmatmul.mubr.f32.gmra.mxu0 %v2676_v44  ;;  %5854 = vmatmul.mubr.f32.gmra.mxu1 %v8453_v61  ;;  %v6406_v44 = vld [vmem:[#allocation2 + $0x58] sm:$0xff] }
 0x4bd   :  { %5743 = vmatprep.mubr.msk.f32.mxu0 %vm6469_vm0, %v6468_v0  ;;  %5856 = vmatprep.mubr.msk.f32.mxu1 %vm6469_vm0, %v6468_v0  ;;  %9816 = vst [vmem:[#allocation27_spill] sm:$0xff] %v8514_v35  ;;  %v2511_v2 = vmul.f32 %v6406_v44, %v8356_v15  ;;  %v2512_v44 = vmul.f32 %v6407_v13, %v8356_v15 }
 0x4be   :  { %5919 = vmatprep.subr.mxu0 %v6468_v0  ;;  %6031 = vmatpush3.msra.mxu1 %v8226_v28  ;;  %v8531_v61 = vsub.f32 %v2510_v45, %v8514_v35  ;;  %v2513_v13 = vmul.f32 %v6408_v12, %v8356_v15  ;;  %v2514_v12 = vmul.f32 %v6409_v22, %v8356_v15 }
 0x4bf   :  { %5920 = vmatpush3.msra.mxu0 %v8209_v20  ;;  %6032 = vmatprep.subr.mxu1 %v6468_v0  ;;  %v8545_v45 = vand.u32 4294901760, %v2512_v44 }
 0x4c0   :  { %5744 = vmatmul.mubr.f32.gmra.mxu0 %v2686_v41  ;;  %5857 = vmatmul.mubr.f32.gmra.mxu1 %v8476_v18  ;;  %v9615_v41 = vand.u32 4294901760, %v8511_v3  ;;  %v8534_v18 = vand.u32 4294901760, %v2511_v2 }
 0x4c1   :  { %5746 = vmatprep.mubr.msk.f32.mxu0 %vm6469_vm0, %v6468_v0  ;;  %5859 = vmatprep.mubr.msk.f32.mxu1 %vm6469_vm0, %v6468_v0  ;;  %9818 = vst [vmem:[#allocation26_spill] sm:$0xff] %v8545_v45 }
 0x4c2   :  { %9817 = vst [vmem:[#allocation29_spill] sm:$0xff] %v8534_v18  ;;  %5921 = vmatprep.subr.mxu0 %v6468_v0  ;;  %6033 = vmatpush3.msra.mxu1 %v8236_v27  ;;  %v2715_v53 = vsub.f32 %v8511_v3, %v9615_v41 }
 0x4c3   :  { %5922 = vmatpush3.msra.mxu0 %v8223_v32  ;;  %6034 = vmatprep.subr.mxu1 %v6468_v0 }
 0x4c4   :  { %5747 = vmatmul.mubr.f32.gmra.mxu0 %v2696_v43  ;;  %5860 = vmatmul.mubr.f32.gmra.mxu1 %v8495_v51  ;;  %v8552_v43 = vsub.f32 %v2511_v2, %v8534_v18  ;;  %v9620_v51 = vand.u32 4294901760, %v8531_v61  ;;  %v8564_v2 = vand.u32 4294901760, %v2513_v13  ;;  %v2716_v41 = vand.u32 4294901760, %v2715_v53 }
 0x4c5   :  { %5749 = vmatprep.mubr.msk.f32.mxu0 %vm6469_vm0, %v6468_v0  ;;  %5862 = vmatprep.mubr.msk.f32.mxu1 %vm6469_vm0, %v6468_v0  ;;  %v8583_v53 = vand.u32 4294901760, %v2514_v12 }
 0x4c6   :  { %5923 = vmatprep.subr.mxu0 %v6468_v0  ;;  %6035 = vmatpush3.msra.mxu1 %v8252_v17  ;;  %9819 = vst [vmem:[#allocation21_spill] sm:$0xff] %v8564_v2  ;;  %v2725_v38 = vsub.f32 %v8531_v61, %v9620_v51 }
 0x4c7   :  { %5924 = vmatpush3.msra.mxu0 %v8240_v9  ;;  %6036 = vmatprep.subr.mxu1 %v6468_v0  ;;  %9820 = vst [vmem:[#allocation28_spill] sm:$0xff] %v8583_v53 }
 0x4c8   :  { %5750 = vmatmul.mubr.f32.gmra.mxu0 %v2706_v39  ;;  %5863 = vmatmul.mubr.f32.gmra.mxu1 %v8514_v35  ;;  %v8571_v39 = vsub.f32 %v2512_v44, %v8545_v45  ;;  %v9625_v35 = vand.u32 4294901760, %v8552_v43  ;;  %v6410_v44 = vld [vmem:[#allocation2 + $0x78] sm:$0xff]  ;;  %v2726_v51 = vand.u32 4294901760, %v2725_v38  ;;  %v8603_v38 = vsub.f32 %v2514_v12, %v8583_v53 }
 0x4c9   :  { %5752 = vmatprep.mubr.msk.f32.mxu0 %vm6469_vm0, %v6468_v0  ;;  %5865 = vmatprep.mubr.msk.f32.mxu1 %vm6469_vm0, %v6468_v0  ;;  %v2515_v22 = vmul.f32 %v6410_v44, %v8356_v15 }
 0x4ca   :  { %5925 = vmatprep.subr.mxu0 %v6468_v0  ;;  %6037 = vmatpush3.msra.mxu1 %v8265_v40  ;;  %v2735_v16 = vsub.f32 %v8552_v43, %v9625_v35 }
 0x4cb   :  { %5926 = vmatpush3.msra.mxu0 %v8250_v59  ;;  %6038 = vmatprep.subr.mxu1 %v6468_v0 }
 0x4cc   :  { %5753 = vmatmul.mubr.f32.gmra.mxu0 %v2716_v41  ;;  %5866 = vmatmul.mubr.f32.gmra.mxu1 %v8534_v18  ;;  %v8590_v41 = vsub.f32 %v2513_v13, %v8564_v2  ;;  %v9630_v18 = vand.u32 4294901760, %v8571_v39  ;;  %v8605_v13 = vand.u32 4294901760, %v2515_v22  ;;  %v2736_v44 = vand.u32 4294901760, %v2735_v16 }
 0x4cd   :  { %5755 = vmatprep.mubr.msk.f32.mxu0 %vm6469_vm0, %v6468_v0  ;;  %5868 = vmatprep.mubr.msk.f32.mxu1 %vm6469_vm0, %v6468_v0 }
 0x4ce   :  { %5927 = vmatprep.subr.mxu0 %v6468_v0  ;;  %6039 = vmatpush3.msra.mxu1 %v8283_v63  ;;  %9821 = vst [vmem:[#allocation23_spill] sm:$0xff] %v8605_v13  ;;  %v2745_v35 = vsub.f32 %v8571_v39, %v9630_v18  ;;  %v8622_v16 = vsub.f32 %v2515_v22, %v8605_v13 }
 0x4cf   :  { %5928 = vmatpush3.msra.mxu0 %v8263_v10  ;;  %6040 = vmatprep.subr.mxu1 %v6468_v0 }
 0x4d0   :  { %5756 = vmatmul.mubr.f32.gmra.mxu0 %v2726_v51  ;;  %5869 = vmatmul.mubr.f32.gmra.mxu1 %v8545_v45  ;;  %v9635_v51 = vand.u32 4294901760, %v8590_v41  ;;  %v2516_v45 = vmul.f32 %v6411_v52, %v8356_v15  ;;  %v9640_v52 = vand.u32 4294901760, %v8603_v38  ;;  %v2746_v12 = vand.u32 4294901760, %v2745_v35 }
 0x4d1   :  { %5758 = vmatprep.mubr.msk.f32.mxu0 %vm6469_vm0, %v6468_v0  ;;  %5871 = vmatprep.mubr.msk.f32.mxu1 %vm6469_vm0, %v6468_v0  ;;  %v9645_v22 = vand.u32 4294901760, %v8622_v16 }
 0x4d2   :  { %5929 = vmatprep.subr.mxu0 %v6468_v0  ;;  %6041 = vmatpush3.msra.mxu1 %v8299_v49  ;;  %v2755_v18 = vsub.f32 %v8590_v41, %v9635_v51  ;;  %v8628_v57 = vand.u32 4294901760, %v2516_v45  ;;  %v2765_v35 = vsub.f32 %v8603_v38, %v9640_v52 }
 0x4d3   :  { %5930 = vmatpush3.msra.mxu0 %v8281_v26  ;;  %6042 = vmatprep.subr.mxu1 %v6468_v0 }
 0x4d4   :  { %5759 = vmatmul.mubr.f32.gmra.mxu0 %v2736_v44  ;;  %5872 = vmatmul.mubr.f32.gmra.mxu1 %v8564_v2  ;;  %9822 = vst [vmem:[#allocation25_spill] sm:$0xff] %v8628_v57  ;;  %v6412_v44 = vld [vmem:[#allocation2 + $0x88] sm:$0xff]  ;;  %v8645_v51 = vsub.f32 %v2516_v45, %v8628_v57  ;;  %v2775_v45 = vsub.f32 %v8622_v16, %v9645_v22 }
 0x4d5   :  { %5761 = vmatprep.mubr.msk.f32.mxu0 %vm6469_vm0, %v6468_v0  ;;  %5874 = vmatprep.mubr.msk.f32.mxu1 %vm6469_vm0, %v6468_v0  ;;  %v2517_v2 = vmul.f32 %v6412_v44, %v8356_v15  ;;  %v2756_v44 = vand.u32 4294901760, %v2755_v18  ;;  %v2766_v18 = vand.u32 4294901760, %v2765_v35  ;;  %v6415_v35 = vld [vmem:[#allocation2 + $0xa0] sm:$0xff] }
 0x4d6   :  { %5931 = vmatprep.subr.mxu0 %v6468_v0  ;;  %6043 = vmatpush3.msra.mxu1 %v8310_v19  ;;  %9823 = vst [vmem:[#allocation32_spill] sm:$0xff] %v8645_v51  ;;  %v9649_v52 = vand.u32 4294901760, %v8645_v51  ;;  %v2520_v22 = vmul.f32 %v6415_v35, %v8356_v15 }
 0x4d7   :  { %5932 = vmatpush3.msra.mxu0 %v8296_v60  ;;  %v8647_v58 = vand.u32 4294901760, %v2517_v2  ;;  %6044 = vmatprep.subr.mxu1 %v6468_v0 }
 0x4d8   :  { %5762 = vmatmul.mubr.f32.gmra.mxu0 %v2746_v12  ;;  %5875 = vmatmul.mubr.f32.gmra.mxu1 %v8583_v53  ;;  %v6413_v12 = vld [vmem:[#allocation2 + $0x90] sm:$0xff] }
 0x4d9   :  { %5764 = vmatprep.mubr.msk.f32.mxu0 %vm6469_vm0, %v6468_v0  ;;  %5877 = vmatprep.mubr.msk.f32.mxu1 %vm6469_vm0, %v6468_v0  ;;  %9824 = vst [vmem:[#allocation30_spill] sm:$0xff] %v8647_v58  ;;  %v2518_v53 = vmul.f32 %v6413_v12, %v8356_v15  ;;  %v8663_v12 = vsub.f32 %v2517_v2, %v8647_v58  ;;  %v2776_v2 = vand.u32 4294901760, %v2775_v45  ;;  %v8694_v45 = vand.u32 4294901760, %v2520_v22 }
 0x4da   :  { %5933 = vmatprep.subr.mxu0 %v6468_v0  ;;  %6045 = vmatpush3.msra.mxu1 %v8327_v50 }
 0x4db   :  { %5934 = vmatpush3.msra.mxu0 %v8314_v29  ;;  %9825 = vst [vmem:[#allocation9_spill] sm:$0xff] %v8663_v12  ;;  %v8666_v56 = vand.u32 4294901760, %v2518_v53  ;;  %6228 = vmatprep.subr.mxu1 %v6468_v0  ;;  %9828 = vst [vmem:[#allocation8_spill] sm:$0xff] %v8694_v45 }
 0x4dc   :  { %5765 = vmatmul.mubr.f32.gmra.mxu0 %v2756_v44  ;;  %5878 = vmatmul.mubr.f32.gmra.mxu1 %v8605_v13  ;;  %v6414_v44 = vld [vmem:[#allocation2 + $0x98] sm:$0xff] }
 0x4dd   :  { %5767 = vmatprep.mubr.msk.f32.mxu0 %vm6469_vm0, %v6468_v0  ;;  %5880 = vmatprep.mubr.msk.f32.mxu1 %vm6469_vm0, %v6468_v0  ;;  %9826 = vst [vmem:[#allocation31_spill] sm:$0xff] %v8666_v56  ;;  %v2519_v13 = vmul.f32 %v6414_v44, %v8356_v15  ;;  %v2785_v44 = vsub.f32 %v8645_v51, %v9649_v52 }
 0x4de   :  { %5935 = vmatprep.subr.mxu0 %v6468_v0  ;;  %v8682_v50 = vsub.f32 %v2518_v53, %v8666_v56  ;;  %v6416_v53 = vld [vmem:[#allocation2 + $0xa8] sm:$0xff] }
 0x4df   :  { %5936 = vmatpush3.msra.mxu0 %v8325_v14  ;;  %v2521_v35 = vmul.f32 %v6416_v53, %v8356_v15  ;;  %v2786_v52 = vand.u32 4294901760, %v2785_v44  ;;  %v6417_v53 = vld [vmem:[#allocation2 + $0xb0] sm:$0xff] }
 0x4e0   :  { %5768 = vmatmul.mubr.f32.gmra.mxu0 %v2766_v18  ;;  %5881 = vmatmul.mubr.f32.gmra.mxu1 %v8628_v57  ;;  %v9654_v18 = vand.u32 4294901760, %v8663_v12  ;;  %v8685_v57 = vand.u32 4294901760, %v2519_v13 }
 0x4e1   :  { %5770 = vmatprep.mubr.msk.f32.mxu0 %vm6469_vm0, %v6468_v0  ;;  %5883 = vmatprep.mubr.msk.f32.mxu1 %vm6469_vm0, %v6468_v0  ;;  %v8710_v44 = vand.u32 4294901760, %v2521_v35 }
 0x4e2   :  { %9827 = vst [vmem:[#allocation33_spill] sm:$0xff] %v8685_v57  ;;  %5937 = vmatprep.subr.mxu0 %v6468_v0  ;;  %v2795_v51 = vsub.f32 %v8663_v12, %v9654_v18  ;;  %v2522_v18 = vmul.f32 %v6417_v53, %v8356_v15 }
 0x4e3   :  { %5938 = vmatpush3.msra.mxu0 %v8335_v11 }
 0x4e4   :  { %5771 = vmatmul.mubr.f32.gmra.mxu0 %v2776_v2  ;;  %5884 = vmatmul.mubr.f32.gmra.mxu1 %v8647_v58  ;;  %v8701_v2 = vsub.f32 %v2519_v13, %v8685_v57  ;;  %v9660_v58 = vand.u32 4294901760, %v8682_v50  ;;  %v2796_v13 = vand.u32 4294901760, %v2795_v51  ;;  %v8725_v53 = vand.u32 4294901760, %v2522_v18  ;;  %v6418_v51 = vld [vmem:[#allocation2 + $0xb8] sm:$0xff] }
 0x4e5   :  { %5773 = vmatprep.mubr.msk.f32.mxu0 %vm6469_vm0, %v6468_v0  ;;  %5886 = vmatprep.mubr.msk.f32.mxu1 %vm6469_vm0, %v6468_v0  ;;  %v2523_v11 = vmul.f32 %v6418_v51, %v8356_v15 }
 0x4e6   :  { %9829 = vst [vmem:[#allocation10_spill] sm:$0xff] %v8701_v2  ;;  %6121 = vmatprep.subr.mxu0 %v6468_v0  ;;  %v2805_v12 = vsub.f32 %v8682_v50, %v9660_v58 }
 0x4e7   :  { %v8743_v51 = vand.u32 4294901760, %v2523_v11 }
 0x4e8   :  { %5774 = vmatmul.mubr.f32.gmra.mxu0 %v2786_v52  ;;  %5887 = vmatmul.mubr.f32.gmra.mxu1 %v8666_v56  ;;  %v8717_v52 = vsub.f32 %v2520_v22, %v8694_v45  ;;  %v9663_v56 = vand.u32 4294901760, %v8701_v2  ;;  %v2806_v58 = vand.u32 4294901760, %v2805_v12  ;;  %v8741_v12 = vsub.f32 %v2522_v18, %v8725_v53 }
 0x4e9   :  { %5776 = vmatprep.mubr.msk.f32.mxu0 %vm6469_vm0, %v6468_v0  ;;  %5889 = vmatprep.mubr.msk.f32.mxu1 %vm6469_vm0, %v6468_v0  ;;  %v8756_v18 = vsub.f32 %v2523_v11, %v8743_v51 }
 0x4ea   :  { %9830 = vst [vmem:[#allocation34_spill] sm:$0xff] %v8717_v52  ;;  %v2815_v22 = vsub.f32 %v8701_v2, %v9663_v56  ;;  %v6419_v2 = vld [vmem:[#allocation2 + $0xc0] sm:$0xff] }
 0x4ec   :  { %5777 = vmatmul.mubr.f32.gmra.mxu0 %v2796_v13  ;;  %5890 = vmatmul.mubr.f32.gmra.mxu1 %v8685_v57  ;;  %v8732_v13 = vsub.f32 %v2521_v35, %v8710_v44  ;;  %v9668_v57 = vand.u32 4294901760, %v8717_v52  ;;  %v2816_v56 = vand.u32 4294901760, %v2815_v22 }
 0x4ed   :  { %5779 = vmatprep.mubr.msk.f32.mxu0 %vm6469_vm0, %v6468_v0  ;;  %5892 = vmatprep.mubr.msk.f32.mxu1 %vm6469_vm0, %v6468_v0 }
 0x4ee   :  { %v2825_v35 = vsub.f32 %v8717_v52, %v9668_v57  ;;  %v9671_v52 = vand.u32 4294901760, %v8741_v12 }
 0x4f0   :  { %5780 = vmatmul.mubr.f32.gmra.mxu0 %v2806_v58  ;;  %5893 = vmatmul.mubr.f32.gmra.mxu1 %v8694_v45  ;;  %v2834_v58 = vand.u32 4294901760, %v8732_v13  ;;  %v2524_v45 = vmul.f32 %v6419_v2, %v8356_v15  ;;  %v2826_v22 = vand.u32 4294901760, %v2825_v35  ;;  %v2854_v35 = vand.u32 4294901760, %v8756_v18 }
 0x4f1   :  { %5782 = vmatprep.mubr.msk.f32.mxu0 %vm6469_vm0, %v6468_v0  ;;  %5895 = vmatprep.mubr.msk.f32.mxu1 %vm6469_vm0, %v6468_v0 }
 0x4f2   :  { %v2835_v57 = vsub.f32 %v8732_v13, %v2834_v58  ;;  %v8762_v15 = vand.u32 4294901760, %v2524_v45 }
 0x4f4   :  { %5783 = vmatmul.mubr.f32.gmra.mxu0 %v2816_v56  ;;  %5896 = vmatmul.mubr.f32.gmra.mxu1 %v8710_v44  ;;  %v2836_v11 = vand.u32 4294901760, %v2835_v57  ;;  %v2845_v56 = vsub.f32 %v8741_v12, %v9671_v52  ;;  %v8773_v2 = vsub.f32 %v2524_v45, %v8762_v15  ;;  %v2855_v57 = vsub.f32 %v8756_v18, %v2854_v35 }
 0x4f5   :  { %5785 = vmatprep.mubr.msk.f32.mxu0 %vm6469_vm0, %v6468_v0  ;;  %5898 = vmatprep.mubr.msk.f32.mxu1 %vm6469_vm0, %v6468_v0 }
 0x4f6   :  { %v2864_v52 = vand.u32 4294901760, %v8773_v2  ;;  %v2856_v45 = vand.u32 4294901760, %v2855_v57  ;;  %v9832_v57 = vand.u32 4294901760, %v8373_v42 }
 0x4f8   :  { %5786 = vmatmul.mubr.f32.gmra.mxu0 %v2826_v22  ;;  %5899 = vmatmul.mubr.f32.gmra.mxu1 %v8725_v53  ;;  %v2846_v22 = vand.u32 4294901760, %v2845_v56  ;;  %v9831_v56 = vand.u32 4294901760, %v8369_v46 }
 0x4f9   :  { %5788 = vmatprep.mubr.msk.f32.mxu0 %vm6469_vm0, %v6468_v0  ;;  %5901 = vmatprep.mubr.msk.f32.mxu1 %vm6469_vm0, %v6468_v0 }
 0x4fc   :  { %5789 = vmatmul.mubr.f32.gmra.mxu0 %v2836_v11  ;;  %5902 = vmatmul.mubr.f32.gmra.mxu1 %v8743_v51  ;;  %v2865_v11 = vsub.f32 %v8773_v2, %v2864_v52 }
 0x4fd   :  { %5791 = vmatprep.mubr.msk.f32.mxu0 %vm6469_vm0, %v6468_v0  ;;  %5904 = vmatprep.mubr.msk.f32.mxu1 %vm6469_vm0, %v6468_v0 }
 0x500   :  { %5792 = vmatmul.mubr.f32.gmra.mxu0 %v2846_v22  ;;  %5905 = vmatmul.mubr.f32.gmra.mxu1 %v8762_v15  ;;  %v2866_v22 = vand.u32 4294901760, %v2865_v11 }
 0x501   :  { %5794 = vmatprep.mubr.msk.f32.mxu0 %vm6469_vm0, %v6468_v0  ;;  %6046 = vmatprep.mubr.msk.f32.mxu1 %vm6469_vm0, %v6468_v0 }
 0x504   :  { %5795 = vmatmul.mubr.f32.gmra.mxu0 %v2856_v45  ;;  %6047 = vmatmul.mubr.f32.vlgmr.msra.gmra.mxu1 %v9831_v56  ;;  %v9834_v45 = vand.u32 4294901760, %v8132_v33  ;;  %v9837_v33 = vand.u32 4294901760, %v8138_v34  ;;  %v9841_v34 = vand.u32 4294901760, %v8184_v6  ;;  %v9844_v6 = vand.u32 4294901760, %v8470_v47  ;;  %v9876_v56 = vld [vmem:[#allocation14_spill] sm:$0xff] }
 0x505   :  { %5797 = vmatprep.mubr.msk.f32.mxu0 %vm6469_vm0, %v6468_v0  ;;  %6049 = vmatprep.mubr.msk.f32.mxu1 %vm6469_vm0, %v6468_v0 }
 0x506   :  { %6229 = vmatpush3.msra.mxu1 %v8120_v4  ;;  %v9833_v4 = vand.u32 4294901760, %v8381_v62 }
 0x507   :  { %6230 = vmatprep.subr.mxu1 %v6468_v0 }
 0x508   :  { %5798 = vmatmul.mubr.f32.gmra.mxu0 %v2866_v22  ;;  %6050 = vmatmul.mubr.f32.gmra.mxu1 %v9832_v57 }
 0x509   :  { %5939 = vmatprep.mubr.msk.f32.mxu0 %vm6469_vm0, %v6468_v0  ;;  %6052 = vmatprep.mubr.msk.f32.mxu1 %vm6469_vm0, %v6468_v0 }
 0x50a   :  { %6231 = vmatpush3.msra.mxu1 %v8122_v23  ;;  %v9835_v23 = vand.u32 4294901760, %v8135_v24  ;;  %v9839_v24 = vand.u32 4294901760, %v8142_v21  ;;  %v9842_v21 = vand.u32 4294901760, %v8451_v36 }
 0x50b   :  { %6232 = vmatprep.subr.mxu1 %v6468_v0 }
 0x50c   :  { %5940 = vmatmul.mubr.f32.vlgmr.msra.gmra.mxu0 %v8369_v46  ;;  %6053 = vmatmul.mubr.f32.gmra.mxu1 %v9833_v4  ;;  %v9836_v46 = vand.u32 4294901760, %v8402_v1 }
 0x50d   :  { %6122 = vmatpush3.msra.mxu0 %v9834_v45  ;;  %5942 = vmatprep.mubr.msk.f32.mxu0 %vm6469_vm0, %v6468_v0 }
 0x50e   :  { %6055 = vmatprep.mubr.msk.f32.mxu1 %vm6469_vm0, %v6468_v0  ;;  %6123 = vmatprep.subr.mxu0 %v6468_v0 }
 0x50f   :  { %6124 = vmatpush3.msra.mxu0 %v9835_v23  ;;  %6233 = vmatpush3.msra.mxu1 %v8124_v55  ;;  %v9838_v55 = vand.u32 4294901760, %v8421_v8  ;;  %v9877_v23 = vld [vmem:[#allocation15_spill] sm:$0xff] }
 0x510   :  { %5943 = vmatmul.mubr.f32.gmra.mxu0 %v8373_v42  ;;  %6056 = vmatmul.mubr.f32.gmra.mxu1 %v9836_v46 }
 0x511   :  { %5945 = vmatprep.mubr.msk.f32.mxu0 %vm6469_vm0, %v6468_v0  ;;  %6058 = vmatprep.mubr.msk.f32.mxu1 %vm6469_vm0, %v6468_v0 }
 0x512   :  { %6125 = vmatprep.subr.mxu0 %v6468_v0  ;;  %6234 = vmatprep.subr.mxu1 %v6468_v0 }
 0x513   :  { %6126 = vmatpush3.msra.mxu0 %v9837_v33  ;;  %6235 = vmatpush3.msra.mxu1 %v8129_v25  ;;  %v9840_v25 = vand.u32 4294901760, %v8438_v37 }
 0x514   :  { %5946 = vmatmul.mubr.f32.gmra.mxu0 %v8381_v62  ;;  %6059 = vmatmul.mubr.f32.gmra.mxu1 %v9838_v55 }
 0x515   :  { %5948 = vmatprep.mubr.msk.f32.mxu0 %vm6469_vm0, %v6468_v0  ;;  %6061 = vmatprep.mubr.msk.f32.mxu1 %vm6469_vm0, %v6468_v0 }
 0x516   :  { %6127 = vmatprep.subr.mxu0 %v6468_v0  ;;  %6236 = vmatprep.subr.mxu1 %v6468_v0 }
 0x517   :  { %6128 = vmatpush3.msra.mxu0 %v9839_v24  ;;  %6237 = vmatpush3.msra.mxu1 %v8178_v54  ;;  %v9843_v54 = vand.u32 4294901760, %v8195_v5  ;;  %v9846_v5 = vand.u32 4294901760, %v8493_v30 }
 0x518   :  { %5949 = vmatmul.mubr.f32.gmra.mxu0 %v8402_v1  ;;  %6062 = vmatmul.mubr.f32.gmra.mxu1 %v9840_v25  ;;  %v9863_v1 = vld [vmem:[#allocation32_spill] sm:$0xff] }
 0x519   :  { %5951 = vmatprep.mubr.msk.f32.mxu0 %vm6469_vm0, %v6468_v0  ;;  %6064 = vmatprep.mubr.msk.f32.mxu1 %vm6469_vm0, %v6468_v0  ;;  %v9878_v25 = vld [vmem:[#allocation16_spill] sm:$0xff] }
 0x51a   :  { %6129 = vmatprep.subr.mxu0 %v6468_v0  ;;  %6238 = vmatprep.subr.mxu1 %v6468_v0 }
 0x51b   :  { %6130 = vmatpush3.msra.mxu0 %v9841_v34  ;;  %6239 = vmatpush3.msra.mxu1 %v8186_v48  ;;  %v9845_v48 = vand.u32 4294901760, %v8209_v20  ;;  %v9848_v20 = vand.u32 4294901760, %v8511_v3 }
 0x51c   :  { %5952 = vmatmul.mubr.f32.gmra.mxu0 %v8421_v8  ;;  %6065 = vmatmul.mubr.f32.gmra.mxu1 %v9842_v21  ;;  %v9856_v8 = vand.u32 4294901760, %v8590_v41 }
 0x51d   :  { %5954 = vmatprep.mubr.msk.f32.mxu0 %vm6469_vm0, %v6468_v0  ;;  %6067 = vmatprep.mubr.msk.f32.mxu1 %vm6469_vm0, %v6468_v0 }
 0x51e   :  { %6131 = vmatprep.subr.mxu0 %v6468_v0  ;;  %6240 = vmatprep.subr.mxu1 %v6468_v0 }
 0x51f   :  { %6132 = vmatpush3.msra.mxu0 %v9843_v54  ;;  %6241 = vmatpush3.msra.mxu1 %v8197_v31  ;;  %v9847_v31 = vand.u32 4294901760, %v8223_v32  ;;  %v9850_v32 = vand.u32 4294901760, %v8531_v61 }
 0x520   :  { %5955 = vmatmul.mubr.f32.gmra.mxu0 %v8438_v37  ;;  %6068 = vmatmul.mubr.f32.gmra.mxu1 %v9844_v6  ;;  %v9869_v37 = vand.u32 4294901760, %v8682_v50 }
 0x521   :  { %5957 = vmatprep.mubr.msk.f32.mxu0 %vm6469_vm0, %v6468_v0  ;;  %6070 = vmatprep.mubr.msk.f32.mxu1 %vm6469_vm0, %v6468_v0 }
 0x522   :  { %6133 = vmatprep.subr.mxu0 %v6468_v0  ;;  %6242 = vmatprep.subr.mxu1 %v6468_v0 }
 0x523   :  { %6134 = vmatpush3.msra.mxu0 %v9845_v48  ;;  %6243 = vmatpush3.msra.mxu1 %v8211_v7  ;;  %v9849_v7 = vand.u32 4294901760, %v8240_v9  ;;  %v9853_v9 = vand.u32 4294901760, %v8263_v10  ;;  %v9857_v10 = vand.u32 4294901760, %v8296_v60  ;;  %v9861_v60 = vand.u32 4294901760, %v8325_v14  ;;  %v9867_v14 = vld [vmem:[#allocation9_spill] sm:$0xff] }
 0x524   :  { %5958 = vmatmul.mubr.f32.gmra.mxu0 %v8451_v36  ;;  %6071 = vmatmul.mubr.f32.gmra.mxu1 %v9846_v5  ;;  %v9868_v62 = vand.u32 4294901760, %v9867_v14  ;;  %v9870_v36 = vld [vmem:[#allocation10_spill] sm:$0xff]  ;;  %v9879_v5 = vld [vmem:[#allocation17_spill] sm:$0xff] }
 0x525   :  { %5960 = vmatprep.mubr.msk.f32.mxu0 %vm6469_vm0, %v6468_v0  ;;  %6073 = vmatprep.mubr.msk.f32.mxu1 %vm6469_vm0, %v6468_v0 }
 0x526   :  { %6135 = vmatprep.subr.mxu0 %v6468_v0  ;;  %6244 = vmatprep.subr.mxu1 %v6468_v0 }
 0x527   :  { %6136 = vmatpush3.msra.mxu0 %v9847_v31  ;;  %6245 = vmatpush3.msra.mxu1 %v8226_v28  ;;  %v9851_v28 = vand.u32 4294901760, %v8250_v59  ;;  %v9854_v59 = vand.u32 4294901760, %v8571_v39 }
 0x528   :  { %5961 = vmatmul.mubr.f32.gmra.mxu0 %v8470_v47  ;;  %6074 = vmatmul.mubr.f32.gmra.mxu1 %v9848_v20 }
 0x529   :  { %5963 = vmatprep.mubr.msk.f32.mxu0 %vm6469_vm0, %v6468_v0  ;;  %6076 = vmatprep.mubr.msk.f32.mxu1 %vm6469_vm0, %v6468_v0 }
 0x52a   :  { %6137 = vmatprep.subr.mxu0 %v6468_v0  ;;  %6246 = vmatprep.subr.mxu1 %v6468_v0 }
 0x52b   :  { %6138 = vmatpush3.msra.mxu0 %v9849_v7  ;;  %6247 = vmatpush3.msra.mxu1 %v8236_v27  ;;  %v9852_v27 = vand.u32 4294901760, %v8552_v43 }
 0x52c   :  { %5964 = vmatmul.mubr.f32.gmra.mxu0 %v8493_v30  ;;  %6077 = vmatmul.mubr.f32.gmra.mxu1 %v9850_v32  ;;  %v9872_v30 = vld [vmem:[#allocation34_spill] sm:$0xff] }
 0x52d   :  { %5966 = vmatprep.mubr.msk.f32.mxu0 %vm6469_vm0, %v6468_v0  ;;  %6079 = vmatprep.mubr.msk.f32.mxu1 %vm6469_vm0, %v6468_v0  ;;  %v9873_v47 = vand.u32 4294901760, %v9872_v30 }
 0x52e   :  { %6139 = vmatprep.subr.mxu0 %v6468_v0  ;;  %6248 = vmatprep.subr.mxu1 %v6468_v0 }
 0x52f   :  { %6140 = vmatpush3.msra.mxu0 %v9851_v28  ;;  %6249 = vmatpush3.msra.mxu1 %v8252_v17  ;;  %v9855_v17 = vand.u32 4294901760, %v8281_v26  ;;  %v9859_v26 = vand.u32 4294901760, %v8314_v29  ;;  %v9865_v29 = vld [vmem:[#allocation12_spill] sm:$0xff] }
 0x530   :  { %5967 = vmatmul.mubr.f32.gmra.mxu0 %v8511_v3  ;;  %6080 = vmatmul.mubr.f32.gmra.mxu1 %v9852_v27  ;;  %v9866_v42 = vand.u32 4294901760, %v9865_v29  ;;  %v9880_v27 = vld [vmem:[#allocation18_spill] sm:$0xff] }
 0x531   :  { %5969 = vmatprep.mubr.msk.f32.mxu0 %vm6469_vm0, %v6468_v0  ;;  %6082 = vmatprep.mubr.msk.f32.mxu1 %vm6469_vm0, %v6468_v0 }
 0x532   :  { %6141 = vmatprep.subr.mxu0 %v6468_v0  ;;  %6250 = vmatprep.subr.mxu1 %v6468_v0 }
 0x533   :  { %6142 = vmatpush3.msra.mxu0 %v9853_v9  ;;  %6251 = vmatpush3.msra.mxu1 %v8265_v40  ;;  %v9858_v40 = vand.u32 4294901760, %v8603_v38 }
 0x534   :  { %5970 = vmatmul.mubr.f32.gmra.mxu0 %v8531_v61  ;;  %6083 = vmatmul.mubr.f32.gmra.mxu1 %v9854_v59  ;;  %v9871_v61 = vand.u32 4294901760, %v9870_v36 }
 0x535   :  { %5972 = vmatprep.mubr.msk.f32.mxu0 %vm6469_vm0, %v6468_v0  ;;  %6085 = vmatprep.mubr.msk.f32.mxu1 %vm6469_vm0, %v6468_v0 }
 0x536   :  { %6143 = vmatprep.subr.mxu0 %v6468_v0  ;;  %6252 = vmatprep.subr.mxu1 %v6468_v0 }
 0x537   :  { %6144 = vmatpush3.msra.mxu0 %v9855_v17  ;;  %6253 = vmatpush3.msra.mxu1 %v8283_v63  ;;  %v9860_v63 = vand.u32 4294901760, %v8622_v16 }
 0x538   :  { %5973 = vmatmul.mubr.f32.gmra.mxu0 %v8552_v43  ;;  %6086 = vmatmul.mubr.f32.gmra.mxu1 %v9856_v8 }
 0x539   :  { %5975 = vmatprep.mubr.msk.f32.mxu0 %vm6469_vm0, %v6468_v0  ;;  %6088 = vmatprep.mubr.msk.f32.mxu1 %vm6469_vm0, %v6468_v0 }
 0x53a   :  { %6145 = vmatprep.subr.mxu0 %v6468_v0  ;;  %6254 = vmatprep.subr.mxu1 %v6468_v0 }
 0x53b   :  { %6146 = vmatpush3.msra.mxu0 %v9857_v10  ;;  %6255 = vmatpush3.msra.mxu1 %v8299_v49  ;;  %v9862_v49 = vld [vmem:[#allocation11_spill] sm:$0xff] }
 0x53c   :  { %5976 = vmatmul.mubr.f32.gmra.mxu0 %v8571_v39  ;;  %6089 = vmatmul.mubr.f32.gmra.mxu1 %v9858_v40  ;;  %v9881_v40 = vld [vmem:[#allocation19_spill] sm:$0xff] }
 0x53d   :  { %5978 = vmatprep.mubr.msk.f32.mxu0 %vm6469_vm0, %v6468_v0  ;;  %6091 = vmatprep.mubr.msk.f32.mxu1 %vm6469_vm0, %v6468_v0 }
 0x53e   :  { %6147 = vmatprep.subr.mxu0 %v6468_v0  ;;  %6256 = vmatprep.subr.mxu1 %v6468_v0 }
 0x53f   :  { %6148 = vmatpush3.msra.mxu0 %v9859_v26  ;;  %6257 = vmatpush3.msra.mxu1 %v8310_v19  ;;  %v9864_v19 = vand.u32 4294901760, %v9863_v1 }
 0x540   :  { %5979 = vmatmul.mubr.f32.gmra.mxu0 %v8590_v41  ;;  %6092 = vmatmul.mubr.f32.gmra.mxu1 %v9860_v63 }
 0x541   :  { %5981 = vmatprep.mubr.msk.f32.mxu0 %vm6469_vm0, %v6468_v0  ;;  %6094 = vmatprep.mubr.msk.f32.mxu1 %vm6469_vm0, %v6468_v0 }
 0x542   :  { %6149 = vmatprep.subr.mxu0 %v6468_v0  ;;  %6258 = vmatprep.subr.mxu1 %v6468_v0 }
 0x543   :  { %6150 = vmatpush3.msra.mxu0 %v9861_v60  ;;  %6259 = vmatpush3.msra.mxu1 %v9862_v49 }
 0x544   :  { %5982 = vmatmul.mubr.f32.gmra.mxu0 %v8603_v38  ;;  %6095 = vmatmul.mubr.f32.gmra.mxu1 %v9864_v19  ;;  %v9882_v19 = vld [vmem:[#allocation20_spill] sm:$0xff] }
 0x545   :  { %5984 = vmatprep.mubr.msk.f32.mxu0 %vm6469_vm0, %v6468_v0  ;;  %6097 = vmatprep.mubr.msk.f32.mxu1 %vm6469_vm0, %v6468_v0 }
 0x546   :  { %6151 = vmatprep.subr.mxu0 %v6468_v0 }
 0x547   :  { %6152 = vmatpush3.msra.mxu0 %v9866_v42 }
 0x548   :  { %5985 = vmatmul.mubr.f32.gmra.mxu0 %v8622_v16  ;;  %6098 = vmatmul.mubr.f32.gmra.mxu1 %v9868_v62 }
 0x549   :  { %5987 = vmatprep.mubr.msk.f32.mxu0 %vm6469_vm0, %v6468_v0  ;;  %6100 = vmatprep.mubr.msk.f32.mxu1 %vm6469_vm0, %v6468_v0 }
 0x54c   :  { %5988 = vmatmul.mubr.f32.gmra.mxu0 %v9863_v1  ;;  %6101 = vmatmul.mubr.f32.gmra.mxu1 %v9869_v37 }
 0x54d   :  { %5990 = vmatprep.mubr.msk.f32.mxu0 %vm6469_vm0, %v6468_v0  ;;  %6103 = vmatprep.mubr.msk.f32.mxu1 %vm6469_vm0, %v6468_v0 }
 0x550   :  { %5991 = vmatmul.mubr.f32.gmra.mxu0 %v9867_v14  ;;  %6104 = vmatmul.mubr.f32.gmra.mxu1 %v9871_v61 }
 0x551   :  { %5993 = vmatprep.mubr.msk.f32.mxu0 %vm6469_vm0, %v6468_v0  ;;  %6106 = vmatprep.mubr.msk.f32.mxu1 %vm6469_vm0, %v6468_v0 }
 0x554   :  { %5994 = vmatmul.mubr.f32.gmra.mxu0 %v8682_v50  ;;  %6107 = vmatmul.mubr.f32.gmra.mxu1 %v9873_v47  ;;  %v9874_v50 = vand.u32 4294901760, %v8741_v12 }
 0x555   :  { %5996 = vmatprep.mubr.msk.f32.mxu0 %vm6469_vm0, %v6468_v0  ;;  %6109 = vmatprep.mubr.msk.f32.mxu1 %vm6469_vm0, %v6468_v0 }
 0x558   :  { %5997 = vmatmul.mubr.f32.gmra.mxu0 %v9870_v36  ;;  %6110 = vmatmul.mubr.f32.gmra.mxu1 %v2834_v58  ;;  %v9883_v36 = vld [vmem:[#allocation22_spill] sm:$0xff] }
 0x559   :  { %5999 = vmatprep.mubr.msk.f32.mxu0 %vm6469_vm0, %v6468_v0  ;;  %6112 = vmatprep.mubr.msk.f32.mxu1 %vm6469_vm0, %v6468_v0 }
 0x55c   :  { %6000 = vmatmul.mubr.f32.gmra.mxu0 %v9872_v30  ;;  %6113 = vmatmul.mubr.f32.gmra.mxu1 %v9874_v50 }
 0x55d   :  { %6002 = vmatprep.mubr.msk.f32.mxu0 %vm6469_vm0, %v6468_v0  ;;  %6115 = vmatprep.mubr.msk.f32.mxu1 %vm6469_vm0, %v6468_v0 }
 0x560   :  { %v3019_v3 = vpop.f32.mrf.mxu1  ;;  %6003 = vmatmul.mubr.f32.gmra.mxu0 %v8732_v13  ;;  %6116 = vmatmul.mubr.f32.gmra.mxu1 %v2854_v35  ;;  %v9875_v13 = vld [vmem:[#allocation13_spill] sm:$0xff] }
 0x561   :  { %6005 = vmatprep.mubr.msk.f32.mxu0 %vm6469_vm0, %v6468_v0  ;;  %6118 = vmatprep.mubr.msk.f32.mxu1 %vm6469_vm0, %v6468_v0 }
 0x562   :  { %v5834_v43 = vpop.f32.mrf.mxu1 }
 0x563   :  { %v9884_v43 = vld [vmem:[#allocation24_spill] sm:$0xff] }
 0x564   :  { %v3025_v39 = vpop.f32.mrf.mxu1  ;;  %6006 = vmatmul.mubr.f32.gmra.mxu0 %v8741_v12  ;;  %6119 = vmatmul.mubr.f32.gmra.mxu1 %v2864_v52 }
 0x565   :  { %6008 = vmatprep.mubr.msk.f32.mxu0 %vm6469_vm0, %v6468_v0  ;;  %6260 = vmatprep.mubr.msk.f32.mxu1 %vm6469_vm0, %v6468_v0 }
 0x566   :  { %v5837_v41 = vpop.f32.mrf.mxu1 }
 0x568   :  { %v2628_v38 = vpop.f32.mrf.mxu0  ;;  %v3031_v16 = vpop.f32.mrf.mxu1  ;;  %6009 = vmatmul.mubr.f32.gmra.mxu0 %v8756_v18  ;;  %6261 = vmatmul.mubr.f32.vlgmr.msra.gmra.mxu1 %v9875_v13 }
 0x569   :  { %v9046_v58 = vadd.f32 %v3019_v3, %v2628_v38  ;;  %6011 = vmatprep.mubr.msk.f32.mxu0 %vm6469_vm0, %v6468_v0  ;;  %6263 = vmatprep.mubr.msk.f32.mxu1 %vm6469_vm0, %v6468_v0 }
 0x56a   :  { %v5727_v52 = vpop.f32.mrf.mxu0  ;;  %v5840_v12 = vpop.f32.mrf.mxu1 }
 0x56b   :  { %v9885_v52 = vld [vmem:[#allocation27_spill] sm:$0xff] }
 0x56c   :  { %v2638_v35 = vpop.f32.mrf.mxu0  ;;  %v3037_v11 = vpop.f32.mrf.mxu1  ;;  %6012 = vmatmul.mubr.f32.gmra.mxu0 %v8773_v2  ;;  %6264 = vmatmul.mubr.f32.gmra.mxu1 %v9876_v56 }
 0x56d   :  { %v9054_v22 = vadd.f32 %v3025_v39, %v2638_v35  ;;  %6153 = vmatprep.mubr.msk.f32.mxu0 %vm6469_vm0, %v6468_v0  ;;  %6266 = vmatprep.mubr.msk.f32.mxu1 %vm6469_vm0, %v6468_v0 }
 0x56e   :  { %v5730_v18 = vpop.f32.mrf.mxu0  ;;  %v5843_v57 = vpop.f32.mrf.mxu1 }
 0x56f   :  { %v9886_v57 = vld [vmem:[#allocation29_spill] sm:$0xff] }
 0x570   :  { %v2648_v4 = vpop.f32.mrf.mxu0  ;;  %v3043_v45 = vpop.f32.mrf.mxu1  ;;  %6154 = vmatmul.mubr.f32.vlgmr.msra.gmra.mxu0 %v9875_v13  ;;  %6267 = vmatmul.mubr.f32.gmra.mxu1 %v9877_v23 }
 0x571   :  { %v9062_v46 = vadd.f32 %v3031_v16, %v2648_v4  ;;  %6156 = vmatprep.mubr.msk.f32.mxu0 %vm6469_vm0, %v6468_v0  ;;  %6269 = vmatprep.mubr.msk.f32.mxu1 %vm6469_vm0, %v6468_v0 }
 0x572   :  { %v5733_v2 = vpop.f32.mrf.mxu0  ;;  %v5846_v33 = vpop.f32.mrf.mxu1 }
 0x574   :  { %v2658_v55 = vpop.f32.mrf.mxu0  ;;  %v3049_v24 = vpop.f32.mrf.mxu1  ;;  %6157 = vmatmul.mubr.f32.gmra.mxu0 %v9876_v56  ;;  %6270 = vmatmul.mubr.f32.gmra.mxu1 %v9878_v25 }
 0x575   :  { %v9070_v34 = vadd.f32 %v3037_v11, %v2658_v55  ;;  %6159 = vmatprep.mubr.msk.f32.mxu0 %vm6469_vm0, %v6468_v0  ;;  %6272 = vmatprep.mubr.msk.f32.mxu1 %vm6469_vm0, %v6468_v0  ;;  %v9887_v55 = vld [vmem:[#allocation26_spill] sm:$0xff] }
 0x576   :  { %v5736_v21 = vpop.f32.mrf.mxu0  ;;  %v5849_v54 = vpop.f32.mrf.mxu1 }
 0x578   :  { %v2668_v6 = vpop.f32.mrf.mxu0  ;;  %v3055_v48 = vpop.f32.mrf.mxu1  ;;  %6160 = vmatmul.mubr.f32.gmra.mxu0 %v9877_v23  ;;  %6273 = vmatmul.mubr.f32.gmra.mxu1 %v9879_v5 }
 0x579   :  { %v9078_v31 = vadd.f32 %v3043_v45, %v2668_v6  ;;  %6162 = vmatprep.mubr.msk.f32.mxu0 %vm6469_vm0, %v6468_v0  ;;  %6275 = vmatprep.mubr.msk.f32.mxu1 %vm6469_vm0, %v6468_v0 }
 0x57a   :  { %v5739_v20 = vpop.f32.mrf.mxu0  ;;  %v5852_v7 = vpop.f32.mrf.mxu1 }
 0x57c   :  { %v2678_v32 = vpop.f32.mrf.mxu0  ;;  %v3061_v28 = vpop.f32.mrf.mxu1  ;;  %6163 = vmatmul.mubr.f32.gmra.mxu0 %v9878_v25  ;;  %6276 = vmatmul.mubr.f32.gmra.mxu1 %v9880_v27 }
 0x57d   :  { %v9086_v9 = vadd.f32 %v3049_v24, %v2678_v32  ;;  %6165 = vmatprep.mubr.msk.f32.mxu0 %vm6469_vm0, %v6468_v0  ;;  %6278 = vmatprep.mubr.msk.f32.mxu1 %vm6469_vm0, %v6468_v0 }
 0x57e   :  { %v5742_v59 = vpop.f32.mrf.mxu0  ;;  %v5855_v17 = vpop.f32.mrf.mxu1 }
 0x580   :  { %v2688_v8 = vpop.f32.mrf.mxu0  ;;  %v3067_v10 = vpop.f32.mrf.mxu1  ;;  %6166 = vmatmul.mubr.f32.gmra.mxu0 %v9879_v5  ;;  %6279 = vmatmul.mubr.f32.gmra.mxu1 %v9881_v40 }
 0x581   :  { %v9094_v26 = vadd.f32 %v3055_v48, %v2688_v8  ;;  %6168 = vmatprep.mubr.msk.f32.mxu0 %vm6469_vm0, %v6468_v0  ;;  %6281 = vmatprep.mubr.msk.f32.mxu1 %vm6469_vm0, %v6468_v0  ;;  %v9888_v48 = vld [vmem:[#allocation21_spill] sm:$0xff] }
 0x582   :  { %v5745_v63 = vpop.f32.mrf.mxu0  ;;  %v5858_v60 = vpop.f32.mrf.mxu1 }
 0x583   :  { %v9890_v63 = vld [vmem:[#allocation23_spill] sm:$0xff] }
 0x584   :  { %v2698_v49 = vpop.f32.mrf.mxu0  ;;  %v3073_v1 = vpop.f32.mrf.mxu1  ;;  %6169 = vmatmul.mubr.f32.gmra.mxu0 %v9880_v27  ;;  %6282 = vmatmul.mubr.f32.gmra.mxu1 %v9882_v19  ;;  %v9889_v27 = vld [vmem:[#allocation28_spill] sm:$0xff] }
 0x585   :  { %v9102_v29 = vadd.f32 %v3061_v28, %v2698_v49  ;;  %6171 = vmatprep.mubr.msk.f32.mxu0 %vm6469_vm0, %v6468_v0  ;;  %6284 = vmatprep.mubr.msk.f32.mxu1 %vm6469_vm0, %v6468_v0 }
 0x586   :  { %v5748_v42 = vpop.f32.mrf.mxu0  ;;  %v5861_v14 = vpop.f32.mrf.mxu1 }
 0x587   :  { %v9891_v14 = vld [vmem:[#allocation25_spill] sm:$0xff] }
 0x588   :  { %v2708_v62 = vpop.f32.mrf.mxu0  ;;  %v3079_v37 = vpop.f32.mrf.mxu1  ;;  %6172 = vmatmul.mubr.f32.gmra.mxu0 %v9881_v40  ;;  %6285 = vmatmul.mubr.f32.gmra.mxu1 %v9883_v36 }
 0x589   :  { %v9110_v61 = vadd.f32 %v3067_v10, %v2708_v62  ;;  %6174 = vmatprep.mubr.msk.f32.mxu0 %vm6469_vm0, %v6468_v0  ;;  %6287 = vmatprep.mubr.msk.f32.mxu1 %vm6469_vm0, %v6468_v0 }
 0x58a   :  { %v5751_v30 = vpop.f32.mrf.mxu0  ;;  %v5864_v47 = vpop.f32.mrf.mxu1 }
 0x58c   :  { %v2718_v50 = vpop.f32.mrf.mxu0  ;;  %v3085_v3 = vpop.f32.mrf.mxu1  ;;  %6175 = vmatmul.mubr.f32.gmra.mxu0 %v9882_v19  ;;  %6288 = vmatmul.mubr.f32.gmra.mxu1 %v9884_v43 }
 0x58d   :  { %v9118_v39 = vadd.f32 %v3073_v1, %v2718_v50  ;;  %6177 = vmatprep.mubr.msk.f32.mxu0 %vm6469_vm0, %v6468_v0  ;;  %6290 = vmatprep.mubr.msk.f32.mxu1 %vm6469_vm0, %v6468_v0  ;;  %v9892_v50 = vld [vmem:[#allocation30_spill] sm:$0xff] }
 0x58e   :  { %v5754_v41 = vpop.f32.mrf.mxu0  ;;  %v5867_v38 = vpop.f32.mrf.mxu1 }
 0x590   :  { %v2728_v16 = vpop.f32.mrf.mxu0  ;;  %v3091_v13 = vpop.f32.mrf.mxu1  ;;  %6178 = vmatmul.mubr.f32.gmra.mxu0 %v9883_v36  ;;  %6291 = vmatmul.mubr.f32.gmra.mxu1 %v9885_v52 }
 0x591   :  { %v9126_v12 = vadd.f32 %v3079_v37, %v2728_v16  ;;  %6180 = vmatprep.mubr.msk.f32.mxu0 %vm6469_vm0, %v6468_v0  ;;  %6293 = vmatprep.mubr.msk.f32.mxu1 %vm6469_vm0, %v6468_v0 }
 0x592   :  { %v5757_v35 = vpop.f32.mrf.mxu0  ;;  %v5870_v11 = vpop.f32.mrf.mxu1 }
 0x594   :  { %v2738_v56 = vpop.f32.mrf.mxu0  ;;  %v3097_v18 = vpop.f32.mrf.mxu1  ;;  %6181 = vmatmul.mubr.f32.gmra.mxu0 %v9884_v43  ;;  %6294 = vmatmul.mubr.f32.gmra.mxu1 %v9886_v57 }
 0x595   :  { %v9134_v4 = vadd.f32 %v3085_v3, %v2738_v56  ;;  %6183 = vmatprep.mubr.msk.f32.mxu0 %vm6469_vm0, %v6468_v0  ;;  %6296 = vmatprep.mubr.msk.f32.mxu1 %vm6469_vm0, %v6468_v0 }
 0x596   :  { %v5760_v45 = vpop.f32.mrf.mxu0  ;;  %v5873_v23 = vpop.f32.mrf.mxu1 }
 0x598   :  { %v2748_v2 = vpop.f32.mrf.mxu0  ;;  %v3103_v33 = vpop.f32.mrf.mxu1  ;;  %6184 = vmatmul.mubr.f32.gmra.mxu0 %v9885_v52  ;;  %6297 = vmatmul.mubr.f32.gmra.mxu1 %v9887_v55 }
 0x599   :  { %v9142_v24 = vadd.f32 %v3091_v13, %v2748_v2  ;;  %6186 = vmatprep.mubr.msk.f32.mxu0 %vm6469_vm0, %v6468_v0  ;;  %6299 = vmatprep.mubr.msk.f32.mxu1 %vm6469_vm0, %v6468_v0  ;;  %v9893_v13 = vld [vmem:[#allocation31_spill] sm:$0xff] }
 0x59a   :  { %v5763_v25 = vpop.f32.mrf.mxu0  ;;  %v5876_v21 = vpop.f32.mrf.mxu1 }
 0x59b   :  { %v9895_v25 = vld [vmem:[#allocation8_spill] sm:$0xff] }
 0x59c   :  { %v2758_v54 = vpop.f32.mrf.mxu0  ;;  %v3109_v6 = vpop.f32.mrf.mxu1  ;;  %6187 = vmatmul.mubr.f32.gmra.mxu0 %v9886_v57  ;;  %6300 = vmatmul.mubr.f32.gmra.mxu1 %v9888_v48  ;;  %v9894_v57 = vld [vmem:[#allocation33_spill] sm:$0xff] }
 0x59d   :  { %v9150_v5 = vadd.f32 %v3097_v18, %v2758_v54  ;;  %6189 = vmatprep.mubr.msk.f32.mxu0 %vm6469_vm0, %v6468_v0  ;;  %6302 = vmatprep.mubr.msk.f32.mxu1 %vm6469_vm0, %v6468_v0 }
 0x59e   :  { %v5766_v20 = vpop.f32.mrf.mxu0  ;;  %v5879_v7 = vpop.f32.mrf.mxu1 }
 0x5a0   :  { %v2768_v32 = vpop.f32.mrf.mxu0  ;;  %v3115_v28 = vpop.f32.mrf.mxu1  ;;  %6190 = vmatmul.mubr.f32.gmra.mxu0 %v9887_v55  ;;  %6303 = vmatmul.mubr.f32.gmra.mxu1 %v9889_v27 }
 0x5a1   :  { %v9158_v59 = vadd.f32 %v3103_v33, %v2768_v32  ;;  %6192 = vmatprep.mubr.msk.f32.mxu0 %vm6469_vm0, %v6468_v0  ;;  %6305 = vmatprep.mubr.msk.f32.mxu1 %vm6469_vm0, %v6468_v0 }
 0x5a2   :  { %v5769_v17 = vpop.f32.mrf.mxu0  ;;  %v5882_v8 = vpop.f32.mrf.mxu1 }
 0x5a4   :  { %v2778_v10 = vpop.f32.mrf.mxu0  ;;  %v3121_v40 = vpop.f32.mrf.mxu1  ;;  %6193 = vmatmul.mubr.f32.gmra.mxu0 %v9888_v48  ;;  %6306 = vmatmul.mubr.f32.gmra.mxu1 %v9890_v63 }
 0x5a5   :  { %v9166_v60 = vadd.f32 %v3109_v6, %v2778_v10  ;;  %6195 = vmatprep.mubr.msk.f32.mxu0 %vm6469_vm0, %v6468_v0  ;;  %6308 = vmatprep.mubr.msk.f32.mxu1 %vm6469_vm0, %v6468_v0 }
 0x5a6   :  { %v5772_v49 = vpop.f32.mrf.mxu0  ;;  %v5885_v1 = vpop.f32.mrf.mxu1 }
 0x5a8   :  { %v2788_v19 = vpop.f32.mrf.mxu0  ;;  %v3127_v42 = vpop.f32.mrf.mxu1  ;;  %6196 = vmatmul.mubr.f32.gmra.mxu0 %v9889_v27  ;;  %6309 = vmatmul.mubr.f32.gmra.mxu1 %v9891_v14 }
 0x5a9   :  { %v9174_v62 = vadd.f32 %v3115_v28, %v2788_v19  ;;  %6198 = vmatprep.mubr.msk.f32.mxu0 %vm6469_vm0, %v6468_v0  ;;  %6311 = vmatprep.mubr.msk.f32.mxu1 %vm6469_vm0, %v6468_v0 }
 0x5aa   :  { %v5775_v37 = vpop.f32.mrf.mxu0  ;;  %v5888_v36 = vpop.f32.mrf.mxu1 }
 0x5ac   :  { %v2798_v30 = vpop.f32.mrf.mxu0  ;;  %v3133_v47 = vpop.f32.mrf.mxu1  ;;  %6199 = vmatmul.mubr.f32.gmra.mxu0 %v9890_v63  ;;  %6312 = vmatmul.mubr.f32.gmra.mxu1 %v9892_v50 }
 0x5ad   :  { %v9182_v3 = vadd.f32 %v3121_v40, %v2798_v30  ;;  %6201 = vmatprep.mubr.msk.f32.mxu0 %vm6469_vm0, %v6468_v0  ;;  %6314 = vmatprep.mubr.msk.f32.mxu1 %vm6469_vm0, %v6468_v0 }
 0x5ae   :  { %v5778_v43 = vpop.f32.mrf.mxu0  ;;  %v5891_v41 = vpop.f32.mrf.mxu1 }
 0x5b0   :  { %v2808_v38 = vpop.f32.mrf.mxu0  ;;  %v3139_v16 = vpop.f32.mrf.mxu1  ;;  %6202 = vmatmul.mubr.f32.gmra.mxu0 %v9891_v14  ;;  %6315 = vmatmul.mubr.f32.gmra.mxu1 %v9893_v13 }
 0x5b1   :  { %v9190_v52 = vadd.f32 %v3127_v42, %v2808_v38  ;;  %6204 = vmatprep.mubr.msk.f32.mxu0 %vm6469_vm0, %v6468_v0  ;;  %6317 = vmatprep.mubr.msk.f32.mxu1 %vm6469_vm0, %v6468_v0 }
 0x5b2   :  { %v5781_v35 = vpop.f32.mrf.mxu0  ;;  %v5894_v11 = vpop.f32.mrf.mxu1 }
 0x5b4   :  { %v2818_v56 = vpop.f32.mrf.mxu0  ;;  %v3145_v18 = vpop.f32.mrf.mxu1  ;;  %6205 = vmatmul.mubr.f32.gmra.mxu0 %v9892_v50  ;;  %6318 = vmatmul.mubr.f32.gmra.mxu1 %v9894_v57 }
 0x5b5   :  { %v9198_v45 = vadd.f32 %v3133_v47, %v2818_v56  ;;  %6207 = vmatprep.mubr.msk.f32.mxu0 %vm6469_vm0, %v6468_v0  ;;  %6320 = vmatprep.mubr.msk.f32.mxu1 %vm6469_vm0, %v6468_v0 }
 0x5b6   :  { %v5784_v23 = vpop.f32.mrf.mxu0  ;;  %v5897_v2 = vpop.f32.mrf.mxu1 }
 0x5b8   :  { %v2828_v33 = vpop.f32.mrf.mxu0  ;;  %v3151_v55 = vpop.f32.mrf.mxu1  ;;  %6208 = vmatmul.mubr.f32.gmra.mxu0 %v9893_v13  ;;  %6321 = vmatmul.mubr.f32.gmra.mxu1 %v9895_v25 }
 0x5b9   :  { %v9206_v21 = vadd.f32 %v3139_v16, %v2828_v33  ;;  %6210 = vmatprep.mubr.msk.f32.mxu0 %vm6469_vm0, %v6468_v0  ;;  %6323 = vmatprep.mubr.msk.f32.mxu1 %vm6469_vm0, %v6468_v0 }
 0x5ba   :  { %v5787_v54 = vpop.f32.mrf.mxu0  ;;  %v5900_v6 = vpop.f32.mrf.mxu1 }
 0x5bc   :  { %v2838_v48 = vpop.f32.mrf.mxu0  ;;  %v3157_v20 = vpop.f32.mrf.mxu1  ;;  %6211 = vmatmul.mubr.f32.gmra.mxu0 %v9894_v57  ;;  %6324 = vmatmul.mubr.f32.gmra.mxu1 %v8710_v44 }
 0x5bd   :  { %v9214_v7 = vadd.f32 %v3145_v18, %v2838_v48  ;;  %6213 = vmatprep.mubr.msk.f32.mxu0 %vm6469_vm0, %v6468_v0  ;;  %6326 = vmatprep.mubr.msk.f32.mxu1 %vm6469_vm0, %v6468_v0 }
 0x5be   :  { %v5790_v32 = vpop.f32.mrf.mxu0  ;;  %v5903_v28 = vpop.f32.mrf.mxu1 }
 0x5c0   :  { %v2848_v27 = vpop.f32.mrf.mxu0  ;;  %v3163_v17 = vpop.f32.mrf.mxu1  ;;  %6214 = vmatmul.mubr.f32.gmra.mxu0 %v9895_v25  ;;  %6327 = vmatmul.mubr.f32.gmra.mxu1 %v8725_v53 }
 0x5c1   :  { %v9222_v8 = vadd.f32 %v3151_v55, %v2848_v27  ;;  %6216 = vmatprep.mubr.msk.f32.mxu0 %vm6469_vm0, %v6468_v0  ;;  %6329 = vmatprep.mubr.msk.f32.mxu1 %vm6469_vm0, %v6468_v0 }
 0x5c2   :  { %v5793_v10 = vpop.f32.mrf.mxu0  ;;  %v5906_v40 = vpop.f32.mrf.mxu1 }
 0x5c4   :  { %v2858_v63 = vpop.f32.mrf.mxu0  ;;  %v3524_v49 = vpop.f32.mrf.mxu1  ;;  %6217 = vmatmul.mubr.f32.gmra.mxu0 %v8710_v44  ;;  %6330 = vmatmul.mubr.f32.gmra.mxu1 %v8743_v51 }
 0x5c5   :  { %v9230_v1 = vadd.f32 %v3157_v20, %v2858_v63  ;;  %6219 = vmatprep.mubr.msk.f32.mxu0 %vm6469_vm0, %v6468_v0  ;;  %6332 = vmatprep.mubr.msk.f32.mxu1 %vm6469_vm0, %v6468_v0 }
 0x5c6   :  { %v5796_v19 = vpop.f32.mrf.mxu0  ;;  %v6048_v42 = vpop.f32.mrf.mxu1 }
 0x5c8   :  { %v2868_v14 = vpop.f32.mrf.mxu0  ;;  %v3532_v37 = vpop.f32.mrf.mxu1  ;;  %6220 = vmatmul.mubr.f32.gmra.mxu0 %v8725_v53  ;;  %6333 = vmatmul.mubr.f32.gmra.mxu1 %v8762_v15 }
 0x5c9   :  { %v9238_v36 = vadd.f32 %v3163_v17, %v2868_v14  ;;  %6222 = vmatprep.mubr.msk.f32.mxu0 %vm6469_vm0, %v6468_v0 }
 0x5ca   :  { %v5799_v44 = vpop.f32.mrf.mxu0  ;;  %v6051_v30 = vpop.f32.mrf.mxu1 }
 0x5cc   :  { %v3267_v47 = vpop.f32.mrf.mxu0  ;;  %v3540_v50 = vpop.f32.mrf.mxu1  ;;  %6223 = vmatmul.mubr.f32.gmra.mxu0 %v8743_v51 }
 0x5cd   :  { %v3268_v43 = vadd.f32 %v3267_v47, %v9046_v58  ;;  %6225 = vmatprep.mubr.msk.f32.mxu0 %vm6469_vm0, %v6468_v0 }
 0x5ce   :  { %v5941_v41 = vpop.f32.mrf.mxu0  ;;  %v6054_v53 = vpop.f32.mrf.mxu1 }
 0x5cf   :  { %v9246_v38 = vadd.f32 %v3524_v49, %v3268_v43 }
 0x5d0   :  { %v3274_v16 = vpop.f32.mrf.mxu0  ;;  %v3548_v13 = vpop.f32.mrf.mxu1  ;;  %6226 = vmatmul.mubr.f32.gmra.mxu0 %v8762_v15 }
 0x5d1   :  { %v3275_v35 = vadd.f32 %v3274_v16, %v9054_v22 }
 0x5d2   :  { %v5944_v11 = vpop.f32.mrf.mxu0  ;;  %v6057_v56 = vpop.f32.mrf.mxu1 }
 0x5d3   :  { %v9250_v18 = vadd.f32 %v3532_v37, %v3275_v35 }
 0x5d4   :  { %v3281_v51 = vpop.f32.mrf.mxu0  ;;  %v3556_v57 = vpop.f32.mrf.mxu1 }
 0x5d5   :  { %v3282_v58 = vadd.f32 %v3281_v51, %v9062_v46 }
 0x5d6   :  { %v5947_v23 = vpop.f32.mrf.mxu0  ;;  %v6060_v0 = vpop.f32.mrf.mxu1 }
 0x5d7   :  { %v9253_v2 = vadd.f32 %v3540_v50, %v3282_v58 }
 0x5d8   :  { %v3288_v33 = vpop.f32.mrf.mxu0  ;;  %v3564_v55 = vpop.f32.mrf.mxu1 }
 0x5d9   :  { %v3289_v25 = vadd.f32 %v3288_v33, %v9070_v34 }
 0x5da   :  { %v5950_v54 = vpop.f32.mrf.mxu0  ;;  %v6063_v15 = vpop.f32.mrf.mxu1 }
 0x5db   :  { %v9256_v6 = vadd.f32 %v3548_v13, %v3289_v25 }
 0x5dc   :  { %v3295_v22 = vpop.f32.mrf.mxu0  ;;  %v3572_v48 = vpop.f32.mrf.mxu1 }
 0x5dd   :  { %v3296_v20 = vadd.f32 %v3295_v22, %v9078_v31 }
 0x5de   :  { %v5953_v32 = vpop.f32.mrf.mxu0  ;;  %v6066_v28 = vpop.f32.mrf.mxu1 }
 0x5df   :  { %v9259_v27 = vadd.f32 %v3556_v57, %v3296_v20 }
 0x5e0   :  { %v3302_v46 = vpop.f32.mrf.mxu0  ;;  %v3580_v17 = vpop.f32.mrf.mxu1 }
 0x5e1   :  { %v3303_v10 = vadd.f32 %v3302_v46, %v9086_v9 }
 0x5e2   :  { %v5956_v40 = vpop.f32.mrf.mxu0  ;;  %v6069_v63 = vpop.f32.mrf.mxu1 }
 0x5e3   :  { %v9262_v49 = vadd.f32 %v3564_v55, %v3303_v10 }
 0x5e4   :  { %v3309_v34 = vpop.f32.mrf.mxu0  ;;  %v3588_v19 = vpop.f32.mrf.mxu1 }
 0x5e5   :  { %v3310_v42 = vadd.f32 %v3309_v34, %v9094_v26 }
 0x5e6   :  { %v5959_v14 = vpop.f32.mrf.mxu0  ;;  %v6072_v37 = vpop.f32.mrf.mxu1 }
 0x5e7   :  { %v9265_v44 = vadd.f32 %v3572_v48, %v3310_v42 }
 0x5e8   :  { %v3316_v31 = vpop.f32.mrf.mxu0  ;;  %v3596_v30 = vpop.f32.mrf.mxu1 }
 0x5e9   :  { %v3317_v47 = vadd.f32 %v3316_v31, %v9102_v29 }
 0x5ea   :  { %v5962_v50 = vpop.f32.mrf.mxu0  ;;  %v6075_v43 = vpop.f32.mrf.mxu1 }
 0x5eb   :  { %v9268_v41 = vadd.f32 %v3580_v17, %v3317_v47 }
 0x5ec   :  { %v3323_v9 = vpop.f32.mrf.mxu0  ;;  %v3604_v53 = vpop.f32.mrf.mxu1 }
 0x5ed   :  { %v3324_v16 = vadd.f32 %v3323_v9, %v9110_v61 }
 0x5ee   :  { %v5965_v13 = vpop.f32.mrf.mxu0  ;;  %v6078_v35 = vpop.f32.mrf.mxu1 }
 0x5ef   :  { %v9271_v11 = vadd.f32 %v3588_v19, %v3324_v16 }
 0x5f0   :  { %v3330_v26 = vpop.f32.mrf.mxu0  ;;  %v3612_v56 = vpop.f32.mrf.mxu1 }
 0x5f1   :  { %v3331_v51 = vadd.f32 %v3330_v26, %v9118_v39 }
 0x5f2   :  { %v5968_v57 = vpop.f32.mrf.mxu0  ;;  %v6081_v58 = vpop.f32.mrf.mxu1 }
 0x5f3   :  { %v9274_v23 = vadd.f32 %v3596_v30, %v3331_v51 }
 0x5f4   :  { %v3337_v29 = vpop.f32.mrf.mxu0  ;;  %v3620_v0 = vpop.f32.mrf.mxu1 }
 0x5f5   :  { %v3338_v33 = vadd.f32 %v3337_v29, %v9126_v12 }
 0x5f6   :  { %v5971_v55 = vpop.f32.mrf.mxu0  ;;  %v6084_v25 = vpop.f32.mrf.mxu1 }
 0x5f7   :  { %v9277_v54 = vadd.f32 %v3604_v53, %v3338_v33 }
 0x5f8   :  { %v3344_v61 = vpop.f32.mrf.mxu0  ;;  %v3628_v15 = vpop.f32.mrf.mxu1 }
 0x5f9   :  { %v3345_v22 = vadd.f32 %v3344_v61, %v9134_v4 }
 0x5fa   :  { %v5974_v48 = vpop.f32.mrf.mxu0  ;;  %v6087_v20 = vpop.f32.mrf.mxu1 }
 0x5fb   :  { %v9280_v32 = vadd.f32 %v3612_v56, %v3345_v22 }
 0x5fc   :  { %v3351_v39 = vpop.f32.mrf.mxu0  ;;  %v3636_v28 = vpop.f32.mrf.mxu1 }
 0x5fd   :  { %v3352_v46 = vadd.f32 %v3351_v39, %v9142_v24 }
 0x5fe   :  { %v5977_v17 = vpop.f32.mrf.mxu0  ;;  %v6090_v10 = vpop.f32.mrf.mxu1 }
 0x5ff   :  { %v9283_v40 = vadd.f32 %v3620_v0, %v3352_v46 }
 0x600   :  { %v3358_v12 = vpop.f32.mrf.mxu0  ;;  %v3644_v63 = vpop.f32.mrf.mxu1 }
 0x601   :  { %v3359_v34 = vadd.f32 %v3358_v12, %v9150_v5 }
 0x602   :  { %v5980_v19 = vpop.f32.mrf.mxu0  ;;  %v6093_v42 = vpop.f32.mrf.mxu1 }
 0x603   :  { %v9286_v14 = vadd.f32 %v3628_v15, %v3359_v34 }
 0x604   :  { %v3365_v4 = vpop.f32.mrf.mxu0  ;;  %v3652_v37 = vpop.f32.mrf.mxu1 }
 0x605   :  { %v3366_v31 = vadd.f32 %v3365_v4, %v9158_v59 }
 0x606   :  { %v5983_v30 = vpop.f32.mrf.mxu0  ;;  %v6096_v47 = vpop.f32.mrf.mxu1 }
 0x607   :  { %v9289_v50 = vadd.f32 %v3636_v28, %v3366_v31 }
 0x608   :  { %v3372_v24 = vpop.f32.mrf.mxu0  ;;  %v3660_v43 = vpop.f32.mrf.mxu1 }
 0x609   :  { %v3373_v9 = vadd.f32 %v3372_v24, %v9166_v60 }
 0x60a   :  { %v5986_v53 = vpop.f32.mrf.mxu0  ;;  %v6099_v16 = vpop.f32.mrf.mxu1 }
 0x60b   :  { %v9292_v13 = vadd.f32 %v3644_v63, %v3373_v9 }
 0x60c   :  { %v3379_v5 = vpop.f32.mrf.mxu0  ;;  %v3668_v35 = vpop.f32.mrf.mxu1 }
 0x60d   :  { %v3380_v26 = vadd.f32 %v3379_v5, %v9174_v62 }
 0x60e   :  { %v5989_v56 = vpop.f32.mrf.mxu0  ;;  %v6102_v51 = vpop.f32.mrf.mxu1 }
 0x60f   :  { %v9295_v57 = vadd.f32 %v3652_v37, %v3380_v26 }
 0x610   :  { %v3386_v59 = vpop.f32.mrf.mxu0  ;;  %v3676_v58 = vpop.f32.mrf.mxu1 }
 0x611   :  { %v3387_v29 = vadd.f32 %v3386_v59, %v9182_v3 }
 0x612   :  { %v5992_v0 = vpop.f32.mrf.mxu0  ;;  %v6105_v33 = vpop.f32.mrf.mxu1 }
 0x613   :  { %v9298_v55 = vadd.f32 %v3660_v43, %v3387_v29 }
 0x614   :  { %v3393_v60 = vpop.f32.mrf.mxu0  ;;  %v3684_v25 = vpop.f32.mrf.mxu1 }
 0x615   :  { %v3394_v61 = vadd.f32 %v3393_v60, %v9190_v52 }
 0x616   :  { %v5995_v15 = vpop.f32.mrf.mxu0  ;;  %v6108_v22 = vpop.f32.mrf.mxu1 }
 0x617   :  { %v9301_v48 = vadd.f32 %v3668_v35, %v3394_v61 }
 0x618   :  { %v3400_v62 = vpop.f32.mrf.mxu0  ;;  %v3692_v20 = vpop.f32.mrf.mxu1 }
 0x619   :  { %v3401_v39 = vadd.f32 %v3400_v62, %v9198_v45 }
 0x61a   :  { %v5998_v28 = vpop.f32.mrf.mxu0  ;;  %v6111_v46 = vpop.f32.mrf.mxu1 }
 0x61b   :  { %v9304_v17 = vadd.f32 %v3676_v58, %v3401_v39 }
 0x61c   :  { %v3407_v3 = vpop.f32.mrf.mxu0  ;;  %v3700_v10 = vpop.f32.mrf.mxu1 }
 0x61d   :  { %v3408_v12 = vadd.f32 %v3407_v3, %v9206_v21 }
 0x61e   :  { %v6001_v63 = vpop.f32.mrf.mxu0  ;;  %v6114_v34 = vpop.f32.mrf.mxu1 }
 0x61f   :  { %v9307_v19 = vadd.f32 %v3684_v25, %v3408_v12 }
 0x620   :  { %v3414_v52 = vpop.f32.mrf.mxu0  ;;  %v3708_v42 = vpop.f32.mrf.mxu1 }
 0x621   :  { %v3415_v4 = vadd.f32 %v3414_v52, %v9214_v7 }
 0x622   :  { %v6004_v37 = vpop.f32.mrf.mxu0  ;;  %v6117_v31 = vpop.f32.mrf.mxu1 }
 0x623   :  { %v9310_v30 = vadd.f32 %v3692_v20, %v3415_v4 }
 0x624   :  { %v3421_v45 = vpop.f32.mrf.mxu0  ;;  %v3716_v47 = vpop.f32.mrf.mxu1 }
 0x625   :  { %v3422_v24 = vadd.f32 %v3421_v45, %v9222_v8 }
 0x626   :  { %v6007_v43 = vpop.f32.mrf.mxu0  ;;  %v6120_v9 = vpop.f32.mrf.mxu1 }
 0x627   :  { %v9313_v53 = vadd.f32 %v3700_v10, %v3422_v24 }
 0x628   :  { %v3428_v21 = vpop.f32.mrf.mxu0  ;;  %v4066_v16 = vpop.f32.mrf.mxu1 }
 0x629   :  { %v3429_v5 = vadd.f32 %v3428_v21, %v9230_v1 }
 0x62a   :  { %v6010_v35 = vpop.f32.mrf.mxu0  ;;  %v6262_v26 = vpop.f32.mrf.mxu1 }
 0x62b   :  { %v9316_v56 = vadd.f32 %v3708_v42, %v3429_v5 }
 0x62c   :  { %v3435_v7 = vpop.f32.mrf.mxu0  ;;  %v4072_v51 = vpop.f32.mrf.mxu1 }
 0x62d   :  { %v3436_v59 = vadd.f32 %v3435_v7, %v9238_v36 }
 0x62e   :  { %v6013_v58 = vpop.f32.mrf.mxu0  ;;  %v6265_v29 = vpop.f32.mrf.mxu1 }
 0x62f   :  { %v9319_v0 = vadd.f32 %v3716_v47, %v3436_v59 }
 0x630   :  { %v3835_v8 = vpop.f32.mrf.mxu0  ;;  %v4078_v33 = vpop.f32.mrf.mxu1 }
 0x631   :  { %v3836_v60 = vadd.f32 %v3835_v8, %v9246_v38 }
 0x632   :  { %v6155_v25 = vpop.f32.mrf.mxu0  ;;  %v6268_v61 = vpop.f32.mrf.mxu1 }
 0x633   :  { %v4067_v1 = vadd.f32 %v4066_v16, %v3836_v60 }
 0x634   :  { %v3841_v15 = vpop.f32.mrf.mxu0  ;;  %v4084_v22 = vpop.f32.mrf.mxu1 }
 0x635   :  { %4215 = vst.msk [vmem:[%s9451_s5] sm:$0xff] %vm4214_vm2, %v4067_v1  ;;  %v3842_v36 = vadd.f32 %v3841_v15, %v9250_v18 }
 0x636   :  { %v6158_v62 = vpop.f32.mrf.mxu0  ;;  %v6271_v20 = vpop.f32.mrf.mxu1 }
 0x637   :  { %v4073_v39 = vadd.f32 %v4072_v51, %v3842_v36 }
 0x638   :  { %v3847_v28 = vpop.f32.mrf.mxu0  ;;  %v4090_v46 = vpop.f32.mrf.mxu1 }
 0x639   :  { %4216 = vst.msk [vmem:[%s9451_s5 + $0x8] sm:$0xff] %vm4214_vm2, %v4073_v39  ;;  %v3848_v38 = vadd.f32 %v3847_v28, %v9253_v2 }
 0x63a   :  { %v6161_v3 = vpop.f32.mrf.mxu0  ;;  %v6274_v10 = vpop.f32.mrf.mxu1 }
 0x63b   :  { %v4079_v12 = vadd.f32 %v4078_v33, %v3848_v38 }
 0x63c   :  { %v3853_v63 = vpop.f32.mrf.mxu0  ;;  %v4096_v34 = vpop.f32.mrf.mxu1 }
 0x63d   :  { %4217 = vst.msk [vmem:[%s9451_s5 + $0x10] sm:$0xff] %vm4214_vm2, %v4079_v12  ;;  %v3854_v18 = vadd.f32 %v3853_v63, %v9256_v6 }
 0x63e   :  { %v6164_v52 = vpop.f32.mrf.mxu0  ;;  %v6277_v42 = vpop.f32.mrf.mxu1 }
 0x63f   :  { %v4085_v4 = vadd.f32 %v4084_v22, %v3854_v18 }
 0x640   :  { %v3859_v37 = vpop.f32.mrf.mxu0  ;;  %v4102_v31 = vpop.f32.mrf.mxu1 }
 0x641   :  { %4218 = vst.msk [vmem:[%s9451_s5 + $0x18] sm:$0xff] %vm4214_vm2, %v4085_v4  ;;  %v3860_v2 = vadd.f32 %v3859_v37, %v9259_v27 }
 0x642   :  { %v6167_v45 = vpop.f32.mrf.mxu0  ;;  %v6280_v47 = vpop.f32.mrf.mxu1 }
 0x643   :  { %v4091_v24 = vadd.f32 %v4090_v46, %v3860_v2 }
 0x644   :  { %v3865_v43 = vpop.f32.mrf.mxu0  ;;  %v4108_v9 = vpop.f32.mrf.mxu1 }
 0x645   :  { %4219 = vst.msk [vmem:[%s9451_s5 + $0x20] sm:$0xff] %vm4214_vm2, %v4091_v24  ;;  %v3866_v6 = vadd.f32 %v3865_v43, %v9262_v49 }
 0x646   :  { %v6170_v21 = vpop.f32.mrf.mxu0  ;;  %v6283_v16 = vpop.f32.mrf.mxu1 }
 0x647   :  { %v4097_v5 = vadd.f32 %v4096_v34, %v3866_v6 }
 0x648   :  { %v3871_v35 = vpop.f32.mrf.mxu0  ;;  %v4114_v26 = vpop.f32.mrf.mxu1 }
 0x649   :  { %4220 = vst.msk [vmem:[%s9451_s5 + $0x28] sm:$0xff] %vm4214_vm2, %v4097_v5  ;;  %v3872_v27 = vadd.f32 %v3871_v35, %v9265_v44 }
 0x64a   :  { %v6173_v7 = vpop.f32.mrf.mxu0  ;;  %v6286_v51 = vpop.f32.mrf.mxu1 }
 0x64b   :  { %v4103_v59 = vadd.f32 %v4102_v31, %v3872_v27 }
 0x64c   :  { %v3877_v58 = vpop.f32.mrf.mxu0  ;;  %v4120_v29 = vpop.f32.mrf.mxu1 }
 0x64d   :  { %4221 = vst.msk [vmem:[%s9451_s5 + $0x30] sm:$0xff] %vm4214_vm2, %v4103_v59  ;;  %v3878_v49 = vadd.f32 %v3877_v58, %v9268_v41 }
 0x64e   :  { %v6176_v8 = vpop.f32.mrf.mxu0  ;;  %v6289_v33 = vpop.f32.mrf.mxu1 }
 0x64f   :  { %v4109_v60 = vadd.f32 %v4108_v9, %v3878_v49 }
 0x650   :  { %v3883_v25 = vpop.f32.mrf.mxu0  ;;  %v4126_v61 = vpop.f32.mrf.mxu1 }
 0x651   :  { %4222 = vst.msk [vmem:[%s9451_s5 + $0x38] sm:$0xff] %vm4214_vm2, %v4109_v60  ;;  %v3884_v44 = vadd.f32 %v3883_v25, %v9271_v11 }
 0x652   :  { %v6179_v1 = vpop.f32.mrf.mxu0  ;;  %v6292_v15 = vpop.f32.mrf.mxu1 }
 0x653   :  { %v4115_v22 = vadd.f32 %v4114_v26, %v3884_v44 }
 0x654   :  { %v3889_v36 = vpop.f32.mrf.mxu0  ;;  %v4132_v62 = vpop.f32.mrf.mxu1 }
 0x655   :  { %4223 = vst.msk [vmem:[%s9451_s5 + $0x40] sm:$0xff] %vm4214_vm2, %v4115_v22  ;;  %v3890_v41 = vadd.f32 %v3889_v36, %v9274_v23 }
 0x656   :  { %v6182_v20 = vpop.f32.mrf.mxu0  ;;  %v6295_v39 = vpop.f32.mrf.mxu1 }
 0x657   :  { %v4121_v28 = vadd.f32 %v4120_v29, %v3890_v41 }
 0x658   :  { %v3895_v46 = vpop.f32.mrf.mxu0  ;;  %v4138_v38 = vpop.f32.mrf.mxu1 }
 0x659   :  { %4224 = vst.msk [vmem:[%s9451_s5 + $0x48] sm:$0xff] %vm4214_vm2, %v4121_v28  ;;  %v3896_v11 = vadd.f32 %v3895_v46, %v9277_v54 }
 0x65a   :  { %v6185_v3 = vpop.f32.mrf.mxu0  ;;  %v6298_v10 = vpop.f32.mrf.mxu1 }
 0x65b   :  { %v4127_v12 = vadd.f32 %v4126_v61, %v3896_v11 }
 0x65c   :  { %v3901_v63 = vpop.f32.mrf.mxu0  ;;  %v4144_v34 = vpop.f32.mrf.mxu1 }
 0x65d   :  { %4225 = vst.msk [vmem:[%s9451_s5 + $0x50] sm:$0xff] %vm4214_vm2, %v4127_v12  ;;  %v3902_v23 = vadd.f32 %v3901_v63, %v9280_v32 }
 0x65e   :  { %v6188_v18 = vpop.f32.mrf.mxu0  ;;  %v6301_v52 = vpop.f32.mrf.mxu1 }
 0x65f   :  { %v4133_v42 = vadd.f32 %v4132_v62, %v3902_v23 }
 0x660   :  { %v3907_v4 = vpop.f32.mrf.mxu0  ;;  %v4150_v37 = vpop.f32.mrf.mxu1 }
 0x661   :  { %4226 = vst.msk [vmem:[%s9451_s5 + $0x58] sm:$0xff] %vm4214_vm2, %v4133_v42  ;;  %v3908_v54 = vadd.f32 %v3907_v4, %v9283_v40 }
 0x662   :  { %v6191_v31 = vpop.f32.mrf.mxu0  ;;  %v6304_v2 = vpop.f32.mrf.mxu1 }
 0x663   :  { %v4139_v45 = vadd.f32 %v4138_v38, %v3908_v54 }
 0x664   :  { %v3913_v47 = vpop.f32.mrf.mxu0  ;;  %v4156_v24 = vpop.f32.mrf.mxu1 }
 0x665   :  { %4227 = vst.msk [vmem:[%s9451_s5 + $0x60] sm:$0xff] %vm4214_vm2, %v4139_v45  ;;  %v3914_v32 = vadd.f32 %v3913_v47, %v9286_v14 }
 0x666   :  { %v6194_v43 = vpop.f32.mrf.mxu0  ;;  %v6307_v9 = vpop.f32.mrf.mxu1 }
 0x667   :  { %v4145_v6 = vadd.f32 %v4144_v34, %v3914_v32 }
 0x668   :  { %v3919_v21 = vpop.f32.mrf.mxu0  ;;  %v4162_v16 = vpop.f32.mrf.mxu1 }
 0x669   :  { %4228 = vst.msk [vmem:[%s9451_s5 + $0x68] sm:$0xff] %vm4214_vm2, %v4145_v6  ;;  %v3920_v40 = vadd.f32 %v3919_v21, %v9289_v50 }
 0x66a   :  { %v6197_v5 = vpop.f32.mrf.mxu0  ;;  %v6310_v35 = vpop.f32.mrf.mxu1 }
 0x66b   :  { %v4151_v26 = vadd.f32 %v4150_v37, %v3920_v40 }
 0x66c   :  { %v3925_v27 = vpop.f32.mrf.mxu0  ;;  %v4168_v7 = vpop.f32.mrf.mxu1 }
 0x66d   :  { %4229 = vst.msk [vmem:[%s9451_s5 + $0x70] sm:$0xff] %vm4214_vm2, %v4151_v26  ;;  %v3926_v14 = vadd.f32 %v3925_v27, %v9292_v13 }
 0x66e   :  { %v6200_v51 = vpop.f32.mrf.mxu0  ;;  %v6313_v59 = vpop.f32.mrf.mxu1 }
 0x66f   :  { %v4157_v58 = vadd.f32 %v4156_v24, %v3926_v14 }
 0x670   :  { %v3931_v29 = vpop.f32.mrf.mxu0  ;;  %v4174_v49 = vpop.f32.mrf.mxu1 }
 0x671   :  { %4230 = vst.msk [vmem:[%s9451_s5 + $0x78] sm:$0xff] %vm4214_vm2, %v4157_v58  ;;  %v3932_v50 = vadd.f32 %v3931_v29, %v9295_v57 }
 0x672   :  { %v6203_v8 = vpop.f32.mrf.mxu0  ;;  %v6316_v33 = vpop.f32.mrf.mxu1 }
 0x673   :  { %v4163_v60 = vadd.f32 %v4162_v16, %v3932_v50 }
 0x674   :  { %v3937_v25 = vpop.f32.mrf.mxu0  ;;  %v4180_v61 = vpop.f32.mrf.mxu1 }
 0x675   :  { %4231 = vst.msk [vmem:[%s9451_s5 + $0x80] sm:$0xff] %vm4214_vm2, %v4163_v60  ;;  %v3938_v13 = vadd.f32 %v3937_v25, %v9298_v55 }
 0x676   :  { %v6206_v44 = vpop.f32.mrf.mxu0  ;;  %v6319_v1 = vpop.f32.mrf.mxu1 }
 0x677   :  { %v4169_v15 = vadd.f32 %v4168_v7, %v3938_v13 }
 0x678   :  { %v3943_v22 = vpop.f32.mrf.mxu0  ;;  %v4186_v36 = vpop.f32.mrf.mxu1 }
 0x679   :  { %4232 = vst.msk [vmem:[%s9451_s5 + $0x88] sm:$0xff] %vm4214_vm2, %v4169_v15  ;;  %v3944_v57 = vadd.f32 %v3943_v22, %v9301_v48 }
 0x67a   :  { %v6209_v62 = vpop.f32.mrf.mxu0  ;;  %v6322_v41 = vpop.f32.mrf.mxu1 }
 0x67b   :  { %v4175_v20 = vadd.f32 %v4174_v49, %v3944_v57 }
 0x67c   :  { %v3949_v39 = vpop.f32.mrf.mxu0  ;;  %v4192_v28 = vpop.f32.mrf.mxu1 }
 0x67d   :  { %4233 = vst.msk [vmem:[%s9451_s5 + $0x90] sm:$0xff] %vm4214_vm2, %v4175_v20  ;;  %v3950_v55 = vadd.f32 %v3949_v39, %v9304_v17 }
 0x67e   :  { %v6212_v46 = vpop.f32.mrf.mxu0  ;;  %v6325_v38 = vpop.f32.mrf.mxu1 }
 0x67f   :  { %v4181_v11 = vadd.f32 %v4180_v61, %v3950_v55 }
 0x680   :  { %v3955_v3 = vpop.f32.mrf.mxu0  ;;  %v4198_v10 = vpop.f32.mrf.mxu1 }
 0x681   :  { %4234 = vst.msk [vmem:[%s9451_s5 + $0x98] sm:$0xff] %vm4214_vm2, %v4181_v11  ;;  %v3956_v48 = vadd.f32 %v3955_v3, %v9307_v19 }
 0x682   :  { %v6215_v12 = vpop.f32.mrf.mxu0  ;;  %v6328_v63 = vpop.f32.mrf.mxu1 }
 0x683   :  { %v4187_v34 = vadd.f32 %v4186_v36, %v3956_v48 }
 0x684   :  { %v3961_v23 = vpop.f32.mrf.mxu0  ;;  %v4204_v18 = vpop.f32.mrf.mxu1 }
 0x685   :  { %4235 = vst.msk [vmem:[%s9451_s5 + $0xa0] sm:$0xff] %vm4214_vm2, %v4187_v34  ;;  %v3962_v17 = vadd.f32 %v3961_v23, %v9310_v30 }
 0x686   :  { %v6218_v52 = vpop.f32.mrf.mxu0  ;;  %v6331_v42 = vpop.f32.mrf.mxu1 }
 0x687   :  { %v4193_v4 = vadd.f32 %v4192_v28, %v3962_v17 }
 0x688   :  { %v3967_v37 = vpop.f32.mrf.mxu0  ;;  %v4210_v54 = vpop.f32.mrf.mxu1 }
 0x689   :  { %4236 = vst.msk [vmem:[%s9451_s5 + $0xa8] sm:$0xff] %vm4214_vm2, %v4193_v4  ;;  %v3968_v19 = vadd.f32 %v3967_v37, %v9313_v53 }
 0x68a   :  { %v6221_v31 = vpop.f32.mrf.mxu0  ;;  %v6334_v2 = vpop.f32.mrf.mxu1 }
 0x68b   :  { %v4199_v45 = vadd.f32 %v4198_v10, %v3968_v19 }
 0x68c   :  { %v3973_v47 = vpop.f32.mrf.mxu0 }
 0x68d   :  { %4237 = vst.msk [vmem:[%s9451_s5 + $0xb0] sm:$0xff] %vm4214_vm2, %v4199_v45  ;;  %v3974_v30 = vadd.f32 %v3973_v47, %v9316_v56 }
 0x68e   :  { %v6224_v24 = vpop.f32.mrf.mxu0 }
 0x68f   :  { %v4205_v32 = vadd.f32 %v4204_v18, %v3974_v30 }
 0x690   :  { %v3979_v43 = vpop.f32.mrf.mxu0 }
 0x691   :  { %4238 = vst.msk [vmem:[%s9451_s5 + $0xb8] sm:$0xff] %vm4214_vm2, %v4205_v32  ;;  %v3980_v53 = vadd.f32 %v3979_v43, %v9319_v0 }
 0x692   :  { %v6227_v9 = vpop.f32.mrf.mxu0 }
 0x693   :  { %v4211_v6 = vadd.f32 %v4210_v54, %v3980_v53 }
 0x695   :  { %4239 = vst.msk [vmem:[%s9451_s5 + $0xc0] sm:$0xff] %vm4214_vm2, %v4211_v6 }
 0x696   :  { %4244 = vsyncpa [#allocation3], 1 }
 0x697   :  { %4245 = vsyncpa [#allocation5], 1 }

</bundles_post_ra>
